<compile_context>
chip_gen: v7x
topology: tpu7x:2x2x1
jax: 0.10.0
libtpu: 0.0.40
codegen_flags: <defaults>
</compile_context>

<pallas_src>
import math
import functools

import jax
import jax.numpy as jnp
from jax.experimental import pallas as pl
from jax.experimental.pallas import tpu as pltpu


def _round_up(x, m):
    return ((x + m - 1) // m) * m


# ----------------------------------------------------------------------------
# Fused whole-stack kernel: one grid step == one decoder block layer
# ----------------------------------------------------------------------------

def _decoder_stack_kernel(
    # inputs ------------------------------------------------------------------
    x0_ref, src_ref, dmask_ref, smask_ref, fcw_ref, fcb_ref,
    wqkv1_ref, bqkv1_ref, wo1_ref, bo1_ref, g1_ref, be1_ref,
    wq2_ref, bq2_ref, wkv2_ref, bkv2_ref, wo2_ref, bo2_ref, g2_ref, be2_ref,
    wff1_ref, bff1_ref, wff2_ref, bff2_ref, g3_ref, be3_ref,
    # outputs -----------------------------------------------------------------
    logits_ref, attnw_ref,
    # scratch -----------------------------------------------------------------
    x_vmem,
    *, n_heads, batch):
    l = pl.program_id(0)
    n_l = pl.num_programs(0)

    @pl.when(l == 0)
    def _init():
        x_vmem[...] = x0_ref[...]

    D = x_vmem.shape[-1]
    Dh = D // n_heads
    B = batch
    Lq = dmask_ref.shape[1]
    scale = 1.0 / math.sqrt(Dh)

    def layer_norm(y, g_ref, b_ref):
        mu = jnp.mean(y, axis=-1, keepdims=True)
        var = jnp.mean(jnp.square(y - mu), axis=-1, keepdims=True)
        return (y - mu) * jax.lax.rsqrt(var + 1e-5) * g_ref[0] + b_ref[0]

    def attend(q2, k2, v2, mask, wo, store_weights):
        """q2:[B*Lq,D], k2/v2:[B*Lkv,D], mask:[B,Lq,Lkv] (1=attend).
        Returns the already out-projected context [B*Lq, D] (bias not added)."""
        Lkv = mask.shape[2]
        q3 = q2.reshape(B, Lq, D)
        k3 = k2.reshape(B, Lkv, D)
        v3 = v2.reshape(B, Lkv, D)
        out = jnp.zeros((B * Lq, D), jnp.float32)
        for h in range(n_heads):
            sl = slice(h * Dh, (h + 1) * Dh)
            qh = q3[:, :, sl] * scale          # fold 1/sqrt(Dh) into q (cheaper than LqxLk)
            s = jnp.einsum('bqd,bkd->bqk', qh, k3[:, :, sl],
                           preferred_element_type=jnp.float32)
            s = jnp.where(mask > 0, s, -1e9)   # mask compared in-kernel, no fp32 bias DMA
            m = jnp.max(s, axis=-1, keepdims=True)
            e = jnp.exp(s - m)
            p = e * pl.reciprocal(jnp.sum(e, axis=-1, keepdims=True), approx=True)
            if store_weights:                  # only the cross-attention probs are stored
                attnw_ref[:, h, :, :] = p.astype(attnw_ref.dtype)
            ctx = jnp.einsum('bqk,bkd->bqd', p, v3[:, :, sl],
                             preferred_element_type=jnp.float32)
            # merge_heads followed by Wo == sum_h ctx_h @ Wo[h*Dh:(h+1)*Dh, :]
            out = out + jnp.dot(ctx.reshape(B * Lq, Dh), wo[sl, :],
                                preferred_element_type=jnp.float32)
        return out

    x = x_vmem[...]                            # [B*Lq, D] running activation (f32)
    src = src_ref[...]                         # [B*Ls, D]

    # ---- masked self-attention -> residual -> LayerNorm (fused) -------------
    qkv = jnp.dot(x, wqkv1_ref[0], preferred_element_type=jnp.float32) + bqkv1_ref[0]
    a = attend(qkv[:, :D], qkv[:, D:2 * D], qkv[:, 2 * D:],
               dmask_ref[...], wo1_ref[0], store_weights=False) + bo1_ref[0]
    x = layer_norm(x + a, g1_ref, be1_ref)

    # ---- cross-attention over src_encoded -> residual -> LayerNorm ----------
    q = jnp.dot(x, wq2_ref[0], preferred_element_type=jnp.float32) + bq2_ref[0]
    kv = jnp.dot(src, wkv2_ref[0], preferred_element_type=jnp.float32) + bkv2_ref[0]
    a = attend(q, kv[:, :D], kv[:, D:], smask_ref[...], wo2_ref[0],
               store_weights=True) + bo2_ref[0]
    x = layer_norm(x + a, g2_ref, be2_ref)

    # ---- position-wise FFN -> residual -> LayerNorm --------------------------
    hmid = jnp.maximum(
        jnp.dot(x, wff1_ref[0], preferred_element_type=jnp.float32) + bff1_ref[0], 0.0)
    f = jnp.dot(hmid, wff2_ref[0], preferred_element_type=jnp.float32) + bff2_ref[0]
    x = layer_norm(x + f, g3_ref, be3_ref)

    x_vmem[...] = x

    # ---- final vocab projection (lane-dense, padded to 128) on last layer ----
    @pl.when(l == n_l - 1)
    def _final():
        logits_ref[...] = (jnp.dot(x, fcw_ref[...], preferred_element_type=jnp.float32)
                           + fcb_ref[...]).astype(logits_ref.dtype)


# ----------------------------------------------------------------------------
# Wrapper (embedding gather / reshape glue only)
# ----------------------------------------------------------------------------

def _full_spec(*dims):
    return pl.BlockSpec(tuple(dims), lambda l, _n=len(dims): (0,) * _n)


def _layer_spec(*dims):
    return pl.BlockSpec((1,) + tuple(dims), lambda l, _n=len(dims): (l,) + (0,) * _n)


def decoder_forward(params, dest_sequences, src_encoded, dest_mask, src_mask,
                    *, n_heads, vocab_size):
    """
    dest_sequences: [B, Ld] int32
    src_encoded:    [B, Ls, d_model]
    dest_mask:      [B, Ld, Ld] (1 = attend)
    src_mask:       [B, Ld, Ls] (1 = attend)
    returns logits [B, Ld, vocab_size], attention_weights [B, n_heads, Ld, Ls]
    """
    B, Ld = dest_sequences.shape
    Ls = src_encoded.shape[1]
    D = params['embedding'].shape[1]
    Hd = params['wff1'].shape[2]
    n_layers = params['wqkv1'].shape[0]
    Vp = params['fc_w'].shape[1]

    emb = jnp.take(params['embedding'], dest_sequences, axis=0)      # token embedding
    x0 = (emb + params['pe'][:Ld][None]).astype(jnp.float32).reshape(B * Ld, D)
    src2 = src_encoded.astype(jnp.float32).reshape(B * Ls, D)
    dmask = dest_mask.astype(jnp.int32)
    smask = src_mask.astype(jnp.int32)

    kernel = functools.partial(_decoder_stack_kernel, n_heads=n_heads, batch=B)

    in_specs = [
        _full_spec(B * Ld, D),            # x0
        _full_spec(B * Ls, D),            # src
        _full_spec(B, Ld, Ld),            # dest mask
        _full_spec(B, Ld, Ls),            # src mask
        _full_spec(D, Vp),                # fc_w (vocab padded to 128 lanes)
        _full_spec(1, Vp),                # fc_b
        _layer_spec(D, 3 * D), _layer_spec(1, 3 * D),     # self-attn QKV
        _layer_spec(D, D), _layer_spec(1, D),             # self-attn out proj
        _layer_spec(1, D), _layer_spec(1, D),             # LN1 gamma/beta
        _layer_spec(D, D), _layer_spec(1, D),             # cross-attn Q
        _layer_spec(D, 2 * D), _layer_spec(1, 2 * D),     # cross-attn KV
        _layer_spec(D, D), _layer_spec(1, D),             # cross-attn out proj
        _layer_spec(1, D), _layer_spec(1, D),             # LN2 gamma/beta
        _layer_spec(D, Hd), _layer_spec(1, Hd),           # FFN 1
        _layer_spec(Hd, D), _layer_spec(1, D),            # FFN 2
        _layer_spec(1, D), _layer_spec(1, D),             # LN3 gamma/beta
    ]

    logits_pad, attn_w = pl.pallas_call(
        kernel,
        out_shape=(jax.ShapeDtypeStruct((B * Ld, Vp), jnp.float32),
                   jax.ShapeDtypeStruct((B, n_heads, Ld, Ls), jnp.float32)),
        grid=(n_layers,),
        in_specs=in_specs,
        out_specs=(pl.BlockSpec((B * Ld, Vp), lambda l: (0, 0)),
                   pl.BlockSpec((B, n_heads, Ld, Ls), lambda l: (0, 0, 0, 0))),
        scratch_shapes=[pltpu.VMEM((B * Ld, D), jnp.float32)],
        compiler_params=pltpu.CompilerParams(
            dimension_semantics=("arbitrary",)),   # layer axis is sequential
    )(x0, src2, dmask, smask, params['fc_w'], params['fc_b'],
      params['wqkv1'], params['bqkv1'], params['wo1'], params['bo1'],
      params['g1'], params['be1'],
      params['wq2'], params['bq2'], params['wkv2'], params['bkv2'],
      params['wo2'], params['bo2'], params['g2'], params['be2'],
      params['wff1'], params['bff1'], params['wff2'], params['bff2'],
      params['g3'], params['be3'])

    logits = logits_pad.reshape(B, Ld, Vp)[:, :, :vocab_size]
    return logits, attn_w


# ----------------------------------------------------------------------------
# Parameters
# ----------------------------------------------------------------------------

def sinusoidal_pe(max_len, d_model):
    pos = jnp.arange(max_len, dtype=jnp.float32)[:, None]
    div = jnp.exp(jnp.arange(0, d_model, 2, dtype=jnp.float32)
                  * (-math.log(10000.0) / d_model))
    pe = jnp.zeros((max_len, d_model), jnp.float32)
    pe = pe.at[:, 0::2].set(jnp.sin(pos * div))
    pe = pe.at[:, 1::2].set(jnp.cos(pos * div))
    return pe


def init_params(key, vocab_size, max_len, d_model, n_heads, hidden_size, n_layers):
    D, Hd, L = d_model, hidden_size, n_layers
    Vp = _round_up(vocab_size, 128)

    def dense(k, shape, fan_in):
        return jax.random.normal(k, shape, jnp.float32) * (1.0 / math.sqrt(fan_in))

    key, k_emb, k_fc = jax.random.split(key, 3)
    params = {
        'embedding': jax.random.normal(k_emb, (vocab_size, D), jnp.float32) * 0.02,
        'pe': sinusoidal_pe(max_len, D),
    }
    fc_w = jnp.zeros((D, Vp), jnp.float32)
    fc_w = fc_w.at[:, :vocab_size].set(
        jax.random.normal(k_fc, (D, vocab_size), jnp.float32) * 0.02)
    params['fc_w'] = fc_w
    params['fc_b'] = jnp.zeros((1, Vp), jnp.float32)

    key, *ks = jax.random.split(key, 8)
    params['wqkv1'] = dense(ks[0], (L, D, 3 * D), D)
    params['bqkv1'] = jnp.zeros((L, 1, 3 * D), jnp.float32)
    params['wo1'] = dense(ks[1], (L, D, D), D)
    params['bo1'] = jnp.zeros((L, 1, D), jnp.float32)
    params['g1'] = jnp.ones((L, 1, D), jnp.float32)
    params['be1'] = jnp.zeros((L, 1, D), jnp.float32)
    params['wq2'] = dense(ks[2], (L, D, D), D)
    params['bq2'] = jnp.zeros((L, 1, D), jnp.float32)
    params['wkv2'] = dense(ks[3], (L, D, 2 * D), D)
    params['bkv2'] = jnp.zeros((L, 1, 2 * D), jnp.float32)
    params['wo2'] = dense(ks[4], (L, D, D), D)
    params['bo2'] = jnp.zeros((L, 1, D), jnp.float32)
    params['g2'] = jnp.ones((L, 1, D), jnp.float32)
    params['be2'] = jnp.zeros((L, 1, D), jnp.float32)
    params['wff1'] = dense(ks[5], (L, D, Hd), D)
    params['bff1'] = jnp.zeros((L, 1, Hd), jnp.float32)
    params['wff2'] = dense(ks[6], (L, Hd, D), Hd)
    params['bff2'] = jnp.zeros((L, 1, D), jnp.float32)
    params['g3'] = jnp.ones((L, 1, D), jnp.float32)
    params['be3'] = jnp.zeros((L, 1, D), jnp.float32)
    return params


# ----------------------------------------------------------------------------
# Main
# ----------------------------------------------------------------------------

if __name__ == "__main__":
    vocab_size = 50
    max_len = 16
    d_model = 32
    n_heads = 4
    hidden_size = 64
    n_layers = 2
    batch = 2
    dest_len = 8
    src_len = 8

    key = jax.random.PRNGKey(0)
    key, k_params, k_tok, k_src = jax.random.split(key, 4)

    params = init_params(k_params, vocab_size, max_len, d_model, n_heads,
                         hidden_size, n_layers)

    dest_sequences = jax.random.randint(k_tok, (batch, dest_len), 0, vocab_size,
                                        dtype=jnp.int32)
    src_encoded = jax.random.normal(k_src, (batch, src_len, d_model), jnp.float32)

    # causal mask for decoder self-attention, full mask for cross-attention
    causal = jnp.tril(jnp.ones((dest_len, dest_len), jnp.int32))
    dest_mask = jnp.broadcast_to(causal, (batch, dest_len, dest_len))
    src_mask = jnp.ones((batch, dest_len, src_len), jnp.int32)

    fwd = jax.jit(functools.partial(decoder_forward, n_heads=n_heads,
                                    vocab_size=vocab_size))
    logits, attn_w = fwd(params, dest_sequences, src_encoded, dest_mask, src_mask)
    jax.block_until_ready((logits, attn_w))

    assert logits.shape == (batch, dest_len, vocab_size), logits.shape
    assert attn_w.shape == (batch, n_heads, dest_len, src_len), attn_w.shape
    assert bool(jnp.all(jnp.isfinite(logits)))
    assert bool(jnp.all(jnp.isfinite(attn_w)))
    print("KERNEL_OK")
</pallas_src>

<mosaic_0001>
module attributes {stable_mosaic.version = 11 : i64} {
  func.func @_decoder_stack_kernel(%arg0: i32, %arg1: memref<16x32xf32, #tpu.memory_space<vmem>>, %arg2: memref<16x32xf32, #tpu.memory_space<vmem>>, %arg3: memref<2x8x8xi32, #tpu.memory_space<vmem>>, %arg4: memref<2x8x8xi32, #tpu.memory_space<vmem>>, %arg5: memref<32x128xf32, #tpu.memory_space<vmem>>, %arg6: memref<1x128xf32, #tpu.memory_space<vmem>>, %arg7: memref<1x32x96xf32, #tpu.memory_space<vmem>>, %arg8: memref<1x1x96xf32, #tpu.memory_space<vmem>>, %arg9: memref<1x32x32xf32, #tpu.memory_space<vmem>>, %arg10: memref<1x1x32xf32, #tpu.memory_space<vmem>>, %arg11: memref<1x1x32xf32, #tpu.memory_space<vmem>>, %arg12: memref<1x1x32xf32, #tpu.memory_space<vmem>>, %arg13: memref<1x32x32xf32, #tpu.memory_space<vmem>>, %arg14: memref<1x1x32xf32, #tpu.memory_space<vmem>>, %arg15: memref<1x32x64xf32, #tpu.memory_space<vmem>>, %arg16: memref<1x1x64xf32, #tpu.memory_space<vmem>>, %arg17: memref<1x32x32xf32, #tpu.memory_space<vmem>>, %arg18: memref<1x1x32xf32, #tpu.memory_space<vmem>>, %arg19: memref<1x1x32xf32, #tpu.memory_space<vmem>>, %arg20: memref<1x1x32xf32, #tpu.memory_space<vmem>>, %arg21: memref<1x32x64xf32, #tpu.memory_space<vmem>>, %arg22: memref<1x1x64xf32, #tpu.memory_space<vmem>>, %arg23: memref<1x64x32xf32, #tpu.memory_space<vmem>>, %arg24: memref<1x1x32xf32, #tpu.memory_space<vmem>>, %arg25: memref<1x1x32xf32, #tpu.memory_space<vmem>>, %arg26: memref<1x1x32xf32, #tpu.memory_space<vmem>>, %arg27: memref<16x128xf32, #tpu.memory_space<vmem>>, %arg28: memref<2x4x8x8xf32, #tpu.memory_space<vmem>>, %arg29: memref<16x32xf32, #tpu.memory_space<vmem>>) attributes {dimension_semantics = [#tpu.dimension_semantics<arbitrary>], iteration_bounds = array<i64: 2>, scalar_prefetch = 0 : i64, scratch_operands = 1 : i64, tpu.core_type = #tpu.core_type<tc>, window_params = [{pipeline_mode = #tpu.pipeline_mode<synchronous>, transform_indices = @transform_0, window_bounds = array<i64: 16, 32>}, {pipeline_mode = #tpu.pipeline_mode<synchronous>, transform_indices = @transform_1, window_bounds = array<i64: 16, 32>}, {pipeline_mode = #tpu.pipeline_mode<synchronous>, transform_indices = @transform_2, window_bounds = array<i64: 2, 8, 8>}, {pipeline_mode = #tpu.pipeline_mode<synchronous>, transform_indices = @transform_3, window_bounds = array<i64: 2, 8, 8>}, {pipeline_mode = #tpu.pipeline_mode<synchronous>, transform_indices = @transform_4, window_bounds = array<i64: 32, 128>}, {pipeline_mode = #tpu.pipeline_mode<synchronous>, transform_indices = @transform_5, window_bounds = array<i64: 1, 128>}, {transform_indices = @transform_6, window_bounds = array<i64: 1, 32, 96>}, {transform_indices = @transform_7, window_bounds = array<i64: 1, 1, 96>}, {transform_indices = @transform_8, window_bounds = array<i64: 1, 32, 32>}, {transform_indices = @transform_9, window_bounds = array<i64: 1, 1, 32>}, {transform_indices = @transform_10, window_bounds = array<i64: 1, 1, 32>}, {transform_indices = @transform_11, window_bounds = array<i64: 1, 1, 32>}, {transform_indices = @transform_12, window_bounds = array<i64: 1, 32, 32>}, {transform_indices = @transform_13, window_bounds = array<i64: 1, 1, 32>}, {transform_indices = @transform_14, window_bounds = array<i64: 1, 32, 64>}, {transform_indices = @transform_15, window_bounds = array<i64: 1, 1, 64>}, {transform_indices = @transform_16, window_bounds = array<i64: 1, 32, 32>}, {transform_indices = @transform_17, window_bounds = array<i64: 1, 1, 32>}, {transform_indices = @transform_18, window_bounds = array<i64: 1, 1, 32>}, {transform_indices = @transform_19, window_bounds = array<i64: 1, 1, 32>}, {transform_indices = @transform_20, window_bounds = array<i64: 1, 32, 64>}, {transform_indices = @transform_21, window_bounds = array<i64: 1, 1, 64>}, {transform_indices = @transform_22, window_bounds = array<i64: 1, 64, 32>}, {transform_indices = @transform_23, window_bounds = array<i64: 1, 1, 32>}, {transform_indices = @transform_24, window_bounds = array<i64: 1, 1, 32>}, {transform_indices = @transform_25, window_bounds = array<i64: 1, 1, 32>}, {pipeline_mode = #tpu.pipeline_mode<synchronous>, transform_indices = @transform_26, window_bounds = array<i64: 16, 128>}, {pipeline_mode = #tpu.pipeline_mode<synchronous>, transform_indices = @transform_27, window_bounds = array<i64: 2, 4, 8, 8>}]} {
    %c0_i32 = arith.constant 0 : i32
    %0 = arith.cmpi eq, %arg0, %c0_i32 : i32
    %1 = arith.extui %0 : i1 to i32
    %c0_i32_0 = arith.constant 0 : i32
    %2 = arith.cmpi ne, %1, %c0_i32_0 : i32
    scf.if %2 {
      %c0_172 = arith.constant 0 : index
      %c0_173 = arith.constant 0 : index
      %366 = vector.load %arg1[%c0_172, %c0_173] : memref<16x32xf32, #tpu.memory_space<vmem>>, vector<16x32xf32>
      %c0_174 = arith.constant 0 : index
      %c0_175 = arith.constant 0 : index
      %367 = vector.load %arg29[%c0_174, %c0_175] : memref<16x32xf32, #tpu.memory_space<vmem>>, vector<16x32xf32>
      tpu.vector_store %arg29[%c0_174, %c0_175], %366 {strides = array<i32>} : memref<16x32xf32, #tpu.memory_space<vmem>>, vector<16x32xf32>,
    } else {
    }
    %c0 = arith.constant 0 : index
    %c0_1 = arith.constant 0 : index
    %3 = vector.load %arg29[%c0, %c0_1] : memref<16x32xf32, #tpu.memory_space<vmem>>, vector<16x32xf32>
    %c0_2 = arith.constant 0 : index
    %c0_3 = arith.constant 0 : index
    %4 = vector.load %arg2[%c0_2, %c0_3] : memref<16x32xf32, #tpu.memory_space<vmem>>, vector<16x32xf32>
    %c0_4 = arith.constant 0 : index
    %c0_5 = arith.constant 0 : index
    %c0_6 = arith.constant 0 : index
    %5 = vector.load %arg7[%c0_4, %c0_5, %c0_6] : memref<1x32x96xf32, #tpu.memory_space<vmem>>, vector<1x32x96xf32>
    %6 = vector.shape_cast %5 : vector<1x32x96xf32> to vector<32x96xf32>
    %cst = arith.constant dense<0.000000e+00> : vector<16x96xf32>
    %7 = tpu.matmul %3, %6, %cst {dimension_numbers = #tpu.dot_dimension_numbers<[1], [0], [0], [1], [0, 0, 1, 1], [], []>} : vector<16x32xf32>, vector<32x96xf32>, vector<16x96xf32> -> vector<16x96xf32>
    %c0_7 = arith.constant 0 : index
    %c0_8 = arith.constant 0 : index
    %c0_9 = arith.constant 0 : index
    %8 = vector.load %arg8[%c0_7, %c0_8, %c0_9] : memref<1x1x96xf32, #tpu.memory_space<vmem>>, vector<1x1x96xf32>
    %9 = vector.shape_cast %8 : vector<1x1x96xf32> to vector<1x96xf32>
    %10 = vector.broadcast %9 : vector<1x96xf32> to vector<16x96xf32>
    %11 = arith.addf %7, %10 : vector<16x96xf32>
    %12 = vector.extract_strided_slice %11 {offsets = [0, 0], sizes = [16, 32], strides = [1, 1]} : vector<16x96xf32> to vector<16x32xf32>
    %13 = vector.extract_strided_slice %11 {offsets = [0, 32], sizes = [16, 32], strides = [1, 1]} : vector<16x96xf32> to vector<16x32xf32>
    %14 = vector.extract_strided_slice %11 {offsets = [0, 64], sizes = [16, 32], strides = [1, 1]} : vector<16x96xf32> to vector<16x32xf32>
    %c0_10 = arith.constant 0 : index
    %c0_11 = arith.constant 0 : index
    %c0_12 = arith.constant 0 : index
    %15 = vector.load %arg3[%c0_10, %c0_11, %c0_12] : memref<2x8x8xi32, #tpu.memory_space<vmem>>, vector<2x8x8xi32>
    %c0_13 = arith.constant 0 : index
    %c0_14 = arith.constant 0 : index
    %c0_15 = arith.constant 0 : index
    %16 = vector.load %arg9[%c0_13, %c0_14, %c0_15] : memref<1x32x32xf32, #tpu.memory_space<vmem>>, vector<1x32x32xf32>
    %17 = vector.shape_cast %16 : vector<1x32x32xf32> to vector<32x32xf32>
    %18 = vector.shape_cast %12 : vector<16x32xf32> to vector<2x8x32xf32>
    %19 = vector.shape_cast %13 : vector<16x32xf32> to vector<2x8x32xf32>
    %20 = vector.shape_cast %14 : vector<16x32xf32> to vector<2x8x32xf32>
    %cst_16 = arith.constant 0.000000e+00 : f32
    %21 = vector.broadcast %cst_16 : f32 to vector<16x32xf32>
    %22 = vector.extract_strided_slice %18 {offsets = [0, 0, 0], sizes = [2, 8, 8], strides = [1, 1, 1]} : vector<2x8x32xf32> to vector<2x8x8xf32>
    %cst_17 = arith.constant 0.353553385 : f32
    %23 = vector.broadcast %cst_17 : f32 to vector<2x8x8xf32>
    %24 = arith.mulf %22, %23 : vector<2x8x8xf32>
    %25 = vector.extract_strided_slice %19 {offsets = [0, 0, 0], sizes = [2, 8, 8], strides = [1, 1, 1]} : vector<2x8x32xf32> to vector<2x8x8xf32>
    "tpu.trace_start"() <{level = 10 : i32, message = "bqd,bkd->bqk"}> : () -> ()
    %cst_18 = arith.constant dense<0.000000e+00> : vector<2x8x8xf32>
    %26 = tpu.matmul %24, %25, %cst_18 {dimension_numbers = #tpu.dot_dimension_numbers<[2], [2], [1], [1], [0, 0, 0, 1, 1, 1], [0], [0]>} : vector<2x8x8xf32>, vector<2x8x8xf32>, vector<2x8x8xf32> -> vector<2x8x8xf32>
    %c0_i32_19 = arith.constant 0 : i32
    "tpu.trace_stop"() : () -> ()
    %27 = vector.broadcast %c0_i32_19 : i32 to vector<2x8x8xi32>
    %28 = arith.cmpi sgt, %15, %27 : vector<2x8x8xi32>
    %cst_20 = arith.constant -1.000000e+09 : f32
    %29 = vector.broadcast %cst_20 : f32 to vector<2x8x8xf32>
    %30 = arith.select %28, %26, %29 : vector<2x8x8xi1>, vector<2x8x8xf32>
    %cst_21 = arith.constant dense<0xFF800000> : vector<2x8xf32>
    %31 = vector.multi_reduction <maximumf>, %30, %cst_21 [2] : vector<2x8x8xf32> to vector<2x8xf32>
    %32 = vector.shape_cast %31 : vector<2x8xf32> to vector<2x8x1xf32>
    %33 = vector.broadcast %32 : vector<2x8x1xf32> to vector<2x8x8xf32>
    %34 = arith.subf %30, %33 : vector<2x8x8xf32>
    %35 = math.exp %34 : vector<2x8x8xf32>
    %cst_22 = arith.constant dense<0.000000e+00> : vector<2x8xf32>
    %36 = vector.multi_reduction <add>, %35, %cst_22 [2] : vector<2x8x8xf32> to vector<2x8xf32>
    %37 = vector.shape_cast %36 : vector<2x8xf32> to vector<2x8x1xf32>
    %38 = tpu.reciprocal %37 {approx = true} : vector<2x8x1xf32> -> vector<2x8x1xf32>
    %39 = vector.broadcast %38 : vector<2x8x1xf32> to vector<2x8x8xf32>
    %40 = arith.mulf %35, %39 : vector<2x8x8xf32>
    %41 = vector.extract_strided_slice %20 {offsets = [0, 0, 0], sizes = [2, 8, 8], strides = [1, 1, 1]} : vector<2x8x32xf32> to vector<2x8x8xf32>
    "tpu.trace_start"() <{level = 10 : i32, message = "bqk,bkd->bqd"}> : () -> ()
    %cst_23 = arith.constant dense<0.000000e+00> : vector<2x8x8xf32>
    %42 = tpu.matmul %40, %41, %cst_23 {dimension_numbers = #tpu.dot_dimension_numbers<[2], [1], [1], [2], [0, 0, 0, 1, 1, 2], [0], [0]>} : vector<2x8x8xf32>, vector<2x8x8xf32>, vector<2x8x8xf32> -> vector<2x8x8xf32>
    "tpu.trace_stop"() : () -> ()
    %43 = vector.shape_cast %42 : vector<2x8x8xf32> to vector<16x8xf32>
    %44 = vector.extract_strided_slice %17 {offsets = [0, 0], sizes = [8, 32], strides = [1, 1]} : vector<32x32xf32> to vector<8x32xf32>
    %cst_24 = arith.constant dense<0.000000e+00> : vector<16x32xf32>
    %45 = tpu.matmul %43, %44, %cst_24 {dimension_numbers = #tpu.dot_dimension_numbers<[1], [0], [0], [1], [0, 0, 1, 1], [], []>} : vector<16x8xf32>, vector<8x32xf32>, vector<16x32xf32> -> vector<16x32xf32>
    %46 = arith.addf %21, %45 : vector<16x32xf32>
    %47 = vector.extract_strided_slice %18 {offsets = [0, 0, 8], sizes = [2, 8, 8], strides = [1, 1, 1]} : vector<2x8x32xf32> to vector<2x8x8xf32>
    %cst_25 = arith.constant 0.353553385 : f32
    %48 = vector.broadcast %cst_25 : f32 to vector<2x8x8xf32>
    %49 = arith.mulf %47, %48 : vector<2x8x8xf32>
    %50 = vector.extract_strided_slice %19 {offsets = [0, 0, 8], sizes = [2, 8, 8], strides = [1, 1, 1]} : vector<2x8x32xf32> to vector<2x8x8xf32>
    "tpu.trace_start"() <{level = 10 : i32, message = "bqd,bkd->bqk"}> : () -> ()
    %cst_26 = arith.constant dense<0.000000e+00> : vector<2x8x8xf32>
    %51 = tpu.matmul %49, %50, %cst_26 {dimension_numbers = #tpu.dot_dimension_numbers<[2], [2], [1], [1], [0, 0, 0, 1, 1, 1], [0], [0]>} : vector<2x8x8xf32>, vector<2x8x8xf32>, vector<2x8x8xf32> -> vector<2x8x8xf32>
    %c0_i32_27 = arith.constant 0 : i32
    "tpu.trace_stop"() : () -> ()
    %52 = vector.broadcast %c0_i32_27 : i32 to vector<2x8x8xi32>
    %53 = arith.cmpi sgt, %15, %52 : vector<2x8x8xi32>
    %cst_28 = arith.constant -1.000000e+09 : f32
    %54 = vector.broadcast %cst_28 : f32 to vector<2x8x8xf32>
    %55 = arith.select %53, %51, %54 : vector<2x8x8xi1>, vector<2x8x8xf32>
    %cst_29 = arith.constant dense<0xFF800000> : vector<2x8xf32>
    %56 = vector.multi_reduction <maximumf>, %55, %cst_29 [2] : vector<2x8x8xf32> to vector<2x8xf32>
    %57 = vector.shape_cast %56 : vector<2x8xf32> to vector<2x8x1xf32>
    %58 = vector.broadcast %57 : vector<2x8x1xf32> to vector<2x8x8xf32>
    %59 = arith.subf %55, %58 : vector<2x8x8xf32>
    %60 = math.exp %59 : vector<2x8x8xf32>
    %cst_30 = arith.constant dense<0.000000e+00> : vector<2x8xf32>
    %61 = vector.multi_reduction <add>, %60, %cst_30 [2] : vector<2x8x8xf32> to vector<2x8xf32>
    %62 = vector.shape_cast %61 : vector<2x8xf32> to vector<2x8x1xf32>
    %63 = tpu.reciprocal %62 {approx = true} : vector<2x8x1xf32> -> vector<2x8x1xf32>
    %64 = vector.broadcast %63 : vector<2x8x1xf32> to vector<2x8x8xf32>
    %65 = arith.mulf %60, %64 : vector<2x8x8xf32>
    %66 = vector.extract_strided_slice %20 {offsets = [0, 0, 8], sizes = [2, 8, 8], strides = [1, 1, 1]} : vector<2x8x32xf32> to vector<2x8x8xf32>
    "tpu.trace_start"() <{level = 10 : i32, message = "bqk,bkd->bqd"}> : () -> ()
    %cst_31 = arith.constant dense<0.000000e+00> : vector<2x8x8xf32>
    %67 = tpu.matmul %65, %66, %cst_31 {dimension_numbers = #tpu.dot_dimension_numbers<[2], [1], [1], [2], [0, 0, 0, 1, 1, 2], [0], [0]>} : vector<2x8x8xf32>, vector<2x8x8xf32>, vector<2x8x8xf32> -> vector<2x8x8xf32>
    "tpu.trace_stop"() : () -> ()
    %68 = vector.shape_cast %67 : vector<2x8x8xf32> to vector<16x8xf32>
    %69 = vector.extract_strided_slice %17 {offsets = [8, 0], sizes = [8, 32], strides = [1, 1]} : vector<32x32xf32> to vector<8x32xf32>
    %cst_32 = arith.constant dense<0.000000e+00> : vector<16x32xf32>
    %70 = tpu.matmul %68, %69, %cst_32 {dimension_numbers = #tpu.dot_dimension_numbers<[1], [0], [0], [1], [0, 0, 1, 1], [], []>} : vector<16x8xf32>, vector<8x32xf32>, vector<16x32xf32> -> vector<16x32xf32>
    %71 = arith.addf %46, %70 : vector<16x32xf32>
    %72 = vector.extract_strided_slice %18 {offsets = [0, 0, 16], sizes = [2, 8, 8], strides = [1, 1, 1]} : vector<2x8x32xf32> to vector<2x8x8xf32>
    %cst_33 = arith.constant 0.353553385 : f32
    %73 = vector.broadcast %cst_33 : f32 to vector<2x8x8xf32>
    %74 = arith.mulf %72, %73 : vector<2x8x8xf32>
    %75 = vector.extract_strided_slice %19 {offsets = [0, 0, 16], sizes = [2, 8, 8], strides = [1, 1, 1]} : vector<2x8x32xf32> to vector<2x8x8xf32>
    "tpu.trace_start"() <{level = 10 : i32, message = "bqd,bkd->bqk"}> : () -> ()
    %cst_34 = arith.constant dense<0.000000e+00> : vector<2x8x8xf32>
    %76 = tpu.matmul %74, %75, %cst_34 {dimension_numbers = #tpu.dot_dimension_numbers<[2], [2], [1], [1], [0, 0, 0, 1, 1, 1], [0], [0]>} : vector<2x8x8xf32>, vector<2x8x8xf32>, vector<2x8x8xf32> -> vector<2x8x8xf32>
    %c0_i32_35 = arith.constant 0 : i32
    "tpu.trace_stop"() : () -> ()
    %77 = vector.broadcast %c0_i32_35 : i32 to vector<2x8x8xi32>
    %78 = arith.cmpi sgt, %15, %77 : vector<2x8x8xi32>
    %cst_36 = arith.constant -1.000000e+09 : f32
    %79 = vector.broadcast %cst_36 : f32 to vector<2x8x8xf32>
    %80 = arith.select %78, %76, %79 : vector<2x8x8xi1>, vector<2x8x8xf32>
    %cst_37 = arith.constant dense<0xFF800000> : vector<2x8xf32>
    %81 = vector.multi_reduction <maximumf>, %80, %cst_37 [2] : vector<2x8x8xf32> to vector<2x8xf32>
    %82 = vector.shape_cast %81 : vector<2x8xf32> to vector<2x8x1xf32>
    %83 = vector.broadcast %82 : vector<2x8x1xf32> to vector<2x8x8xf32>
    %84 = arith.subf %80, %83 : vector<2x8x8xf32>
    %85 = math.exp %84 : vector<2x8x8xf32>
    %cst_38 = arith.constant dense<0.000000e+00> : vector<2x8xf32>
    %86 = vector.multi_reduction <add>, %85, %cst_38 [2] : vector<2x8x8xf32> to vector<2x8xf32>
    %87 = vector.shape_cast %86 : vector<2x8xf32> to vector<2x8x1xf32>
    %88 = tpu.reciprocal %87 {approx = true} : vector<2x8x1xf32> -> vector<2x8x1xf32>
    %89 = vector.broadcast %88 : vector<2x8x1xf32> to vector<2x8x8xf32>
    %90 = arith.mulf %85, %89 : vector<2x8x8xf32>
    %91 = vector.extract_strided_slice %20 {offsets = [0, 0, 16], sizes = [2, 8, 8], strides = [1, 1, 1]} : vector<2x8x32xf32> to vector<2x8x8xf32>
    "tpu.trace_start"() <{level = 10 : i32, message = "bqk,bkd->bqd"}> : () -> ()
    %cst_39 = arith.constant dense<0.000000e+00> : vector<2x8x8xf32>
    %92 = tpu.matmul %90, %91, %cst_39 {dimension_numbers = #tpu.dot_dimension_numbers<[2], [1], [1], [2], [0, 0, 0, 1, 1, 2], [0], [0]>} : vector<2x8x8xf32>, vector<2x8x8xf32>, vector<2x8x8xf32> -> vector<2x8x8xf32>
    "tpu.trace_stop"() : () -> ()
    %93 = vector.shape_cast %92 : vector<2x8x8xf32> to vector<16x8xf32>
    %94 = vector.extract_strided_slice %17 {offsets = [16, 0], sizes = [8, 32], strides = [1, 1]} : vector<32x32xf32> to vector<8x32xf32>
    %cst_40 = arith.constant dense<0.000000e+00> : vector<16x32xf32>
    %95 = tpu.matmul %93, %94, %cst_40 {dimension_numbers = #tpu.dot_dimension_numbers<[1], [0], [0], [1], [0, 0, 1, 1], [], []>} : vector<16x8xf32>, vector<8x32xf32>, vector<16x32xf32> -> vector<16x32xf32>
    %96 = arith.addf %71, %95 : vector<16x32xf32>
    %97 = vector.extract_strided_slice %18 {offsets = [0, 0, 24], sizes = [2, 8, 8], strides = [1, 1, 1]} : vector<2x8x32xf32> to vector<2x8x8xf32>
    %cst_41 = arith.constant 0.353553385 : f32
    %98 = vector.broadcast %cst_41 : f32 to vector<2x8x8xf32>
    %99 = arith.mulf %97, %98 : vector<2x8x8xf32>
    %100 = vector.extract_strided_slice %19 {offsets = [0, 0, 24], sizes = [2, 8, 8], strides = [1, 1, 1]} : vector<2x8x32xf32> to vector<2x8x8xf32>
    "tpu.trace_start"() <{level = 10 : i32, message = "bqd,bkd->bqk"}> : () -> ()
    %cst_42 = arith.constant dense<0.000000e+00> : vector<2x8x8xf32>
    %101 = tpu.matmul %99, %100, %cst_42 {dimension_numbers = #tpu.dot_dimension_numbers<[2], [2], [1], [1], [0, 0, 0, 1, 1, 1], [0], [0]>} : vector<2x8x8xf32>, vector<2x8x8xf32>, vector<2x8x8xf32> -> vector<2x8x8xf32>
    %c0_i32_43 = arith.constant 0 : i32
    "tpu.trace_stop"() : () -> ()
    %102 = vector.broadcast %c0_i32_43 : i32 to vector<2x8x8xi32>
    %103 = arith.cmpi sgt, %15, %102 : vector<2x8x8xi32>
    %cst_44 = arith.constant -1.000000e+09 : f32
    %104 = vector.broadcast %cst_44 : f32 to vector<2x8x8xf32>
    %105 = arith.select %103, %101, %104 : vector<2x8x8xi1>, vector<2x8x8xf32>
    %cst_45 = arith.constant dense<0xFF800000> : vector<2x8xf32>
    %106 = vector.multi_reduction <maximumf>, %105, %cst_45 [2] : vector<2x8x8xf32> to vector<2x8xf32>
    %107 = vector.shape_cast %106 : vector<2x8xf32> to vector<2x8x1xf32>
    %108 = vector.broadcast %107 : vector<2x8x1xf32> to vector<2x8x8xf32>
    %109 = arith.subf %105, %108 : vector<2x8x8xf32>
    %110 = math.exp %109 : vector<2x8x8xf32>
    %cst_46 = arith.constant dense<0.000000e+00> : vector<2x8xf32>
    %111 = vector.multi_reduction <add>, %110, %cst_46 [2] : vector<2x8x8xf32> to vector<2x8xf32>
    %112 = vector.shape_cast %111 : vector<2x8xf32> to vector<2x8x1xf32>
    %113 = tpu.reciprocal %112 {approx = true} : vector<2x8x1xf32> -> vector<2x8x1xf32>
    %114 = vector.broadcast %113 : vector<2x8x1xf32> to vector<2x8x8xf32>
    %115 = arith.mulf %110, %114 : vector<2x8x8xf32>
    %116 = vector.extract_strided_slice %20 {offsets = [0, 0, 24], sizes = [2, 8, 8], strides = [1, 1, 1]} : vector<2x8x32xf32> to vector<2x8x8xf32>
    "tpu.trace_start"() <{level = 10 : i32, message = "bqk,bkd->bqd"}> : () -> ()
    %cst_47 = arith.constant dense<0.000000e+00> : vector<2x8x8xf32>
    %117 = tpu.matmul %115, %116, %cst_47 {dimension_numbers = #tpu.dot_dimension_numbers<[2], [1], [1], [2], [0, 0, 0, 1, 1, 2], [0], [0]>} : vector<2x8x8xf32>, vector<2x8x8xf32>, vector<2x8x8xf32> -> vector<2x8x8xf32>
    "tpu.trace_stop"() : () -> ()
    %118 = vector.shape_cast %117 : vector<2x8x8xf32> to vector<16x8xf32>
    %119 = vector.extract_strided_slice %17 {offsets = [24, 0], sizes = [8, 32], strides = [1, 1]} : vector<32x32xf32> to vector<8x32xf32>
    %cst_48 = arith.constant dense<0.000000e+00> : vector<16x32xf32>
    %120 = tpu.matmul %118, %119, %cst_48 {dimension_numbers = #tpu.dot_dimension_numbers<[1], [0], [0], [1], [0, 0, 1, 1], [], []>} : vector<16x8xf32>, vector<8x32xf32>, vector<16x32xf32> -> vector<16x32xf32>
    %121 = arith.addf %96, %120 : vector<16x32xf32>
    %c0_49 = arith.constant 0 : index
    %c0_50 = arith.constant 0 : index
    %c0_51 = arith.constant 0 : index
    %122 = vector.load %arg10[%c0_49, %c0_50, %c0_51] : memref<1x1x32xf32, #tpu.memory_space<vmem>>, vector<1x1x32xf32>
    %123 = vector.shape_cast %122 : vector<1x1x32xf32> to vector<1x32xf32>
    %124 = vector.broadcast %123 : vector<1x32xf32> to vector<16x32xf32>
    %125 = arith.addf %121, %124 : vector<16x32xf32>
    %126 = arith.addf %3, %125 : vector<16x32xf32>
    %cst_52 = arith.constant dense<0.000000e+00> : vector<16xf32>
    %127 = vector.multi_reduction <add>, %126, %cst_52 [1] : vector<16x32xf32> to vector<16xf32>
    %128 = vector.shape_cast %127 : vector<16xf32> to vector<16x1xf32>
    %cst_53 = arith.constant 3.200000e+01 : f32
    %129 = vector.broadcast %cst_53 : f32 to vector<16x1xf32>
    %130 = arith.divf %128, %129 : vector<16x1xf32>
    %131 = vector.broadcast %130 : vector<16x1xf32> to vector<16x32xf32>
    %132 = arith.subf %126, %131 : vector<16x32xf32>
    %133 = arith.mulf %132, %132 : vector<16x32xf32>
    %cst_54 = arith.constant dense<0.000000e+00> : vector<16xf32>
    %134 = vector.multi_reduction <add>, %133, %cst_54 [1] : vector<16x32xf32> to vector<16xf32>
    %135 = vector.shape_cast %134 : vector<16xf32> to vector<16x1xf32>
    %cst_55 = arith.constant 3.200000e+01 : f32
    %136 = vector.broadcast %cst_55 : f32 to vector<16x1xf32>
    %137 = arith.divf %135, %136 : vector<16x1xf32>
    %138 = vector.broadcast %130 : vector<16x1xf32> to vector<16x32xf32>
    %139 = arith.subf %126, %138 : vector<16x32xf32>
    %cst_56 = arith.constant 9.99999974E-6 : f32
    %140 = vector.broadcast %cst_56 : f32 to vector<16x1xf32>
    %141 = arith.addf %137, %140 : vector<16x1xf32>
    %142 = math.rsqrt %141 : vector<16x1xf32>
    %143 = vector.broadcast %142 : vector<16x1xf32> to vector<16x32xf32>
    %144 = arith.mulf %139, %143 : vector<16x32xf32>
    %c0_57 = arith.constant 0 : index
    %c0_58 = arith.constant 0 : index
    %c0_59 = arith.constant 0 : index
    %145 = vector.load %arg11[%c0_57, %c0_58, %c0_59] : memref<1x1x32xf32, #tpu.memory_space<vmem>>, vector<1x1x32xf32>
    %146 = vector.shape_cast %145 : vector<1x1x32xf32> to vector<1x32xf32>
    %147 = vector.broadcast %146 : vector<1x32xf32> to vector<16x32xf32>
    %148 = arith.mulf %144, %147 : vector<16x32xf32>
    %c0_60 = arith.constant 0 : index
    %c0_61 = arith.constant 0 : index
    %c0_62 = arith.constant 0 : index
    %149 = vector.load %arg12[%c0_60, %c0_61, %c0_62] : memref<1x1x32xf32, #tpu.memory_space<vmem>>, vector<1x1x32xf32>
    %150 = vector.shape_cast %149 : vector<1x1x32xf32> to vector<1x32xf32>
    %151 = vector.broadcast %150 : vector<1x32xf32> to vector<16x32xf32>
    %152 = arith.addf %148, %151 : vector<16x32xf32>
    %c0_63 = arith.constant 0 : index
    %c0_64 = arith.constant 0 : index
    %c0_65 = arith.constant 0 : index
    %153 = vector.load %arg13[%c0_63, %c0_64, %c0_65] : memref<1x32x32xf32, #tpu.memory_space<vmem>>, vector<1x32x32xf32>
    %154 = vector.shape_cast %153 : vector<1x32x32xf32> to vector<32x32xf32>
    %cst_66 = arith.constant dense<0.000000e+00> : vector<16x32xf32>
    %155 = tpu.matmul %152, %154, %cst_66 {dimension_numbers = #tpu.dot_dimension_numbers<[1], [0], [0], [1], [0, 0, 1, 1], [], []>} : vector<16x32xf32>, vector<32x32xf32>, vector<16x32xf32> -> vector<16x32xf32>
    %c0_67 = arith.constant 0 : index
    %c0_68 = arith.constant 0 : index
    %c0_69 = arith.constant 0 : index
    %156 = vector.load %arg14[%c0_67, %c0_68, %c0_69] : memref<1x1x32xf32, #tpu.memory_space<vmem>>, vector<1x1x32xf32>
    %157 = vector.shape_cast %156 : vector<1x1x32xf32> to vector<1x32xf32>
    %158 = vector.broadcast %157 : vector<1x32xf32> to vector<16x32xf32>
    %159 = arith.addf %155, %158 : vector<16x32xf32>
    %c0_70 = arith.constant 0 : index
    %c0_71 = arith.constant 0 : index
    %c0_72 = arith.constant 0 : index
    %160 = vector.load %arg15[%c0_70, %c0_71, %c0_72] : memref<1x32x64xf32, #tpu.memory_space<vmem>>, vector<1x32x64xf32>
    %161 = vector.shape_cast %160 : vector<1x32x64xf32> to vector<32x64xf32>
    %cst_73 = arith.constant dense<0.000000e+00> : vector<16x64xf32>
    %162 = tpu.matmul %4, %161, %cst_73 {dimension_numbers = #tpu.dot_dimension_numbers<[1], [0], [0], [1], [0, 0, 1, 1], [], []>} : vector<16x32xf32>, vector<32x64xf32>, vector<16x64xf32> -> vector<16x64xf32>
    %c0_74 = arith.constant 0 : index
    %c0_75 = arith.constant 0 : index
    %c0_76 = arith.constant 0 : index
    %163 = vector.load %arg16[%c0_74, %c0_75, %c0_76] : memref<1x1x64xf32, #tpu.memory_space<vmem>>, vector<1x1x64xf32>
    %164 = vector.shape_cast %163 : vector<1x1x64xf32> to vector<1x64xf32>
    %165 = vector.broadcast %164 : vector<1x64xf32> to vector<16x64xf32>
    %166 = arith.addf %162, %165 : vector<16x64xf32>
    %167 = vector.extract_strided_slice %166 {offsets = [0, 0], sizes = [16, 32], strides = [1, 1]} : vector<16x64xf32> to vector<16x32xf32>
    %168 = vector.extract_strided_slice %166 {offsets = [0, 32], sizes = [16, 32], strides = [1, 1]} : vector<16x64xf32> to vector<16x32xf32>
    %c0_77 = arith.constant 0 : index
    %c0_78 = arith.constant 0 : index
    %c0_79 = arith.constant 0 : index
    %169 = vector.load %arg4[%c0_77, %c0_78, %c0_79] : memref<2x8x8xi32, #tpu.memory_space<vmem>>, vector<2x8x8xi32>
    %c0_80 = arith.constant 0 : index
    %c0_81 = arith.constant 0 : index
    %c0_82 = arith.constant 0 : index
    %170 = vector.load %arg17[%c0_80, %c0_81, %c0_82] : memref<1x32x32xf32, #tpu.memory_space<vmem>>, vector<1x32x32xf32>
    %171 = vector.shape_cast %170 : vector<1x32x32xf32> to vector<32x32xf32>
    %172 = vector.shape_cast %159 : vector<16x32xf32> to vector<2x8x32xf32>
    %173 = vector.shape_cast %167 : vector<16x32xf32> to vector<2x8x32xf32>
    %174 = vector.shape_cast %168 : vector<16x32xf32> to vector<2x8x32xf32>
    %cst_83 = arith.constant 0.000000e+00 : f32
    %175 = vector.broadcast %cst_83 : f32 to vector<16x32xf32>
    %176 = vector.extract_strided_slice %172 {offsets = [0, 0, 0], sizes = [2, 8, 8], strides = [1, 1, 1]} : vector<2x8x32xf32> to vector<2x8x8xf32>
    %cst_84 = arith.constant 0.353553385 : f32
    %177 = vector.broadcast %cst_84 : f32 to vector<2x8x8xf32>
    %178 = arith.mulf %176, %177 : vector<2x8x8xf32>
    %179 = vector.extract_strided_slice %173 {offsets = [0, 0, 0], sizes = [2, 8, 8], strides = [1, 1, 1]} : vector<2x8x32xf32> to vector<2x8x8xf32>
    "tpu.trace_start"() <{level = 10 : i32, message = "bqd,bkd->bqk"}> : () -> ()
    %cst_85 = arith.constant dense<0.000000e+00> : vector<2x8x8xf32>
    %180 = tpu.matmul %178, %179, %cst_85 {dimension_numbers = #tpu.dot_dimension_numbers<[2], [2], [1], [1], [0, 0, 0, 1, 1, 1], [0], [0]>} : vector<2x8x8xf32>, vector<2x8x8xf32>, vector<2x8x8xf32> -> vector<2x8x8xf32>
    %c0_i32_86 = arith.constant 0 : i32
    "tpu.trace_stop"() : () -> ()
    %181 = vector.broadcast %c0_i32_86 : i32 to vector<2x8x8xi32>
    %182 = arith.cmpi sgt, %169, %181 : vector<2x8x8xi32>
    %cst_87 = arith.constant -1.000000e+09 : f32
    %183 = vector.broadcast %cst_87 : f32 to vector<2x8x8xf32>
    %184 = arith.select %182, %180, %183 : vector<2x8x8xi1>, vector<2x8x8xf32>
    %cst_88 = arith.constant dense<0xFF800000> : vector<2x8xf32>
    %185 = vector.multi_reduction <maximumf>, %184, %cst_88 [2] : vector<2x8x8xf32> to vector<2x8xf32>
    %186 = vector.shape_cast %185 : vector<2x8xf32> to vector<2x8x1xf32>
    %187 = vector.broadcast %186 : vector<2x8x1xf32> to vector<2x8x8xf32>
    %188 = arith.subf %184, %187 : vector<2x8x8xf32>
    %189 = math.exp %188 : vector<2x8x8xf32>
    %cst_89 = arith.constant dense<0.000000e+00> : vector<2x8xf32>
    %190 = vector.multi_reduction <add>, %189, %cst_89 [2] : vector<2x8x8xf32> to vector<2x8xf32>
    %191 = vector.shape_cast %190 : vector<2x8xf32> to vector<2x8x1xf32>
    %192 = tpu.reciprocal %191 {approx = true} : vector<2x8x1xf32> -> vector<2x8x1xf32>
    %193 = vector.broadcast %192 : vector<2x8x1xf32> to vector<2x8x8xf32>
    %194 = arith.mulf %189, %193 : vector<2x8x8xf32>
    %c0_90 = arith.constant 0 : index
    %c0_91 = arith.constant 0 : index
    %c0_92 = arith.constant 0 : index
    %c0_93 = arith.constant 0 : index
    %195 = vector.load %arg28[%c0_90, %c0_91, %c0_92, %c0_93] : memref<2x4x8x8xf32, #tpu.memory_space<vmem>>, vector<2x1x8x8xf32>
    %196 = vector.shape_cast %195 : vector<2x1x8x8xf32> to vector<2x8x8xf32>
    %197 = vector.shape_cast %194 : vector<2x8x8xf32> to vector<2x1x8x8xf32>
    tpu.vector_store %arg28[%c0_90, %c0_91, %c0_92, %c0_93], %197 {strides = array<i32>} : memref<2x4x8x8xf32, #tpu.memory_space<vmem>>, vector<2x1x8x8xf32>,
    %198 = vector.extract_strided_slice %174 {offsets = [0, 0, 0], sizes = [2, 8, 8], strides = [1, 1, 1]} : vector<2x8x32xf32> to vector<2x8x8xf32>
    "tpu.trace_start"() <{level = 10 : i32, message = "bqk,bkd->bqd"}> : () -> ()
    %cst_94 = arith.constant dense<0.000000e+00> : vector<2x8x8xf32>
    %199 = tpu.matmul %194, %198, %cst_94 {dimension_numbers = #tpu.dot_dimension_numbers<[2], [1], [1], [2], [0, 0, 0, 1, 1, 2], [0], [0]>} : vector<2x8x8xf32>, vector<2x8x8xf32>, vector<2x8x8xf32> -> vector<2x8x8xf32>
    "tpu.trace_stop"() : () -> ()
    %200 = vector.shape_cast %199 : vector<2x8x8xf32> to vector<16x8xf32>
    %201 = vector.extract_strided_slice %171 {offsets = [0, 0], sizes = [8, 32], strides = [1, 1]} : vector<32x32xf32> to vector<8x32xf32>
    %cst_95 = arith.constant dense<0.000000e+00> : vector<16x32xf32>
    %202 = tpu.matmul %200, %201, %cst_95 {dimension_numbers = #tpu.dot_dimension_numbers<[1], [0], [0], [1], [0, 0, 1, 1], [], []>} : vector<16x8xf32>, vector<8x32xf32>, vector<16x32xf32> -> vector<16x32xf32>
    %203 = arith.addf %175, %202 : vector<16x32xf32>
    %204 = vector.extract_strided_slice %172 {offsets = [0, 0, 8], sizes = [2, 8, 8], strides = [1, 1, 1]} : vector<2x8x32xf32> to vector<2x8x8xf32>
    %cst_96 = arith.constant 0.353553385 : f32
    %205 = vector.broadcast %cst_96 : f32 to vector<2x8x8xf32>
    %206 = arith.mulf %204, %205 : vector<2x8x8xf32>
    %207 = vector.extract_strided_slice %173 {offsets = [0, 0, 8], sizes = [2, 8, 8], strides = [1, 1, 1]} : vector<2x8x32xf32> to vector<2x8x8xf32>
    "tpu.trace_start"() <{level = 10 : i32, message = "bqd,bkd->bqk"}> : () -> ()
    %cst_97 = arith.constant dense<0.000000e+00> : vector<2x8x8xf32>
    %208 = tpu.matmul %206, %207, %cst_97 {dimension_numbers = #tpu.dot_dimension_numbers<[2], [2], [1], [1], [0, 0, 0, 1, 1, 1], [0], [0]>} : vector<2x8x8xf32>, vector<2x8x8xf32>, vector<2x8x8xf32> -> vector<2x8x8xf32>
    %c0_i32_98 = arith.constant 0 : i32
    "tpu.trace_stop"() : () -> ()
    %209 = vector.broadcast %c0_i32_98 : i32 to vector<2x8x8xi32>
    %210 = arith.cmpi sgt, %169, %209 : vector<2x8x8xi32>
    %cst_99 = arith.constant -1.000000e+09 : f32
    %211 = vector.broadcast %cst_99 : f32 to vector<2x8x8xf32>
    %212 = arith.select %210, %208, %211 : vector<2x8x8xi1>, vector<2x8x8xf32>
    %cst_100 = arith.constant dense<0xFF800000> : vector<2x8xf32>
    %213 = vector.multi_reduction <maximumf>, %212, %cst_100 [2] : vector<2x8x8xf32> to vector<2x8xf32>
    %214 = vector.shape_cast %213 : vector<2x8xf32> to vector<2x8x1xf32>
    %215 = vector.broadcast %214 : vector<2x8x1xf32> to vector<2x8x8xf32>
    %216 = arith.subf %212, %215 : vector<2x8x8xf32>
    %217 = math.exp %216 : vector<2x8x8xf32>
    %cst_101 = arith.constant dense<0.000000e+00> : vector<2x8xf32>
    %218 = vector.multi_reduction <add>, %217, %cst_101 [2] : vector<2x8x8xf32> to vector<2x8xf32>
    %219 = vector.shape_cast %218 : vector<2x8xf32> to vector<2x8x1xf32>
    %220 = tpu.reciprocal %219 {approx = true} : vector<2x8x1xf32> -> vector<2x8x1xf32>
    %221 = vector.broadcast %220 : vector<2x8x1xf32> to vector<2x8x8xf32>
    %222 = arith.mulf %217, %221 : vector<2x8x8xf32>
    %c0_102 = arith.constant 0 : index
    %c1 = arith.constant 1 : index
    %c0_103 = arith.constant 0 : index
    %c0_104 = arith.constant 0 : index
    %223 = vector.load %arg28[%c0_102, %c1, %c0_103, %c0_104] : memref<2x4x8x8xf32, #tpu.memory_space<vmem>>, vector<2x1x8x8xf32>
    %224 = vector.shape_cast %223 : vector<2x1x8x8xf32> to vector<2x8x8xf32>
    %225 = vector.shape_cast %222 : vector<2x8x8xf32> to vector<2x1x8x8xf32>
    tpu.vector_store %arg28[%c0_102, %c1, %c0_103, %c0_104], %225 {strides = array<i32>} : memref<2x4x8x8xf32, #tpu.memory_space<vmem>>, vector<2x1x8x8xf32>,
    %226 = vector.extract_strided_slice %174 {offsets = [0, 0, 8], sizes = [2, 8, 8], strides = [1, 1, 1]} : vector<2x8x32xf32> to vector<2x8x8xf32>
    "tpu.trace_start"() <{level = 10 : i32, message = "bqk,bkd->bqd"}> : () -> ()
    %cst_105 = arith.constant dense<0.000000e+00> : vector<2x8x8xf32>
    %227 = tpu.matmul %222, %226, %cst_105 {dimension_numbers = #tpu.dot_dimension_numbers<[2], [1], [1], [2], [0, 0, 0, 1, 1, 2], [0], [0]>} : vector<2x8x8xf32>, vector<2x8x8xf32>, vector<2x8x8xf32> -> vector<2x8x8xf32>
    "tpu.trace_stop"() : () -> ()
    %228 = vector.shape_cast %227 : vector<2x8x8xf32> to vector<16x8xf32>
    %229 = vector.extract_strided_slice %171 {offsets = [8, 0], sizes = [8, 32], strides = [1, 1]} : vector<32x32xf32> to vector<8x32xf32>
    %cst_106 = arith.constant dense<0.000000e+00> : vector<16x32xf32>
    %230 = tpu.matmul %228, %229, %cst_106 {dimension_numbers = #tpu.dot_dimension_numbers<[1], [0], [0], [1], [0, 0, 1, 1], [], []>} : vector<16x8xf32>, vector<8x32xf32>, vector<16x32xf32> -> vector<16x32xf32>
    %231 = arith.addf %203, %230 : vector<16x32xf32>
    %232 = vector.extract_strided_slice %172 {offsets = [0, 0, 16], sizes = [2, 8, 8], strides = [1, 1, 1]} : vector<2x8x32xf32> to vector<2x8x8xf32>
    %cst_107 = arith.constant 0.353553385 : f32
    %233 = vector.broadcast %cst_107 : f32 to vector<2x8x8xf32>
    %234 = arith.mulf %232, %233 : vector<2x8x8xf32>
    %235 = vector.extract_strided_slice %173 {offsets = [0, 0, 16], sizes = [2, 8, 8], strides = [1, 1, 1]} : vector<2x8x32xf32> to vector<2x8x8xf32>
    "tpu.trace_start"() <{level = 10 : i32, message = "bqd,bkd->bqk"}> : () -> ()
    %cst_108 = arith.constant dense<0.000000e+00> : vector<2x8x8xf32>
    %236 = tpu.matmul %234, %235, %cst_108 {dimension_numbers = #tpu.dot_dimension_numbers<[2], [2], [1], [1], [0, 0, 0, 1, 1, 1], [0], [0]>} : vector<2x8x8xf32>, vector<2x8x8xf32>, vector<2x8x8xf32> -> vector<2x8x8xf32>
    %c0_i32_109 = arith.constant 0 : i32
    "tpu.trace_stop"() : () -> ()
    %237 = vector.broadcast %c0_i32_109 : i32 to vector<2x8x8xi32>
    %238 = arith.cmpi sgt, %169, %237 : vector<2x8x8xi32>
    %cst_110 = arith.constant -1.000000e+09 : f32
    %239 = vector.broadcast %cst_110 : f32 to vector<2x8x8xf32>
    %240 = arith.select %238, %236, %239 : vector<2x8x8xi1>, vector<2x8x8xf32>
    %cst_111 = arith.constant dense<0xFF800000> : vector<2x8xf32>
    %241 = vector.multi_reduction <maximumf>, %240, %cst_111 [2] : vector<2x8x8xf32> to vector<2x8xf32>
    %242 = vector.shape_cast %241 : vector<2x8xf32> to vector<2x8x1xf32>
    %243 = vector.broadcast %242 : vector<2x8x1xf32> to vector<2x8x8xf32>
    %244 = arith.subf %240, %243 : vector<2x8x8xf32>
    %245 = math.exp %244 : vector<2x8x8xf32>
    %cst_112 = arith.constant dense<0.000000e+00> : vector<2x8xf32>
    %246 = vector.multi_reduction <add>, %245, %cst_112 [2] : vector<2x8x8xf32> to vector<2x8xf32>
    %247 = vector.shape_cast %246 : vector<2x8xf32> to vector<2x8x1xf32>
    %248 = tpu.reciprocal %247 {approx = true} : vector<2x8x1xf32> -> vector<2x8x1xf32>
    %249 = vector.broadcast %248 : vector<2x8x1xf32> to vector<2x8x8xf32>
    %250 = arith.mulf %245, %249 : vector<2x8x8xf32>
    %c0_113 = arith.constant 0 : index
    %c2 = arith.constant 2 : index
    %c0_114 = arith.constant 0 : index
    %c0_115 = arith.constant 0 : index
    %251 = vector.load %arg28[%c0_113, %c2, %c0_114, %c0_115] : memref<2x4x8x8xf32, #tpu.memory_space<vmem>>, vector<2x1x8x8xf32>
    %252 = vector.shape_cast %251 : vector<2x1x8x8xf32> to vector<2x8x8xf32>
    %253 = vector.shape_cast %250 : vector<2x8x8xf32> to vector<2x1x8x8xf32>
    tpu.vector_store %arg28[%c0_113, %c2, %c0_114, %c0_115], %253 {strides = array<i32>} : memref<2x4x8x8xf32, #tpu.memory_space<vmem>>, vector<2x1x8x8xf32>,
    %254 = vector.extract_strided_slice %174 {offsets = [0, 0, 16], sizes = [2, 8, 8], strides = [1, 1, 1]} : vector<2x8x32xf32> to vector<2x8x8xf32>
    "tpu.trace_start"() <{level = 10 : i32, message = "bqk,bkd->bqd"}> : () -> ()
    %cst_116 = arith.constant dense<0.000000e+00> : vector<2x8x8xf32>
    %255 = tpu.matmul %250, %254, %cst_116 {dimension_numbers = #tpu.dot_dimension_numbers<[2], [1], [1], [2], [0, 0, 0, 1, 1, 2], [0], [0]>} : vector<2x8x8xf32>, vector<2x8x8xf32>, vector<2x8x8xf32> -> vector<2x8x8xf32>
    "tpu.trace_stop"() : () -> ()
    %256 = vector.shape_cast %255 : vector<2x8x8xf32> to vector<16x8xf32>
    %257 = vector.extract_strided_slice %171 {offsets = [16, 0], sizes = [8, 32], strides = [1, 1]} : vector<32x32xf32> to vector<8x32xf32>
    %cst_117 = arith.constant dense<0.000000e+00> : vector<16x32xf32>
    %258 = tpu.matmul %256, %257, %cst_117 {dimension_numbers = #tpu.dot_dimension_numbers<[1], [0], [0], [1], [0, 0, 1, 1], [], []>} : vector<16x8xf32>, vector<8x32xf32>, vector<16x32xf32> -> vector<16x32xf32>
    %259 = arith.addf %231, %258 : vector<16x32xf32>
    %260 = vector.extract_strided_slice %172 {offsets = [0, 0, 24], sizes = [2, 8, 8], strides = [1, 1, 1]} : vector<2x8x32xf32> to vector<2x8x8xf32>
    %cst_118 = arith.constant 0.353553385 : f32
    %261 = vector.broadcast %cst_118 : f32 to vector<2x8x8xf32>
    %262 = arith.mulf %260, %261 : vector<2x8x8xf32>
    %263 = vector.extract_strided_slice %173 {offsets = [0, 0, 24], sizes = [2, 8, 8], strides = [1, 1, 1]} : vector<2x8x32xf32> to vector<2x8x8xf32>
    "tpu.trace_start"() <{level = 10 : i32, message = "bqd,bkd->bqk"}> : () -> ()
    %cst_119 = arith.constant dense<0.000000e+00> : vector<2x8x8xf32>
    %264 = tpu.matmul %262, %263, %cst_119 {dimension_numbers = #tpu.dot_dimension_numbers<[2], [2], [1], [1], [0, 0, 0, 1, 1, 1], [0], [0]>} : vector<2x8x8xf32>, vector<2x8x8xf32>, vector<2x8x8xf32> -> vector<2x8x8xf32>
    %c0_i32_120 = arith.constant 0 : i32
    "tpu.trace_stop"() : () -> ()
    %265 = vector.broadcast %c0_i32_120 : i32 to vector<2x8x8xi32>
    %266 = arith.cmpi sgt, %169, %265 : vector<2x8x8xi32>
    %cst_121 = arith.constant -1.000000e+09 : f32
    %267 = vector.broadcast %cst_121 : f32 to vector<2x8x8xf32>
    %268 = arith.select %266, %264, %267 : vector<2x8x8xi1>, vector<2x8x8xf32>
    %cst_122 = arith.constant dense<0xFF800000> : vector<2x8xf32>
    %269 = vector.multi_reduction <maximumf>, %268, %cst_122 [2] : vector<2x8x8xf32> to vector<2x8xf32>
    %270 = vector.shape_cast %269 : vector<2x8xf32> to vector<2x8x1xf32>
    %271 = vector.broadcast %270 : vector<2x8x1xf32> to vector<2x8x8xf32>
    %272 = arith.subf %268, %271 : vector<2x8x8xf32>
    %273 = math.exp %272 : vector<2x8x8xf32>
    %cst_123 = arith.constant dense<0.000000e+00> : vector<2x8xf32>
    %274 = vector.multi_reduction <add>, %273, %cst_123 [2] : vector<2x8x8xf32> to vector<2x8xf32>
    %275 = vector.shape_cast %274 : vector<2x8xf32> to vector<2x8x1xf32>
    %276 = tpu.reciprocal %275 {approx = true} : vector<2x8x1xf32> -> vector<2x8x1xf32>
    %277 = vector.broadcast %276 : vector<2x8x1xf32> to vector<2x8x8xf32>
    %278 = arith.mulf %273, %277 : vector<2x8x8xf32>
    %c0_124 = arith.constant 0 : index
    %c3 = arith.constant 3 : index
    %c0_125 = arith.constant 0 : index
    %c0_126 = arith.constant 0 : index
    %279 = vector.load %arg28[%c0_124, %c3, %c0_125, %c0_126] : memref<2x4x8x8xf32, #tpu.memory_space<vmem>>, vector<2x1x8x8xf32>
    %280 = vector.shape_cast %279 : vector<2x1x8x8xf32> to vector<2x8x8xf32>
    %281 = vector.shape_cast %278 : vector<2x8x8xf32> to vector<2x1x8x8xf32>
    tpu.vector_store %arg28[%c0_124, %c3, %c0_125, %c0_126], %281 {strides = array<i32>} : memref<2x4x8x8xf32, #tpu.memory_space<vmem>>, vector<2x1x8x8xf32>,
    %282 = vector.extract_strided_slice %174 {offsets = [0, 0, 24], sizes = [2, 8, 8], strides = [1, 1, 1]} : vector<2x8x32xf32> to vector<2x8x8xf32>
    "tpu.trace_start"() <{level = 10 : i32, message = "bqk,bkd->bqd"}> : () -> ()
    %cst_127 = arith.constant dense<0.000000e+00> : vector<2x8x8xf32>
    %283 = tpu.matmul %278, %282, %cst_127 {dimension_numbers = #tpu.dot_dimension_numbers<[2], [1], [1], [2], [0, 0, 0, 1, 1, 2], [0], [0]>} : vector<2x8x8xf32>, vector<2x8x8xf32>, vector<2x8x8xf32> -> vector<2x8x8xf32>
    "tpu.trace_stop"() : () -> ()
    %284 = vector.shape_cast %283 : vector<2x8x8xf32> to vector<16x8xf32>
    %285 = vector.extract_strided_slice %171 {offsets = [24, 0], sizes = [8, 32], strides = [1, 1]} : vector<32x32xf32> to vector<8x32xf32>
    %cst_128 = arith.constant dense<0.000000e+00> : vector<16x32xf32>
    %286 = tpu.matmul %284, %285, %cst_128 {dimension_numbers = #tpu.dot_dimension_numbers<[1], [0], [0], [1], [0, 0, 1, 1], [], []>} : vector<16x8xf32>, vector<8x32xf32>, vector<16x32xf32> -> vector<16x32xf32>
    %287 = arith.addf %259, %286 : vector<16x32xf32>
    %c0_129 = arith.constant 0 : index
    %c0_130 = arith.constant 0 : index
    %c0_131 = arith.constant 0 : index
    %288 = vector.load %arg18[%c0_129, %c0_130, %c0_131] : memref<1x1x32xf32, #tpu.memory_space<vmem>>, vector<1x1x32xf32>
    %289 = vector.shape_cast %288 : vector<1x1x32xf32> to vector<1x32xf32>
    %290 = vector.broadcast %289 : vector<1x32xf32> to vector<16x32xf32>
    %291 = arith.addf %287, %290 : vector<16x32xf32>
    %292 = arith.addf %152, %291 : vector<16x32xf32>
    %cst_132 = arith.constant dense<0.000000e+00> : vector<16xf32>
    %293 = vector.multi_reduction <add>, %292, %cst_132 [1] : vector<16x32xf32> to vector<16xf32>
    %294 = vector.shape_cast %293 : vector<16xf32> to vector<16x1xf32>
    %cst_133 = arith.constant 3.200000e+01 : f32
    %295 = vector.broadcast %cst_133 : f32 to vector<16x1xf32>
    %296 = arith.divf %294, %295 : vector<16x1xf32>
    %297 = vector.broadcast %296 : vector<16x1xf32> to vector<16x32xf32>
    %298 = arith.subf %292, %297 : vector<16x32xf32>
    %299 = arith.mulf %298, %298 : vector<16x32xf32>
    %cst_134 = arith.constant dense<0.000000e+00> : vector<16xf32>
    %300 = vector.multi_reduction <add>, %299, %cst_134 [1] : vector<16x32xf32> to vector<16xf32>
    %301 = vector.shape_cast %300 : vector<16xf32> to vector<16x1xf32>
    %cst_135 = arith.constant 3.200000e+01 : f32
    %302 = vector.broadcast %cst_135 : f32 to vector<16x1xf32>
    %303 = arith.divf %301, %302 : vector<16x1xf32>
    %304 = vector.broadcast %296 : vector<16x1xf32> to vector<16x32xf32>
    %305 = arith.subf %292, %304 : vector<16x32xf32>
    %cst_136 = arith.constant 9.99999974E-6 : f32
    %306 = vector.broadcast %cst_136 : f32 to vector<16x1xf32>
    %307 = arith.addf %303, %306 : vector<16x1xf32>
    %308 = math.rsqrt %307 : vector<16x1xf32>
    %309 = vector.broadcast %308 : vector<16x1xf32> to vector<16x32xf32>
    %310 = arith.mulf %305, %309 : vector<16x32xf32>
    %c0_137 = arith.constant 0 : index
    %c0_138 = arith.constant 0 : index
    %c0_139 = arith.constant 0 : index
    %311 = vector.load %arg19[%c0_137, %c0_138, %c0_139] : memref<1x1x32xf32, #tpu.memory_space<vmem>>, vector<1x1x32xf32>
    %312 = vector.shape_cast %311 : vector<1x1x32xf32> to vector<1x32xf32>
    %313 = vector.broadcast %312 : vector<1x32xf32> to vector<16x32xf32>
    %314 = arith.mulf %310, %313 : vector<16x32xf32>
    %c0_140 = arith.constant 0 : index
    %c0_141 = arith.constant 0 : index
    %c0_142 = arith.constant 0 : index
    %315 = vector.load %arg20[%c0_140, %c0_141, %c0_142] : memref<1x1x32xf32, #tpu.memory_space<vmem>>, vector<1x1x32xf32>
    %316 = vector.shape_cast %315 : vector<1x1x32xf32> to vector<1x32xf32>
    %317 = vector.broadcast %316 : vector<1x32xf32> to vector<16x32xf32>
    %318 = arith.addf %314, %317 : vector<16x32xf32>
    %c0_143 = arith.constant 0 : index
    %c0_144 = arith.constant 0 : index
    %c0_145 = arith.constant 0 : index
    %319 = vector.load %arg21[%c0_143, %c0_144, %c0_145] : memref<1x32x64xf32, #tpu.memory_space<vmem>>, vector<1x32x64xf32>
    %320 = vector.shape_cast %319 : vector<1x32x64xf32> to vector<32x64xf32>
    %cst_146 = arith.constant dense<0.000000e+00> : vector<16x64xf32>
    %321 = tpu.matmul %318, %320, %cst_146 {dimension_numbers = #tpu.dot_dimension_numbers<[1], [0], [0], [1], [0, 0, 1, 1], [], []>} : vector<16x32xf32>, vector<32x64xf32>, vector<16x64xf32> -> vector<16x64xf32>
    %c0_147 = arith.constant 0 : index
    %c0_148 = arith.constant 0 : index
    %c0_149 = arith.constant 0 : index
    %322 = vector.load %arg22[%c0_147, %c0_148, %c0_149] : memref<1x1x64xf32, #tpu.memory_space<vmem>>, vector<1x1x64xf32>
    %323 = vector.shape_cast %322 : vector<1x1x64xf32> to vector<1x64xf32>
    %324 = vector.broadcast %323 : vector<1x64xf32> to vector<16x64xf32>
    %325 = arith.addf %321, %324 : vector<16x64xf32>
    %cst_150 = arith.constant 0.000000e+00 : f32
    %326 = vector.broadcast %cst_150 : f32 to vector<16x64xf32>
    %327 = arith.maximumf %325, %326 : vector<16x64xf32>
    %c0_151 = arith.constant 0 : index
    %c0_152 = arith.constant 0 : index
    %c0_153 = arith.constant 0 : index
    %328 = vector.load %arg23[%c0_151, %c0_152, %c0_153] : memref<1x64x32xf32, #tpu.memory_space<vmem>>, vector<1x64x32xf32>
    %329 = vector.shape_cast %328 : vector<1x64x32xf32> to vector<64x32xf32>
    %cst_154 = arith.constant dense<0.000000e+00> : vector<16x32xf32>
    %330 = tpu.matmul %327, %329, %cst_154 {dimension_numbers = #tpu.dot_dimension_numbers<[1], [0], [0], [1], [0, 0, 1, 1], [], []>} : vector<16x64xf32>, vector<64x32xf32>, vector<16x32xf32> -> vector<16x32xf32>
    %c0_155 = arith.constant 0 : index
    %c0_156 = arith.constant 0 : index
    %c0_157 = arith.constant 0 : index
    %331 = vector.load %arg24[%c0_155, %c0_156, %c0_157] : memref<1x1x32xf32, #tpu.memory_space<vmem>>, vector<1x1x32xf32>
    %332 = vector.shape_cast %331 : vector<1x1x32xf32> to vector<1x32xf32>
    %333 = vector.broadcast %332 : vector<1x32xf32> to vector<16x32xf32>
    %334 = arith.addf %330, %333 : vector<16x32xf32>
    %335 = arith.addf %318, %334 : vector<16x32xf32>
    %cst_158 = arith.constant dense<0.000000e+00> : vector<16xf32>
    %336 = vector.multi_reduction <add>, %335, %cst_158 [1] : vector<16x32xf32> to vector<16xf32>
    %337 = vector.shape_cast %336 : vector<16xf32> to vector<16x1xf32>
    %cst_159 = arith.constant 3.200000e+01 : f32
    %338 = vector.broadcast %cst_159 : f32 to vector<16x1xf32>
    %339 = arith.divf %337, %338 : vector<16x1xf32>
    %340 = vector.broadcast %339 : vector<16x1xf32> to vector<16x32xf32>
    %341 = arith.subf %335, %340 : vector<16x32xf32>
    %342 = arith.mulf %341, %341 : vector<16x32xf32>
    %cst_160 = arith.constant dense<0.000000e+00> : vector<16xf32>
    %343 = vector.multi_reduction <add>, %342, %cst_160 [1] : vector<16x32xf32> to vector<16xf32>
    %344 = vector.shape_cast %343 : vector<16xf32> to vector<16x1xf32>
    %cst_161 = arith.constant 3.200000e+01 : f32
    %345 = vector.broadcast %cst_161 : f32 to vector<16x1xf32>
    %346 = arith.divf %344, %345 : vector<16x1xf32>
    %347 = vector.broadcast %339 : vector<16x1xf32> to vector<16x32xf32>
    %348 = arith.subf %335, %347 : vector<16x32xf32>
    %cst_162 = arith.constant 9.99999974E-6 : f32
    %349 = vector.broadcast %cst_162 : f32 to vector<16x1xf32>
    %350 = arith.addf %346, %349 : vector<16x1xf32>
    %351 = math.rsqrt %350 : vector<16x1xf32>
    %352 = vector.broadcast %351 : vector<16x1xf32> to vector<16x32xf32>
    %353 = arith.mulf %348, %352 : vector<16x32xf32>
    %c0_163 = arith.constant 0 : index
    %c0_164 = arith.constant 0 : index
    %c0_165 = arith.constant 0 : index
    %354 = vector.load %arg25[%c0_163, %c0_164, %c0_165] : memref<1x1x32xf32, #tpu.memory_space<vmem>>, vector<1x1x32xf32>
    %355 = vector.shape_cast %354 : vector<1x1x32xf32> to vector<1x32xf32>
    %356 = vector.broadcast %355 : vector<1x32xf32> to vector<16x32xf32>
    %357 = arith.mulf %353, %356 : vector<16x32xf32>
    %c0_166 = arith.constant 0 : index
    %c0_167 = arith.constant 0 : index
    %c0_168 = arith.constant 0 : index
    %358 = vector.load %arg26[%c0_166, %c0_167, %c0_168] : memref<1x1x32xf32, #tpu.memory_space<vmem>>, vector<1x1x32xf32>
    %359 = vector.shape_cast %358 : vector<1x1x32xf32> to vector<1x32xf32>
    %360 = vector.broadcast %359 : vector<1x32xf32> to vector<16x32xf32>
    %361 = arith.addf %357, %360 : vector<16x32xf32>
    %c0_169 = arith.constant 0 : index
    %c0_170 = arith.constant 0 : index
    %362 = vector.load %arg29[%c0_169, %c0_170] : memref<16x32xf32, #tpu.memory_space<vmem>>, vector<16x32xf32>
    tpu.vector_store %arg29[%c0_169, %c0_170], %361 {strides = array<i32>} : memref<16x32xf32, #tpu.memory_space<vmem>>, vector<16x32xf32>,
    %c1_i32 = arith.constant 1 : i32
    %363 = arith.cmpi eq, %arg0, %c1_i32 : i32
    %364 = arith.extui %363 : i1 to i32
    %c0_i32_171 = arith.constant 0 : i32
    %365 = arith.cmpi ne, %364, %c0_i32_171 : i32
    scf.if %365 {
      %c0_172 = arith.constant 0 : index
      %c0_173 = arith.constant 0 : index
      %366 = vector.load %arg5[%c0_172, %c0_173] : memref<32x128xf32, #tpu.memory_space<vmem>>, vector<32x128xf32>
      %cst_174 = arith.constant dense<0.000000e+00> : vector<16x128xf32>
      %367 = tpu.matmul %361, %366, %cst_174 {dimension_numbers = #tpu.dot_dimension_numbers<[1], [0], [0], [1], [0, 0, 1, 1], [], []>} : vector<16x32xf32>, vector<32x128xf32>, vector<16x128xf32> -> vector<16x128xf32>
      %c0_175 = arith.constant 0 : index
      %c0_176 = arith.constant 0 : index
      %368 = vector.load %arg6[%c0_175, %c0_176] : memref<1x128xf32, #tpu.memory_space<vmem>>, vector<1x128xf32>
      %369 = vector.broadcast %368 : vector<1x128xf32> to vector<16x128xf32>
      %370 = arith.addf %367, %369 : vector<16x128xf32>
      %c0_177 = arith.constant 0 : index
      %c0_178 = arith.constant 0 : index
      %371 = vector.load %arg27[%c0_177, %c0_178] : memref<16x128xf32, #tpu.memory_space<vmem>>, vector<16x128xf32>
      tpu.vector_store %arg27[%c0_177, %c0_178], %370 {strides = array<i32>} : memref<16x128xf32, #tpu.memory_space<vmem>>, vector<16x128xf32>,
    } else {
    }
    return
  }
  func.func @transform_0(%arg0: i32) -> (i32, i32) {
    %c0_i32 = arith.constant 0 : i32
    %c0_i32_0 = arith.constant 0 : i32
    %c0_i32_1 = arith.constant 0 : i32
    return %c0_i32, %c0_i32_0 : i32, i32
  }
  func.func @transform_1(%arg0: i32) -> (i32, i32) {
    %c0_i32 = arith.constant 0 : i32
    %c0_i32_0 = arith.constant 0 : i32
    %c0_i32_1 = arith.constant 0 : i32
    return %c0_i32, %c0_i32_0 : i32, i32
  }
  func.func @transform_2(%arg0: i32) -> (i32, i32, i32) {
    %c0_i32 = arith.constant 0 : i32
    %c0_i32_0 = arith.constant 0 : i32
    %c0_i32_1 = arith.constant 0 : i32
    %c0_i32_2 = arith.constant 0 : i32
    return %c0_i32, %c0_i32_0, %c0_i32_1 : i32, i32, i32
  }
  func.func @transform_3(%arg0: i32) -> (i32, i32, i32) {
    %c0_i32 = arith.constant 0 : i32
    %c0_i32_0 = arith.constant 0 : i32
    %c0_i32_1 = arith.constant 0 : i32
    %c0_i32_2 = arith.constant 0 : i32
    return %c0_i32, %c0_i32_0, %c0_i32_1 : i32, i32, i32
  }
  func.func @transform_4(%arg0: i32) -> (i32, i32) {
    %c0_i32 = arith.constant 0 : i32
    %c0_i32_0 = arith.constant 0 : i32
    %c0_i32_1 = arith.constant 0 : i32
    return %c0_i32, %c0_i32_0 : i32, i32
  }
  func.func @transform_5(%arg0: i32) -> (i32, i32) {
    %c0_i32 = arith.constant 0 : i32
    %c0_i32_0 = arith.constant 0 : i32
    %c0_i32_1 = arith.constant 0 : i32
    return %c0_i32, %c0_i32_0 : i32, i32
  }
  func.func @transform_6(%arg0: i32) -> (i32, i32, i32) {
    %c0_i32 = arith.constant 0 : i32
    %c0_i32_0 = arith.constant 0 : i32
    %c0_i32_1 = arith.constant 0 : i32
    return %arg0, %c0_i32, %c0_i32_0 : i32, i32, i32
  }
  func.func @transform_7(%arg0: i32) -> (i32, i32, i32) {
    %c0_i32 = arith.constant 0 : i32
    %c0_i32_0 = arith.constant 0 : i32
    %c0_i32_1 = arith.constant 0 : i32
    return %arg0, %c0_i32, %c0_i32_0 : i32, i32, i32
  }
  func.func @transform_8(%arg0: i32) -> (i32, i32, i32) {
    %c0_i32 = arith.constant 0 : i32
    %c0_i32_0 = arith.constant 0 : i32
    %c0_i32_1 = arith.constant 0 : i32
    return %arg0, %c0_i32, %c0_i32_0 : i32, i32, i32
  }
  func.func @transform_9(%arg0: i32) -> (i32, i32, i32) {
    %c0_i32 = arith.constant 0 : i32
    %c0_i32_0 = arith.constant 0 : i32
    %c0_i32_1 = arith.constant 0 : i32
    return %arg0, %c0_i32, %c0_i32_0 : i32, i32, i32
  }
  func.func @transform_10(%arg0: i32) -> (i32, i32, i32) {
    %c0_i32 = arith.constant 0 : i32
    %c0_i32_0 = arith.constant 0 : i32
    %c0_i32_1 = arith.constant 0 : i32
    return %arg0, %c0_i32, %c0_i32_0 : i32, i32, i32
  }
  func.func @transform_11(%arg0: i32) -> (i32, i32, i32) {
    %c0_i32 = arith.constant 0 : i32
    %c0_i32_0 = arith.constant 0 : i32
    %c0_i32_1 = arith.constant 0 : i32
    return %arg0, %c0_i32, %c0_i32_0 : i32, i32, i32
  }
  func.func @transform_12(%arg0: i32) -> (i32, i32, i32) {
    %c0_i32 = arith.constant 0 : i32
    %c0_i32_0 = arith.constant 0 : i32
    %c0_i32_1 = arith.constant 0 : i32
    return %arg0, %c0_i32, %c0_i32_0 : i32, i32, i32
  }
  func.func @transform_13(%arg0: i32) -> (i32, i32, i32) {
    %c0_i32 = arith.constant 0 : i32
    %c0_i32_0 = arith.constant 0 : i32
    %c0_i32_1 = arith.constant 0 : i32
    return %arg0, %c0_i32, %c0_i32_0 : i32, i32, i32
  }
  func.func @transform_14(%arg0: i32) -> (i32, i32, i32) {
    %c0_i32 = arith.constant 0 : i32
    %c0_i32_0 = arith.constant 0 : i32
    %c0_i32_1 = arith.constant 0 : i32
    return %arg0, %c0_i32, %c0_i32_0 : i32, i32, i32
  }
  func.func @transform_15(%arg0: i32) -> (i32, i32, i32) {
    %c0_i32 = arith.constant 0 : i32
    %c0_i32_0 = arith.constant 0 : i32
    %c0_i32_1 = arith.constant 0 : i32
    return %arg0, %c0_i32, %c0_i32_0 : i32, i32, i32
  }
  func.func @transform_16(%arg0: i32) -> (i32, i32, i32) {
    %c0_i32 = arith.constant 0 : i32
    %c0_i32_0 = arith.constant 0 : i32
    %c0_i32_1 = arith.constant 0 : i32
    return %arg0, %c0_i32, %c0_i32_0 : i32, i32, i32
  }
  func.func @transform_17(%arg0: i32) -> (i32, i32, i32) {
    %c0_i32 = arith.constant 0 : i32
    %c0_i32_0 = arith.constant 0 : i32
    %c0_i32_1 = arith.constant 0 : i32
    return %arg0, %c0_i32, %c0_i32_0 : i32, i32, i32
  }
  func.func @transform_18(%arg0: i32) -> (i32, i32, i32) {
    %c0_i32 = arith.constant 0 : i32
    %c0_i32_0 = arith.constant 0 : i32
    %c0_i32_1 = arith.constant 0 : i32
    return %arg0, %c0_i32, %c0_i32_0 : i32, i32, i32
  }
  func.func @transform_19(%arg0: i32) -> (i32, i32, i32) {
    %c0_i32 = arith.constant 0 : i32
    %c0_i32_0 = arith.constant 0 : i32
    %c0_i32_1 = arith.constant 0 : i32
    return %arg0, %c0_i32, %c0_i32_0 : i32, i32, i32
  }
  func.func @transform_20(%arg0: i32) -> (i32, i32, i32) {
    %c0_i32 = arith.constant 0 : i32
    %c0_i32_0 = arith.constant 0 : i32
    %c0_i32_1 = arith.constant 0 : i32
    return %arg0, %c0_i32, %c0_i32_0 : i32, i32, i32
  }
  func.func @transform_21(%arg0: i32) -> (i32, i32, i32) {
    %c0_i32 = arith.constant 0 : i32
    %c0_i32_0 = arith.constant 0 : i32
    %c0_i32_1 = arith.constant 0 : i32
    return %arg0, %c0_i32, %c0_i32_0 : i32, i32, i32
  }
  func.func @transform_22(%arg0: i32) -> (i32, i32, i32) {
    %c0_i32 = arith.constant 0 : i32
    %c0_i32_0 = arith.constant 0 : i32
    %c0_i32_1 = arith.constant 0 : i32
    return %arg0, %c0_i32, %c0_i32_0 : i32, i32, i32
  }
  func.func @transform_23(%arg0: i32) -> (i32, i32, i32) {
    %c0_i32 = arith.constant 0 : i32
    %c0_i32_0 = arith.constant 0 : i32
    %c0_i32_1 = arith.constant 0 : i32
    return %arg0, %c0_i32, %c0_i32_0 : i32, i32, i32
  }
  func.func @transform_24(%arg0: i32) -> (i32, i32, i32) {
    %c0_i32 = arith.constant 0 : i32
    %c0_i32_0 = arith.constant 0 : i32
    %c0_i32_1 = arith.constant 0 : i32
    return %arg0, %c0_i32, %c0_i32_0 : i32, i32, i32
  }
  func.func @transform_25(%arg0: i32) -> (i32, i32, i32) {
    %c0_i32 = arith.constant 0 : i32
    %c0_i32_0 = arith.constant 0 : i32
    %c0_i32_1 = arith.constant 0 : i32
    return %arg0, %c0_i32, %c0_i32_0 : i32, i32, i32
  }
  func.func @transform_26(%arg0: i32) -> (i32, i32) {
    %c0_i32 = arith.constant 0 : i32
    %c0_i32_0 = arith.constant 0 : i32
    %c0_i32_1 = arith.constant 0 : i32
    return %c0_i32, %c0_i32_0 : i32, i32
  }
  func.func @transform_27(%arg0: i32) -> (i32, i32, i32, i32) {
    %c0_i32 = arith.constant 0 : i32
    %c0_i32_0 = arith.constant 0 : i32
    %c0_i32_1 = arith.constant 0 : i32
    %c0_i32_2 = arith.constant 0 : i32
    %c0_i32_3 = arith.constant 0 : i32
    return %c0_i32, %c0_i32_0, %c0_i32_1, %c0_i32_2 : i32, i32, i32, i32
  }
}

</mosaic_0001>

<bundles_post_ra>
// kernel: decoder_forward.1
= control target key start
LH: loop header
LB: loop body
LE: loop exit
PB: predicated region body
PF: predicated region fallthrough
CT: control target
= control target key end

     0   :  { %s8192_s0 = inlined_call_operand.vmem [shape: f32[16,32], index: 0, kind: input, shape index: {}]   ;;  %s8193_s1 = inlined_call_operand.vmem [shape: f32[16,32], index: 1, kind: input, shape index: {}]   ;;  %s8194_s2 = inlined_call_operand.vmem [shape: s32[2,8,8], index: 2, kind: input, shape index: {}]   ;;  %s8195_s3 = inlined_call_operand.vmem [shape: s32[2,8,8], index: 3, kind: input, shape index: {}]   ;;  %s8196_s4 = inlined_call_operand.vmem [shape: f32[32,128], index: 4, kind: input, shape index: {}]   ;;  %s8197_s5 = inlined_call_operand.hbm [shape: f32[1,128], index: 5, kind: input, shape index: {}]   ;;  %s8198_s6 = inlined_call_operand.vmem [shape: f32[2,32,96], index: 6, kind: input, shape index: {}]   ;;  %s8199_s7 = inlined_call_operand.hbm [shape: f32[2,1,96], index: 7, kind: input, shape index: {}]   ;;  %s8200_s8 = inlined_call_operand.vmem [shape: f32[2,32,32], index: 8, kind: input, shape index: {}]   ;;  %s8201_s9 = inlined_call_operand.hbm [shape: f32[2,1,32], index: 9, kind: input, shape index: {}]   ;;  %s8202_s10 = inlined_call_operand.vmem [shape: f32[2,1,32], index: 10, kind: input, shape index: {}]   ;;  %s8203_s11 = inlined_call_operand.hbm [shape: f32[2,1,32], index: 11, kind: input, shape index: {}]   ;;  %s8204_s12 = inlined_call_operand.vmem [shape: f32[2,32,32], index: 12, kind: input, shape index: {}]   ;;  %s8205_s13 = inlined_call_operand.hbm [shape: f32[2,1,32], index: 13, kind: input, shape index: {}]   ;;  %s8206_s14 = inlined_call_operand.vmem [shape: f32[2,32,64], index: 14, kind: input, shape index: {}]   ;;  %s8207_s15 = inlined_call_operand.hbm [shape: f32[2,1,64], index: 15, kind: input, shape index: {}]   ;;  %s8208_s16 = inlined_call_operand.vmem [shape: f32[2,32,32], index: 16, kind: input, shape index: {}]   ;;  %s8209_s17 = inlined_call_operand.hbm [shape: f32[2,1,32], index: 17, kind: input, shape index: {}]   ;;  %s8210_s18 = inlined_call_operand.vmem [shape: f32[2,1,32], index: 18, kind: input, shape index: {}]   ;;  %s8211_s19 = inlined_call_operand.hbm [shape: f32[2,1,32], index: 19, kind: input, shape index: {}]   ;;  %s8212_s20 = inlined_call_operand.vmem [shape: f32[2,32,64], index: 20, kind: input, shape index: {}]   ;;  %s8213_s21 = inlined_call_operand.hbm [shape: f32[2,1,64], index: 21, kind: input, shape index: {}]   ;;  %s8214_s22 = inlined_call_operand.vmem [shape: f32[2,64,32], index: 22, kind: input, shape index: {}]   ;;  %s8215_s23 = inlined_call_operand.hbm [shape: f32[2,1,32], index: 23, kind: input, shape index: {}]   ;;  %s8216_s24 = inlined_call_operand.vmem [shape: f32[2,1,32], index: 24, kind: input, shape index: {}]   ;;  %s8217_s25 = inlined_call_operand.hbm [shape: f32[2,1,32], index: 25, kind: input, shape index: {}]   ;;  %s8218_s26 = inlined_call_operand.hbm [shape: f32[16,128], index: 26, kind: output, shape index: {0}]   ;;  %s8219_s27 = inlined_call_operand.hbm [shape: f32[2,4,8,8], index: 27, kind: output, shape index: {1}]  }
   0x1   :  { %8246 = sst [smem:[#allocation35_spill]] %s8192_s0 }
   0x2   :  { %8247 = sst [smem:[#allocation36_spill]] %s8193_s1 }
   0x3   :  { %8248 = sst [smem:[#allocation37_spill]] %s8194_s2 }
   0x4   :  { %8249 = sst [smem:[#allocation38_spill]] %s8195_s3 }
   0x5   :  { %8250 = sst [smem:[#allocation39_spill]] %s8196_s4 }
   0x6   :  { %8251 = sst [smem:[#allocation40_spill]] %s8197_s5 }
   0x7   :  { %8252 = sst [smem:[#allocation41_spill]] %s8198_s6 }
   0x8   :  { %8253 = sst [smem:[#allocation42_spill]] %s8199_s7 }
   0x9   :  { %8254 = sst [smem:[#allocation43_spill]] %s8200_s8 }
   0xa   :  { %8255 = sst [smem:[#allocation44_spill]] %s8201_s9 }
   0xb   :  { %8256 = sst [smem:[#allocation45_spill]] %s8202_s10 }
   0xc   :  { %8257 = sst [smem:[#allocation46_spill]] %s8203_s11 }
   0xd   :  { %8258 = sst [smem:[#allocation47_spill]] %s8204_s12 }
   0xe   :  { %8259 = sst [smem:[#allocation48_spill]] %s8205_s13 }
   0xf   :  { %8260 = sst [smem:[#allocation49_spill]] %s8206_s14 }
  0x10   :  { %8261 = sst [smem:[#allocation50_spill]] %s8207_s15 }
  0x11   :  { %8262 = sst [smem:[#allocation51_spill]] %s8208_s16 }
  0x12   :  { %8263 = sst [smem:[#allocation52_spill]] %s8209_s17 }
  0x13   :  { %8264 = sst [smem:[#allocation53_spill]] %s8210_s18 }
  0x14   :  { %8265 = sst [smem:[#allocation54_spill]] %s8211_s19 }
  0x15   :  { %8266 = sst [smem:[#allocation55_spill]] %s8212_s20 }
  0x16   :  { %8267 = sst [smem:[#allocation56_spill]] %s8213_s21 }
  0x17   :  { %8268 = sst [smem:[#allocation57_spill]] %s8214_s22 }
  0x18   :  { %8269 = sst [smem:[#allocation58_spill]] %s8215_s23 }
  0x19   :  { %8270 = sst [smem:[#allocation59_spill]] %s8216_s24 }
  0x1a   :  { %8271 = sst [smem:[#allocation60_spill]] %s8218_s26 }
  0x1b   :  { %8272 = sst [smem:[#allocation61_spill]] %s8219_s27 }
  0x1c   :  { %33 = vsyncpa [#allocation4], 0 }
  0x1d   :  { %34 = vsyncpa [#allocation7], 0 }
  0x1e   :  { %36 = vsyncpa [#allocation7 + $0x1], 0 }
  0x1f   :  { %37 = vsyncpa [#allocation10], 0 }
  0x20   :  { %39 = vsyncpa [#allocation10 + $0x1], 0 }
  0x21   :  { %40 = vsyncpa [#allocation13], 0 }
  0x22   :  { %42 = vsyncpa [#allocation13 + $0x1], 0 }
  0x23   :  { %43 = vsyncpa [#allocation16], 0 }
  0x24   :  { %45 = vsyncpa [#allocation16 + $0x1], 0 }
  0x25   :  { %46 = vsyncpa [#allocation19], 0 }
  0x26   :  { %48 = vsyncpa [#allocation19 + $0x1], 0 }
  0x27   :  { %49 = vsyncpa [#allocation5], 0 }
  0x28   :  { %50 = vsyncpa [#allocation23], 0  ;;  %s7167_s7 = smov 0   ;;  %s7169_s4 = smov 0  }
  0x29   :  { %s7171_s8 = smov 0   ;;  %s7173_s30 = smov 0  }
  0x2a LB: > { %8273 = sst [smem:[#allocation32_spill]] %s6993_s8  ;;  %s7188_s9 = sadd.s32 1, %s6997_s30   ;;  %s6997_s30 = sphi %s7173_s30, %s8344_s30   ;;  %s6993_s8 = sphi %s7171_s8, %s8346_s8   ;;  %s6989_s4 = sphi %s7169_s4, %s8348_s4   ;;  %s6985_s7 = sphi %s7167_s7, %s8347_s7  }
  0x2b   : > { %8274 = sst [smem:[#allocation33_spill]] %s7188_s9  ;;  %s215_s5 = sadd.s32 1, %s6993_s8 }
  0x2c   : > { %s212_s28 = ssub.s32 %s6997_s30, %s7188_s9  ;;  %p222_p0 = scmp.ne.s32.totalorder %s6993_s8, %s6989_s4 }
  0x2d   : > { %p213_p1 = scmp.eq.s32.totalorder %s212_s28, 0  ;;  %p223_p2 = scmp.eq.s32.totalorder %s6997_s30, 0 }
  0x2e   : > { %p6423_p3 = scmp.lt.s32.totalorder %s6997_s30, 2  ;;  %s7201_s10 = sand.u32 1, %s6997_s30  }
  0x2f   : > { %s7198_s0 = scalar_select %p213_p1, %s6993_s8, %s215_s5  }
  0x30   : > { %p224_p4 = por %p223_p2, %p222_p0  ;;  %s7204_s29 = sand.u32 1, %s6993_s8  }
  0x31   : > { %8275 = sst [smem:[#allocation34_spill]] %s7198_s0  ;;  %s7207_s1 = sshll.u32 %s6997_s30, 4 }
  0x32   : > { %s8276_s2 = sld [smem:[#allocation42_spill]]  ;;  %s799_s5 = scalar_lea.vmem [#allocation6], %s7204_s29 }
  0x33   : > { %s806_s28 = sshll.u32 %s799_s5, 4  ;;  %p7218_p5 = pnand %p6423_p3, %p224_p4  ;;  %s7216_s28 = int_to_ptr.vmem [resolvable:$true] %s806_s28 }
  0x34   : > { %s8278_s27 = sld [smem:[#allocation46_spill]] }
  0x35   : > { %s8277_s0 = scalar_select %p7218_p5, 1, 0 }
  0x36   : > { %p7233_p7 = pneg %p7218_p5 }
  0x38   : > { %s7213_s3 = scalar_lea.hbm %s8276_s2, %s7207_s1  ;;  %s6560_s20 = scalar_lea.hbm %s8276_s2, 32 }
  0x39   : > { %s6555_s26 = scalar_lea.hbm %s7213_s3, 16  ;;  %p6561_p10 = scmp.lt.u32.totalorder %s7213_s3, %s8276_s2 }
  0x3a   : > { %s7226_s6 = scalar_lea.hbm %s8278_s27, %s7207_s1  ;;  %p6556_p6 = scmp.ne.s32.totalorder %s7213_s3, %s6555_s26 }
  0x3b   : > { %p6562_p11 = scmp.lt.u32.totalorder %s6560_s20, %s6555_s26  ;;  %p6564_p13 = scmp.lt.u32.totalorder %s6555_s26, %s7213_s3 }
  0x3c   : > { %p6558_p8 = pnand %p7233_p7, %p6556_p6 }
  0x3d   : > { %p6563_p12 = por %p6562_p11, %p6561_p10 }
  0x3e   : > { %p6559_p9 = pneg %p6558_p8 }
  0x3f   : > { %p6565_p0 = por %p6564_p13, %p6563_p12 }
  0x41   : > { %p6566_p1 = pnand %p6565_p0, %p6559_p9 }
  0x43   : > { %6569 = shalt.err (!%p6566_p1)
}
  0x44   : > { %s6570_s11 = scalar_lea.vmem %s7216_s28, 16  ;;  %s6999_s22 = smov [#allocation6]  }
  0x45   : > { %p6571_p2 = scmp.ne.s32.totalorder %s7216_s28, %s6570_s11  ;;  %s6575_s5 = sshll.u32 %s6999_s22, 4  ;;  %s6576_s5 = int_to_ptr.vmem [resolvable:$false] %s6575_s5 }
  0x46   : > { %s6577_s8 = scalar_lea.vmem %s6576_s5, 32  ;;  %p6578_p6 = scmp.lt.s32.totalorder %s7216_s28, %s6576_s5 }
  0x47   : > { %p6573_p3 = pnand %p6571_p2, %p7233_p7  ;;  %p6579_p8 = scmp.lt.s32.totalorder %s6577_s8, %s6570_s11 }
  0x49   : > { %p6574_p4 = pneg %p6573_p3  ;;  %p6580_p10 = por %p6579_p8, %p6578_p6 }
  0x4b   : > { %p6581_p11 = pnand %p6580_p10, %p6574_p4 }
  0x4d   : > { %6584 = shalt.err (!%p6581_p11)
}
  0x4e   : > { %s8280_s20 = scalar_lea.sflag [#allocation7], %s7201_s10  ;;  %s847_s26 = scalar_lea.vmem [#allocation9], %s7204_s29 }
  0x4f   : > { %6394 = dma.hbm_to_vmem [thread:$0]  (!%p7218_p5), %s7213_s3, 16, %s7216_s28, %s8280_s20  }
  0x50   : > { %s854_s9 = sshll.u32 %s847_s26, 4  ;;  %s8240_s11 = scalar_lea.sflag [#allocation10], %s7201_s10  ;;  %s855_s9 = int_to_ptr.vmem [resolvable:$true] %s854_s9 }
  0x51   : > { %s6585_s22 = scalar_lea.hbm %s7226_s6, 16  ;;  %s6590_s2 = scalar_lea.hbm %s8278_s27, 32 }
  0x52   : > { %p6586_p9 = scmp.ne.s32.totalorder %s7226_s6, %s6585_s22  ;;  %p6591_p0 = scmp.lt.u32.totalorder %s7226_s6, %s8278_s27 }
  0x53   : > { %p6592_p1 = scmp.lt.u32.totalorder %s6590_s2, %s6585_s22  ;;  %p6594_p3 = scmp.lt.u32.totalorder %s6585_s22, %s7226_s6 }
  0x54   : > { %p6588_p12 = pnand %p6586_p9, %p7233_p7 }
  0x55   : > { %p6593_p2 = por %p6592_p1, %p6591_p0 }
  0x56   : > { %p6589_p13 = pneg %p6588_p12 }
  0x57   : > { %p6595_p4 = por %p6594_p3, %p6593_p2 }
  0x59   : > { %p6596_p6 = pnand %p6595_p4, %p6589_p13 }
  0x5b   : > { %6599 = shalt.err (!%p6596_p6)
}
  0x5c   : > { %s6600_s3 = scalar_lea.vmem %s855_s9, 16  ;;  %s7000_s28 = smov [#allocation9]  }
  0x5d   : > { %p6601_p8 = scmp.ne.s32.totalorder %s855_s9, %s6600_s3  ;;  %s6605_s20 = sshll.u32 %s7000_s28, 4  ;;  %s6606_s20 = int_to_ptr.vmem [resolvable:$false] %s6605_s20 }
  0x5e   : > { %s6607_s26 = scalar_lea.vmem %s6606_s20, 32  ;;  %p6608_p9 = scmp.lt.s32.totalorder %s855_s9, %s6606_s20 }
  0x5f   : > { %p6603_p10 = pnand %p6601_p8, %p7233_p7  ;;  %p6609_p12 = scmp.lt.s32.totalorder %s6607_s26, %s6600_s3 }
  0x61   : > { %p6604_p11 = pneg %p6603_p10  ;;  %p6610_p5 = por %p6609_p12, %p6608_p9 }
  0x63   : > { %p6611_p0 = pnand %p6610_p5, %p6604_p11 }
  0x65   : > { %6614 = shalt.err (!%p6611_p0)
}
  0x66   : > { %p8281_p1 = scmp.ne.s32.totalorder %s8277_s0, 0  ;;  %s8282_s15 = sld [smem:[#allocation50_spill]] }
  0x67   : > { %s897_s22 = scalar_lea.vmem [#allocation12], %s7204_s29  ;;  %s8237_s8 = scalar_lea.sflag [#allocation13], %s7201_s10 }
  0x68   : > { %6400 = dma.hbm_to_vmem [thread:$0]  (!%p8281_p1), %s7226_s6, 16, %s855_s9, %s8240_s11  }
  0x69   : > { %s904_s5 = sshll.u32 %s897_s22, 4  ;;  %s905_s5 = int_to_ptr.vmem [resolvable:$true] %s904_s5 }
  0x6c   : > { %s7283_s2 = scalar_lea.hbm %s8282_s15, %s7207_s1  ;;  %s6620_s9 = scalar_lea.hbm %s8282_s15, 32 }
  0x6d   : > { %s6615_s3 = scalar_lea.hbm %s7283_s2, 16  ;;  %p6621_p3 = scmp.lt.u32.totalorder %s7283_s2, %s8282_s15 }
  0x6e   : > { %p6616_p5 = scmp.ne.s32.totalorder %s7283_s2, %s6615_s3  ;;  %p6622_p4 = scmp.lt.u32.totalorder %s6620_s9, %s6615_s3 }
  0x6f   : > { %p6624_p8 = scmp.lt.u32.totalorder %s6615_s3, %s7283_s2 }
  0x70   : > { %p6618_p13 = pnand %p6616_p5, %p7233_p7  ;;  %p6623_p6 = por %p6622_p4, %p6621_p3 }
  0x72   : > { %p6619_p2 = pneg %p6618_p13  ;;  %p6625_p10 = por %p6624_p8, %p6623_p6 }
  0x74   : > { %p6626_p11 = pnand %p6625_p10, %p6619_p2 }
  0x76   : > { %6629 = shalt.err (!%p6626_p11)
}
  0x77   : > { %s6630_s16 = scalar_lea.vmem %s905_s5, 16  ;;  %s7001_s18 = smov [#allocation12]  }
  0x78   : > { %p6631_p9 = scmp.ne.s32.totalorder %s905_s5, %s6630_s16  ;;  %s6635_s22 = sshll.u32 %s7001_s18, 4  ;;  %s6636_s22 = int_to_ptr.vmem [resolvable:$false] %s6635_s22 }
  0x79   : > { %s6637_s28 = scalar_lea.vmem %s6636_s22, 32  ;;  %p6638_p5 = scmp.lt.s32.totalorder %s905_s5, %s6636_s22 }
  0x7a   : > { %p6633_p12 = pnand %p6631_p9, %p7233_p7  ;;  %p6639_p13 = scmp.lt.s32.totalorder %s6637_s28, %s6630_s16 }
  0x7c   : > { %p6634_p0 = pneg %p6633_p12  ;;  %p6640_p1 = por %p6639_p13, %p6638_p5 }
  0x7e   : > { %p6641_p3 = pnand %p6640_p1, %p6634_p0 }
  0x80   : > { %6644 = shalt.err (!%p6641_p3)
}
  0x81   : > { %p8283_p4 = scmp.ne.s32.totalorder %s8277_s0, 0  ;;  %s8284_s19 = sld [smem:[#allocation54_spill]] }
  0x82   : > { %s945_s20 = scalar_lea.vmem [#allocation15], %s7204_s29  ;;  %s8238_s16 = scalar_lea.sflag [#allocation16], %s7201_s10 }
  0x83   : > { %6406 = dma.hbm_to_vmem [thread:$0]  (!%p8283_p4), %s7283_s2, 16, %s905_s5, %s8237_s8  }
  0x84   : > { %s952_s26 = sshll.u32 %s945_s20, 4  ;;  %s953_s26 = int_to_ptr.vmem [resolvable:$true] %s952_s26 }
  0x87   : > { %s7310_s9 = scalar_lea.hbm %s8284_s19, %s7207_s1  ;;  %s6650_s5 = scalar_lea.hbm %s8284_s19, 32 }
  0x88   : > { %s6645_s18 = scalar_lea.hbm %s7310_s9, 16  ;;  %p6651_p8 = scmp.lt.u32.totalorder %s7310_s9, %s8284_s19 }
  0x89   : > { %p6646_p1 = scmp.ne.s32.totalorder %s7310_s9, %s6645_s18  ;;  %p6652_p10 = scmp.lt.u32.totalorder %s6650_s5, %s6645_s18 }
  0x8a   : > { %p6654_p9 = scmp.lt.u32.totalorder %s6645_s18, %s7310_s9 }
  0x8b   : > { %p6648_p2 = pnand %p6646_p1, %p7233_p7  ;;  %p6653_p11 = por %p6652_p10, %p6651_p8 }
  0x8d   : > { %p6649_p6 = pneg %p6648_p2  ;;  %p6655_p12 = por %p6654_p9, %p6653_p11 }
  0x8f   : > { %p6656_p0 = pnand %p6655_p12, %p6649_p6 }
  0x91   : > { %6659 = shalt.err (!%p6656_p0)
}
  0x92   : > { %s6660_s6 = scalar_lea.vmem %s953_s26, 16  ;;  %s7002_s20 = smov [#allocation15]  }
  0x93   : > { %p6661_p5 = scmp.ne.s32.totalorder %s953_s26, %s6660_s6  ;;  %s6665_s8 = sshll.u32 %s7002_s20, 4  ;;  %s6666_s8 = int_to_ptr.vmem [resolvable:$false] %s6665_s8 }
  0x94   : > { %s6667_s22 = scalar_lea.vmem %s6666_s8, 32  ;;  %p6668_p1 = scmp.lt.s32.totalorder %s953_s26, %s6666_s8 }
  0x95   : > { %p6663_p13 = pnand %p6661_p5, %p7233_p7  ;;  %p6669_p2 = scmp.lt.s32.totalorder %s6667_s22, %s6660_s6 }
  0x97   : > { %p6664_p3 = pneg %p6663_p13  ;;  %p6670_p4 = por %p6669_p2, %p6668_p1 }
  0x99   : > { %p6671_p8 = pnand %p6670_p4, %p6664_p3 }
  0x9b   : > { %6674 = shalt.err (!%p6671_p8)
}
  0x9c   : > { %p8285_p10 = scmp.ne.s32.totalorder %s8277_s0, 0  ;;  %s8286_s23 = sld [smem:[#allocation58_spill]] }
  0x9d   : > { %s995_s8 = scalar_lea.vmem [#allocation18], %s7204_s29  ;;  %s8239_s3 = scalar_lea.sflag [#allocation19], %s7201_s10 }
  0x9e   : > { %6412 = dma.hbm_to_vmem [thread:$0]  (!%p8285_p10), %s7310_s9, 16, %s953_s26, %s8238_s16  }
  0x9f   : > { %s1002_s28 = sshll.u32 %s995_s8, 4  ;;  %s1003_s28 = int_to_ptr.vmem [resolvable:$true] %s1002_s28 }
  0xa2   : > { %s7337_s5 = scalar_lea.hbm %s8286_s23, %s7207_s1  ;;  %s6680_s26 = scalar_lea.hbm %s8286_s23, 32 }
  0xa3   : > { %s6675_s6 = scalar_lea.hbm %s7337_s5, 16  ;;  %p6681_p9 = scmp.lt.u32.totalorder %s7337_s5, %s8286_s23 }
  0xa4   : > { %p6676_p4 = scmp.ne.s32.totalorder %s7337_s5, %s6675_s6  ;;  %p6682_p12 = scmp.lt.u32.totalorder %s6680_s26, %s6675_s6 }
  0xa5   : > { %p6684_p5 = scmp.lt.u32.totalorder %s6675_s6, %s7337_s5 }
  0xa6   : > { %p6678_p6 = pnand %p6676_p4, %p7233_p7  ;;  %p6683_p0 = por %p6682_p12, %p6681_p9 }
  0xa8   : > { %p6679_p11 = pneg %p6678_p6  ;;  %p6685_p13 = por %p6684_p5, %p6683_p0 }
  0xaa   : > { %p6686_p3 = pnand %p6685_p13, %p6679_p11 }
  0xac   : > { %6689 = shalt.err (!%p6686_p3)
}
  0xad   : > { %s6690_s2 = scalar_lea.vmem %s1003_s28, 16  ;;  %s7003_s8 = smov [#allocation18]  }
  0xae   : > { %p6691_p1 = scmp.ne.s32.totalorder %s1003_s28, %s6690_s2  ;;  %s6695_s16 = sshll.u32 %s7003_s8, 4  ;;  %s6696_s16 = int_to_ptr.vmem [resolvable:$false] %s6695_s16 }
  0xaf   : > { %s6697_s20 = scalar_lea.vmem %s6696_s16, 32  ;;  %p6698_p4 = scmp.lt.s32.totalorder %s1003_s28, %s6696_s16 }
  0xb0   : > { %p6693_p2 = pnand %p6691_p1, %p7233_p7  ;;  %p6699_p6 = scmp.lt.s32.totalorder %s6697_s20, %s6690_s2 }
  0xb2   : > { %p6694_p8 = pneg %p6693_p2  ;;  %p6700_p10 = por %p6699_p6, %p6698_p4 }
  0xb4   : > { %p6701_p9 = pnand %p6700_p10, %p6694_p8 }
  0xb6   : > { %6704 = shalt.err (!%p6701_p9)
}
  0xb7   : > { %p8287_p12 = scmp.ne.s32.totalorder %s8277_s0, 0  ;;  %s7361_s6 = sadd.s32 4294967295, %s6997_s30  }
  0xb8   : > { %p228_p10 = scmp.ne.s32.totalorder %s6989_s4, %s6985_s7  ;;  %p8241_p11 = scmp.eq.s32.totalorder %s7361_s6, 0 }
  0xb9   : > { %6418 = dma.hbm_to_vmem [thread:$0]  (!%p8287_p12), %s7337_s5, 16, %s1003_s28, %s8239_s3  }
  0xba   : > { %p5751_p0 = scmp.ge.s32.totalorder %s6997_s30, 1  ;;  %p749_p5 = scmp.lt.s32.totalorder %s6997_s30, 3 }
  0xbb   : > { %p7370_p13 = por %p8241_p11, %p228_p10  ;;  %s7004_s5 = smov [#allocation3]  }
  0xbc   : > { %p7375_p1 = pnand %p5751_p0, %p749_p5  ;;  %s777_s28 = sshll.u32 %s7004_s5, 4  ;;  %s7381_s28 = int_to_ptr.vmem [resolvable:$true] %s777_s28 }
  0xbd   : > { %s8288_s16 = scalar_select %p7370_p13, 1, 0 }
  0xbe   : > { %s8289_s9 = scalar_select %p7375_p1, 1, 0 }
  0xbf   : > { %p6387_p2 = pneg %p7375_p1  ;;  %s8290_s30 = sld [smem:[#allocation44_spill]] }
  0xc0   : > { %s824_s2 = scalar_lea.vmem [#allocation8], %s7204_s29 }
  0xc1   : > { %s831_s8 = sshll.u32 %s824_s2, 4  ;;  %p7392_p8 = pnand %p6387_p2, %p8241_p11  ;;  %s832_s8 = int_to_ptr.vmem [resolvable:$true] %s831_s8 }
  0xc3   : > { %s8292_s20 = scalar_select %p7392_p8, 1, 0 }
  0xc5   : > { %s8291_s22 = smov %s8290_s30  ;;  %s7387_s18 = scalar_lea.hbm %s8290_s30, %s7207_s1 }
  0xc6   : > { %s6705_s5 = scalar_lea.hbm %s7387_s18, 16  ;;  %s6710_s30 = scalar_lea.hbm %s8291_s22, 32 }
  0xc7   : > { %p6706_p4 = scmp.ne.s32.totalorder %s7387_s18, %s6705_s5  ;;  %p6711_p10 = scmp.lt.u32.totalorder %s7387_s18, %s8291_s22 }
  0xc8   : > { %p6712_p0 = scmp.lt.u32.totalorder %s6710_s30, %s6705_s5  ;;  %p6714_p2 = scmp.lt.u32.totalorder %s6705_s5, %s7387_s18 }
  0xc9   : > { %p6708_p6 = pnand %p6706_p4, %p7233_p7 }
  0xca   : > { %p6713_p5 = por %p6712_p0, %p6711_p10 }
  0xcb   : > { %p6709_p9 = pneg %p6708_p6 }
  0xcc   : > { %p6715_p3 = por %p6714_p2, %p6713_p5 }
  0xce   : > { %p6716_p11 = pnand %p6715_p3, %p6709_p9 }
  0xd0   : > { %6719 = shalt.err (!%p6716_p11)
}
  0xd1   : > { %s6720_s2 = scalar_lea.vmem %s832_s8, 16  ;;  %s7005_s15 = smov [#allocation8]  }
  0xd2   : > { %p6721_p13 = scmp.ne.s32.totalorder %s832_s8, %s6720_s2  ;;  %s6725_s19 = sshll.u32 %s7005_s15, 4  ;;  %s6726_s19 = int_to_ptr.vmem [resolvable:$false] %s6725_s19 }
  0xd3   : > { %s6727_s7 = scalar_lea.vmem %s6726_s19, 32  ;;  %p6728_p1 = scmp.lt.s32.totalorder %s832_s8, %s6726_s19 }
  0xd4   : > { %p6723_p4 = pnand %p6721_p13, %p7233_p7  ;;  %p6729_p8 = scmp.lt.s32.totalorder %s6727_s7, %s6720_s2 }
  0xd6   : > { %p6724_p6 = pneg %p6723_p4  ;;  %p6730_p12 = por %p6729_p8, %p6728_p1 }
  0xd8   : > { %p6731_p0 = pnand %p6730_p12, %p6724_p6 }
  0xda   : > { %6734 = shalt.err (!%p6731_p0)
}
  0xdb   : > { %p8293_p10 = scmp.ne.s32.totalorder %s8277_s0, 0  ;;  %s8294_s11 = scalar_lea.sflag [#allocation7], %s7201_s10 }
  0xdc   : > { %s8295_s26 = sld [smem:[#allocation40_spill]]  ;;  %p8296_p13 = scmp.ne.s32.totalorder %s8292_s20, 0 }
  0xdd   : > { %6397 = dma.hbm_to_vmem [thread:$0]  (!%p8293_p10), %s7387_s18, 16, %s832_s8, %s8294_s11  }
  0xde   : > { %p6737_p3 = pneg %p8296_p13 }
  0xe2   : > { %s6735_s30 = scalar_lea.hbm %s8295_s26, 16 }
  0xe3   : > { %p6736_p11 = scmp.ne.s32.totalorder %s8295_s26, %s6735_s30  ;;  %p6742_p8 = scmp.lt.u32.totalorder %s6735_s30, %s8295_s26 }
  0xe5   : > { %p6738_p1 = pnand %p6737_p3, %p6736_p11 }
  0xe7   : > { %p6739_p12 = pneg %p6738_p1 }
  0xe9   : > { %p6744_p9 = pnand %p6742_p8, %p6739_p12 }
  0xeb   : > { %6747 = shalt.err (!%p6744_p9)
}
  0xec   : > { %s6748_s18 = scalar_lea.vmem %s7381_s28, 16  ;;  %s6755_s22 = scalar_lea.vmem %s7381_s28, 32 }
  0xed   : > { %p6749_p5 = scmp.ne.s32.totalorder %s7381_s28, %s6748_s18  ;;  %p6756_p6 = scmp.lt.s32.totalorder %s7381_s28, %s7381_s28 }
  0xee   : > { %p6757_p0 = scmp.lt.s32.totalorder %s6755_s22, %s6748_s18 }
  0xef   : > { %p6751_p2 = pnand %p6749_p5, %p6737_p3 }
  0xf0   : > { %p6758_p11 = por %p6757_p0, %p6756_p6 }
  0xf1   : > { %p6752_p4 = pneg %p6751_p2 }
  0xf3   : > { %p6759_p1 = pnand %p6758_p11, %p6752_p4 }
  0xf5   : > { %6762 = shalt.err (!%p6759_p1)
}
  0xf6   : > { %6390 = dma.hbm_to_vmem [thread:$0]  (!%p8296_p13), %s8295_s26, 16, %s7381_s28, [#allocation4]  }
  0xf7   : > { %s8297_s13 = sld [smem:[#allocation48_spill]]  ;;  %s872_s30 = scalar_lea.vmem [#allocation11], %s7204_s29 }
  0xf8   : > { %s879_s15 = sshll.u32 %s872_s30, 4  ;;  %s880_s15 = int_to_ptr.vmem [resolvable:$true] %s879_s15 }
  0xfd   : > { %s7441_s5 = scalar_lea.hbm %s8297_s13, %s7207_s1  ;;  %s6768_s28 = scalar_lea.hbm %s8297_s13, 32 }
  0xfe   : > { %s6763_s20 = scalar_lea.hbm %s7441_s5, 16  ;;  %p6769_p13 = scmp.lt.u32.totalorder %s7441_s5, %s8297_s13 }
  0xff   : > { %p6764_p3 = scmp.ne.s32.totalorder %s7441_s5, %s6763_s20  ;;  %p6770_p9 = scmp.lt.u32.totalorder %s6768_s28, %s6763_s20 }
 0x100   : > { %p6772_p2 = scmp.lt.u32.totalorder %s6763_s20, %s7441_s5 }
 0x101   : > { %p6766_p12 = pnand %p6764_p3, %p7233_p7  ;;  %p6771_p5 = por %p6770_p9, %p6769_p13 }
 0x103   : > { %p6767_p8 = pneg %p6766_p12  ;;  %p6773_p4 = por %p6772_p2, %p6771_p5 }
 0x105   : > { %p6774_p6 = pnand %p6773_p4, %p6767_p8 }
 0x107   : > { %6777 = shalt.err (!%p6774_p6)
}
 0x108   : > { %s6778_s8 = scalar_lea.vmem %s880_s15, 16  ;;  %s7006_s7 = smov [#allocation11]  }
 0x109   : > { %p6779_p0 = scmp.ne.s32.totalorder %s880_s15, %s6778_s8  ;;  %s6783_s11 = sshll.u32 %s7006_s7, 4  ;;  %s6784_s11 = int_to_ptr.vmem [resolvable:$false] %s6783_s11 }
 0x10a   : > { %s6785_s3 = scalar_lea.vmem %s6784_s11, 32  ;;  %p6786_p3 = scmp.lt.s32.totalorder %s880_s15, %s6784_s11 }
 0x10b   : > { %p6781_p11 = pnand %p6779_p0, %p7233_p7  ;;  %p6787_p12 = scmp.lt.s32.totalorder %s6785_s3, %s6778_s8 }
 0x10d   : > { %p6782_p1 = pneg %p6781_p11  ;;  %p6788_p10 = por %p6787_p12, %p6786_p3 }
 0x10f   : > { %p6789_p9 = pnand %p6788_p10, %p6782_p1 }
 0x111   : > { %6792 = shalt.err (!%p6789_p9)
}
 0x112   : > { %p8298_p13 = scmp.ne.s32.totalorder %s8277_s0, 0  ;;  %s8299_s30 = scalar_lea.sflag [#allocation10], %s7201_s10 }
 0x113   : > { %s8300_s17 = sld [smem:[#allocation52_spill]]  ;;  %s922_s28 = scalar_lea.vmem [#allocation14], %s7204_s29 }
 0x114   : > { %6403 = dma.hbm_to_vmem [thread:$0]  (!%p8298_p13), %s7441_s5, 16, %s880_s15, %s8299_s30  }
 0x115   : > { %s929_s18 = sshll.u32 %s922_s28, 4  ;;  %s930_s18 = int_to_ptr.vmem [resolvable:$true] %s929_s18 }
 0x119   : > { %s7467_s2 = scalar_lea.hbm %s8300_s17, %s7207_s1  ;;  %s6798_s5 = scalar_lea.hbm %s8300_s17, 32 }
 0x11a   : > { %s6793_s22 = scalar_lea.hbm %s7467_s2, 16  ;;  %p6799_p2 = scmp.lt.u32.totalorder %s7467_s2, %s8300_s17 }
 0x11b   : > { %p6794_p10 = scmp.ne.s32.totalorder %s7467_s2, %s6793_s22  ;;  %p6800_p4 = scmp.lt.u32.totalorder %s6798_s5, %s6793_s22 }
 0x11c   : > { %p6802_p0 = scmp.lt.u32.totalorder %s6793_s22, %s7467_s2 }
 0x11d   : > { %p6796_p8 = pnand %p6794_p10, %p7233_p7  ;;  %p6801_p6 = por %p6800_p4, %p6799_p2 }
 0x11f   : > { %p6797_p5 = pneg %p6796_p8  ;;  %p6803_p11 = por %p6802_p0, %p6801_p6 }
 0x121   : > { %p6804_p1 = pnand %p6803_p11, %p6797_p5 }
 0x123   : > { %6807 = shalt.err (!%p6804_p1)
}
 0x124   : > { %s6808_s3 = scalar_lea.vmem %s930_s18, 16  ;;  %s7007_s30 = smov [#allocation14]  }
 0x125   : > { %p6809_p3 = scmp.ne.s32.totalorder %s930_s18, %s6808_s3  ;;  %s6813_s20 = sshll.u32 %s7007_s30, 4  ;;  %s6814_s20 = int_to_ptr.vmem [resolvable:$false] %s6813_s20 }
 0x126   : > { %s6815_s19 = scalar_lea.vmem %s6814_s20, 32  ;;  %p6816_p10 = scmp.lt.s32.totalorder %s930_s18, %s6814_s20 }
 0x127   : > { %p6811_p12 = pnand %p6809_p3, %p7233_p7  ;;  %p6817_p8 = scmp.lt.s32.totalorder %s6815_s19, %s6808_s3 }
 0x129   : > { %p6812_p9 = pneg %p6811_p12  ;;  %p6818_p13 = por %p6817_p8, %p6816_p10 }
 0x12b   : > { %p6819_p2 = pnand %p6818_p13, %p6812_p9 }
 0x12d   : > { %6822 = shalt.err (!%p6819_p2)
}
 0x12e   : > { %p8301_p4 = scmp.ne.s32.totalorder %s8277_s0, 0  ;;  %s8302_s28 = scalar_lea.sflag [#allocation13], %s7201_s10 }
 0x12f   : > { %s8303_s21 = sld [smem:[#allocation56_spill]]  ;;  %s970_s5 = scalar_lea.vmem [#allocation17], %s7204_s29 }
 0x130   : > { %6409 = dma.hbm_to_vmem [thread:$0]  (!%p8301_p4), %s7467_s2, 16, %s930_s18, %s8302_s28  }
 0x131   : > { %s977_s15 = sshll.u32 %s970_s5, 4  ;;  %s978_s15 = int_to_ptr.vmem [resolvable:$true] %s977_s15 }
 0x135   : > { %s7493_s7 = scalar_lea.hbm %s8303_s21, %s7207_s1  ;;  %s6828_s2 = scalar_lea.hbm %s8303_s21, 32 }
 0x136   : > { %s6823_s11 = scalar_lea.hbm %s7493_s7, 16  ;;  %p6829_p0 = scmp.lt.u32.totalorder %s7493_s7, %s8303_s21 }
 0x137   : > { %p6824_p13 = scmp.ne.s32.totalorder %s7493_s7, %s6823_s11  ;;  %p6830_p11 = scmp.lt.u32.totalorder %s6828_s2, %s6823_s11 }
 0x138   : > { %p6832_p3 = scmp.lt.u32.totalorder %s6823_s11, %s7493_s7 }
 0x139   : > { %p6826_p5 = pnand %p6824_p13, %p7233_p7  ;;  %p6831_p1 = por %p6830_p11, %p6829_p0 }
 0x13b   : > { %p6827_p6 = pneg %p6826_p5  ;;  %p6833_p12 = por %p6832_p3, %p6831_p1 }
 0x13d   : > { %p6834_p9 = pnand %p6833_p12, %p6827_p6 }
 0x13f   : > { %6837 = shalt.err (!%p6834_p9)
}
 0x140   : > { %s6838_s19 = scalar_lea.vmem %s978_s15, 16  ;;  %s7008_s28 = smov [#allocation17]  }
 0x141   : > { %p6839_p10 = scmp.ne.s32.totalorder %s978_s15, %s6838_s19  ;;  %s6843_s22 = sshll.u32 %s7008_s28, 4  ;;  %s6844_s22 = int_to_ptr.vmem [resolvable:$false] %s6843_s22 }
 0x142   : > { %s6845_s8 = scalar_lea.vmem %s6844_s22, 32  ;;  %p6846_p13 = scmp.lt.s32.totalorder %s978_s15, %s6844_s22 }
 0x143   : > { %p6841_p8 = pnand %p6839_p10, %p7233_p7  ;;  %p6847_p5 = scmp.lt.s32.totalorder %s6845_s8, %s6838_s19 }
 0x145   : > { %p6842_p2 = pneg %p6841_p8  ;;  %p6848_p4 = por %p6847_p5, %p6846_p13 }
 0x147   : > { %p6849_p0 = pnand %p6848_p4, %p6842_p2 }
 0x149   : > { %6852 = shalt.err (!%p6849_p0)
}
 0x14a   : > { %p8304_p11 = scmp.ne.s32.totalorder %s8277_s0, 0  ;;  %s8305_s5 = scalar_lea.sflag [#allocation16], %s7201_s10 }
 0x14b   : > { %s7519_s30 = scalar_lea.hbm %s8217_s25, %s7207_s1  ;;  %s1018_s2 = scalar_lea.vmem [#allocation20], %s7204_s29 }
 0x14c   : > { %6415 = dma.hbm_to_vmem [thread:$0]  (!%p8304_p11), %s7493_s7, 16, %s978_s15, %s8305_s5  }
 0x14d   : > { %s1025_s18 = sshll.u32 %s1018_s2, 4  ;;  %s6853_s20 = scalar_lea.hbm %s7519_s30, 16  ;;  %s1026_s18 = int_to_ptr.vmem [resolvable:$true] %s1025_s18 }
 0x14e   : > { %p6854_p4 = scmp.ne.s32.totalorder %s7519_s30, %s6853_s20  ;;  %s6858_s7 = scalar_lea.hbm %s8217_s25, 32 }
 0x14f   : > { %p6859_p3 = scmp.lt.u32.totalorder %s7519_s30, %s8217_s25  ;;  %p6860_p12 = scmp.lt.u32.totalorder %s6858_s7, %s6853_s20 }
 0x150   : > { %p6856_p6 = pnand %p6854_p4, %p7233_p7  ;;  %p6862_p10 = scmp.lt.u32.totalorder %s6853_s20, %s7519_s30 }
 0x151   : > { %p6861_p9 = por %p6860_p12, %p6859_p3 }
 0x152   : > { %p6857_p1 = pneg %p6856_p6 }
 0x153   : > { %p6863_p8 = por %p6862_p10, %p6861_p9 }
 0x155   : > { %p6864_p2 = pnand %p6863_p8, %p6857_p1 }
 0x157   : > { %6867 = shalt.err (!%p6864_p2)
}
 0x158   : > { %s6868_s29 = scalar_lea.vmem %s1026_s18, 16  ;;  %s7009_s1 = smov [#allocation20]  }
 0x159   : > { %p6869_p13 = scmp.ne.s32.totalorder %s1026_s18, %s6868_s29  ;;  %s6873_s8 = sshll.u32 %s7009_s1, 4  ;;  %s6874_s8 = int_to_ptr.vmem [resolvable:$false] %s6873_s8 }
 0x15a   : > { %s6875_s5 = scalar_lea.vmem %s6874_s8, 32  ;;  %p6876_p4 = scmp.lt.s32.totalorder %s1026_s18, %s6874_s8 }
 0x15b   : > { %p6871_p5 = pnand %p6869_p13, %p7233_p7  ;;  %p6877_p6 = scmp.lt.s32.totalorder %s6875_s5, %s6868_s29 }
 0x15d   : > { %p6872_p0 = pneg %p6871_p5  ;;  %p6878_p11 = por %p6877_p6, %p6876_p4 }
 0x15f   : > { %p6879_p3 = pnand %p6878_p11, %p6872_p0 }
 0x161   : > { %6882 = shalt.err (!%p6879_p3)
}
 0x162   : > { %p8306_p12 = scmp.ne.s32.totalorder %s8277_s0, 0  ;;  %s8307_s11 = scalar_lea.sflag [#allocation19], %s7201_s10 }
 0x163   : > { %p8308_p1 = scmp.ne.s32.totalorder %s8289_s9, 0 }
 0x164   : > { %6421 = dma.hbm_to_vmem [thread:$0]  (!%p8306_p12), %s7519_s30, 16, %s1026_s18, %s8307_s11  }
 0x165   : > { %1034 = sbr.rel (%p8308_p1) target bundleno = 8152 (0x1fd8), region = 124  ;;  %p8309_p7 = scmp.eq.s32.totalorder (!%p8308_p1), %s7361_s6, 0 }
 0x16c   : > { %6952 = dma.done.wait (%p8309_p7), [#allocation4], 16   ;;  %p8310_p9 = pmov %p8309_p7 }
 0x16d   : > { %s1040_s24 = sand.u32 1, %s7361_s6   ;;  %s7549_s3 = sand.u32 1, %s6989_s4  }
 0x16e   : > { %6954 = vsyncadd (%p8310_p9), [#allocation4], 4294967280  ;;  %s1041_s0 = scalar_lea.sflag [#allocation7], %s1040_s24  ;;  %p8311_p11 = scmp.ne.s32.totalorder %s8288_s16, 0 }
 0x170   : > { %6956 = dma.done.wait (%p8311_p11), %s1041_s0, 32  }
 0x171   : > { %6958 = vsyncadd (%p8311_p11), %s1041_s0, 4294967264  ;;  %s1057_s30 = scalar_lea.sflag [#allocation10], %s1040_s24 }
 0x172   : > { %6960 = dma.done.wait (%p8311_p11), %s1057_s30, 32  }
 0x173   : > { %6962 = vsyncadd (%p8311_p11), %s1057_s30, 4294967264  ;;  %s1073_s20 = scalar_lea.sflag [#allocation13], %s1040_s24 }
 0x174   : > { %6964 = dma.done.wait (%p8311_p11), %s1073_s20, 32  }
 0x175   : > { %6966 = vsyncadd (%p8311_p11), %s1073_s20, 4294967264  ;;  %s1089_s7 = scalar_lea.sflag [#allocation16], %s1040_s24 }
 0x176   : > { %6968 = dma.done.wait (%p8311_p11), %s1089_s7, 32  }
 0x177   : > { %6970 = vsyncadd (%p8311_p11), %s1089_s7, 4294967264  ;;  %s1105_s29 = scalar_lea.sflag [#allocation19], %s1040_s24 }
 0x178   : > { %6972 = dma.done.wait (%p8311_p11), %s1105_s29, 32  }
 0x179   : > { %6974 = vsyncadd (%p8311_p11), %s1105_s29, 4294967264  ;;  %p1260_p10 = scmp.lt.s32.totalorder %s7361_s6, 1  ;;  %s8313_s16 = sld [smem:[#allocation41_spill]] }
 0x17a   : > { %s8314_s15 = sld [smem:[#allocation43_spill]]  ;;  %s8315_s12 = sld [smem:[#allocation47_spill]] }
 0x17b   : > { %s7582_s8 = scalar_select %p1260_p10, %s7361_s6, 1 }
 0x17c   : > { %s8316_s14 = sld [smem:[#allocation49_spill]]  ;;  %s8317_s0 = sld [smem:[#allocation51_spill]] }
 0x17d   : > { %s5878_s5 = sshll.u32 %s7582_s8, 5  ;;  %s8318_s22 = sld [smem:[#allocation53_spill]] }
 0x17e   : > { %s8319_s17 = sld [smem:[#allocation55_spill]]  ;;  %s5884_s19 = sshll.u32 %s7582_s8, 6 }
 0x17f   : > { %s1264_s29 = scalar_lea.vmem %s8313_s16, %s5878_s5  ;;  %s8320_s10 = sld [smem:[#allocation57_spill]] }
 0x180   : > { %s7595_s28 = scalar_lea.vmem %s8314_s15, %s5878_s5  ;;  %s7600_s2 = scalar_lea.vmem %s8315_s12, %s5878_s5 }
 0x181   : > { %s8321_s11 = sld [smem:[#allocation59_spill]]  ;;  %p8322_p8 = scmp.ne.s32.totalorder %s7361_s6, 0 }
 0x182   : > { %s7605_s13 = scalar_lea.vmem %s8316_s14, %s5878_s5  ;;  %s7610_s20 = scalar_lea.vmem %s8317_s0, %s5878_s5  ;;  %vm1310_vm0 = vcmask (!%p8322_p8), 261120  }
 0x183   : > { %s1290_s15 = scalar_lea.vmem %s8318_s22, %s7582_s8  ;;  %s1115_s0 = scalar_lea.vmem [#allocation20], %s7549_s3 }
 0x184   : > { %s7619_s18 = scalar_lea.vmem %s8319_s17, %s5878_s5  ;;  %1307 = sbr.rel (%p8322_p8) target bundleno = 397 (0x18d), region = 172 }
 0x185   : > { %s7625_s9 = scalar_lea.vmem %s8320_s10, %s5884_s19  ;;  %s8323_s22 = sld [smem:[#allocation35_spill]] (!%p8322_p8) }
 0x187   : > { %s1303_s24 = scalar_lea.vmem %s8321_s11, %s7582_s8 }
 0x18b   : > { %v1308_v0 = vld [vmem:[%s8323_s22] sm:$0xff]  ;;  %v1309_v1 = vld [vmem:[%s8323_s22 + $0x8] sm:$0xff] }
 0x18c   : > { %1311 = vst.msk [vmem:[#allocation2] sm:$0xff] %vm1310_vm0, %v1308_v0  ;;  %1312 = vst.msk [vmem:[#allocation2 + $0x8] sm:$0xff] %vm1310_vm0, %v1309_v1 }
 0x18d PF: > { %v1317_v2 = vld [vmem:[%s1264_s29] sm:$0xff]  ;;  %v1318_v3 = vld [vmem:[%s1264_s29 + $0x8] sm:$0xff]  ;;  %v1319_v4 = vld [vmem:[%s1264_s29 + $0x10] sm:$0xff]  ;;  %vm1328_vm1 = vcmask 261120   ;;  %v7010_v10 = vmov 0.0   ;;  %vm7011_vm2 = vmmov 0  }
 0x18e   : > { %v6287_v5 = vpack.c.bf16 %v1318_v3, %v1317_v2  ;;  %v1320_v6 = vld [vmem:[%s1264_s29 + $0x18] sm:$0xff]  ;;  %6034 = vmatprep.subr.mxu0 %v7010_v10  ;;  %6036 = vmatprep.mubr.msk.f32.mxu0 %vm7011_vm2, %v7010_v10  ;;  %s8324_s12 = scalar_lea.vmem [#allocation6], %s7549_s3  ;;  %s7012_s14 = smov 96   ;;  %vm1421_vm3 = vcmask 64512   ;;  %vm5154_vm8 = vcmask 523264  }
 0x18f   : > { %v6291_v8 = vpack.c.bf16 %v1320_v6, %v1319_v4  ;;  %v5781_v11 = vld [vmem:[%s8324_s12] ss:$0 sm:$0xff]  ;;  %s7013_s21 = smov 64   ;;  %s7014_s23 = smov 120  }
 0x190   : > { %6288 = vmatprep.subr.bf16.mxu1 %v6287_v5  ;;  %s8325_s1 = sld [smem:[#allocation37_spill]]  ;;  %s7015_s11 = smov 88  }
 0x191   : > { %6290 = vmatpush3.bf16.msra.mxu1 %v6287_v5  ;;  %s7016_s7 = smov 80   ;;  %s7017_s16 = smov 56  }
 0x192   : > { %6292 = vmatprep.subr.bf16.mxu1 %v6291_v8  ;;  %s7018_s17 = smov 112   ;;  %s7019_s5 = smov 48  }
 0x193   : > { %v7640_v7 = vld [vmem:[#allocation2] sm:$0xff]  ;;  %v7644_v9 = vld [vmem:[#allocation2 + $0x8] sm:$0xff]  ;;  %s7020_s12 = smov 72   ;;  %s7022_s30 = smov 40  }
 0x194   : > { %6021 = vmatprep.mubr.msk.f32.mxu1 %vm1328_vm1, %v7640_v7  ;;  %s8326_s29 = scalar_lea.vmem [#allocation8], %s7549_s3  ;;  %s8327_s10 = sld [smem:[#allocation36_spill]] }
 0x195   : > { %6294 = vmatpush3.bf16.msra.mxu1 %v6291_v8  ;;  %s8331_s19 = scalar_lea.vmem [#allocation12], %s7549_s3  ;;  %p5868_p2 = scmp.ne.s32.totalorder %s7361_s6, 1 }
 0x196   : > { %6024 = vmatprep.subr.mxu1 %v7010_v10  ;;  %v7690_v21 = vld [vmem:[%s8325_s1] sm:$0xff]  ;;  %v7696_v22 = vld [vmem:[%s8325_s1 + $0x8] sm:$0xff] }
 0x197   : > { %vm1575_vm4 = vcmp.gt.s32.totalorder %v7690_v21, 0  ;;  %vm1576_vm5 = vcmp.gt.s32.totalorder %v7696_v22, 0 }
 0x198   : > { %6022 = vmatmul.mubr.msk.f32.vlgmr.msra.gmra.mrb[0].mxu1 %vm1328_vm1, %v7644_v9 }
 0x199   : > { %6026 = vmatprep.mubr.msk.f32.mxu1 %vm7011_vm2, %v7010_v10 }
 0x26b   : > { %v6023_v12 = vpop.f32.mrb[0].mxu1 }
 0x26c   : > { %v1401_v13 = vpop.f32.mrb[1].mxu1  ;;  %v7660_v15 = vadd.f32 %v6023_v12, %v5781_v11 }
 0x26d   : > { %v7656_v14 = vadd.f32 %v5781_v11, %v1401_v13 }
 0x26e   : > { %v7667_v16 = vmul.f32 0.35355338, %v7660_v15 }
 0x26f   : > { %1419 = vrot.lane.b32.xlu0 %v7656_v14, %s7012_s14  ;;  %v7674_v18 = vmul.f32 0.35355338, %v7656_v14 }
 0x273   : > { %1498 = vrot.lane.b32.xlu0 %v7660_v15, %s7012_s14 }
 0x277   : > { %1677 = vrot.lane.b32.xlu0 %v7660_v15, %s7013_s21 }
 0x27b   : > { %1831 = vrot.lane.b32.xlu0 %v7667_v16, %s7014_s23 }
 0x2e1   : > { %v1420_v17 = vpop.permute.xlu0 %1419 }
 0x2e2   : > { %6025 = vmatpush3.xpose.msk.msra.mxu1 %vm1421_vm3, %v1420_v17 }
 0x2e3   : > { %6029 = vmatprep.subr.mxu1 %v7010_v10 }
 0x2e5   : > { %v1499_v19 = vpop.permute.xlu0 %1498  ;;  %6027 = vmatmul.mubr.msk.f32.vlgmr.msra.gmra.mrb[2].mxu1 %vm1421_vm3, %v7674_v18 }
 0x2e6   : > { %6030 = vmatpush3.xpose.msk.msra.mxu1 %vm1421_vm3, %v1499_v19  ;;  %6031 = vmatprep.mubr.msk.f32.mxu1 %vm7011_vm2, %v7010_v10 }
 0x2e7   : > { %6039 = vmatprep.subr.mxu1 %v7010_v10 }
 0x2e9   : > { %v1678_v20 = vpop.permute.xlu0 %1677  ;;  %6032 = vmatmul.mubr.msk.f32.vlgmr.msra.gmra.mrb[4].mxu1 %vm1421_vm3, %v7667_v16 }
 0x2ea   : > { %6040 = vmatpush3.msra.mxu1 %v1678_v20  ;;  %6041 = vmatprep.mubr.msk.f32.mxu1 %vm7011_vm2, %v7010_v10 }
 0x2eb   : > { %6049 = vmatprep.subr.mxu1 %v7010_v10 }
 0x2ed   : > { %v1832_v31 = vpop.permute.xlu0 %1831 }
 0x3b8   : > { %v1493_v23 = vpop.f32.mrb[2].mxu1 }
 0x3b9   : > { %v1577_v24 = vsel %vm1575_vm4, %v1493_v23, -1e+09  ;;  %v6028_v25 = vpop.f32.mrb[3].mxu1 }
 0x3ba   : > { %v1579_v26 = vsel %vm1421_vm3, %v1577_v24, -inf }
 0x3bb   : > { %1580 = vmax.xlane.f32.xlu0 %v1579_v26 }
 0x3bc   : > { %v1571_v27 = vpop.f32.mrb[4].mxu1 }
 0x3bd   : > { %v1578_v28 = vsel %vm1576_vm5, %v1571_v27, -1e+09  ;;  %v6033_v29 = vpop.f32.mrb[5].mxu1 }
 0x3be   : > { %v1582_v30 = vsel %vm1421_vm3, %v1578_v28, -inf  ;;  %v1413_v29 = vld [vmem:[%s7595_s28 + $0x8] sm:$0xff] }
 0x3bf   : > { %1583 = vmax.xlane.f32.xlu1 %v1582_v30  ;;  %v1412_v30 = vld [vmem:[%s7595_s28] sm:$0xff] }
 0x3d1   : > { %1601 = vrot.lane.b32.xlu0 %v7656_v14, %s7013_s21  ;;  %s7021_s21 = smov 104  }
 0x3d5   : > { %1753 = vrot.lane.b32.xlu0 %v7674_v18, %s7014_s23 }
 0x448   : > { %v1581_v32 = vpop.xlane.xlu0 %1580 }
 0x449   : > { %v1585_v39 = vsub.f32 %v1577_v24, %v1581_v32 }
 0x44b   : > { %v1587_v40 = vmul.f32 1.442695, %v1585_v39 }
 0x44c   : > { %v1602_v33 = vpop.permute.xlu0 %1601  ;;  %v1584_v34 = vpop.xlane.xlu1 %1583 }
 0x44d   : > { %v1586_v35 = vsub.f32 %v1578_v28, %v1584_v34  ;;  %6035 = vmatpush3.msra.mxu0 %v1602_v33 }
 0x44e   : > { %6044 = vmatprep.subr.mxu0 %v7010_v10 }
 0x44f   : > { %v1589_v36 = vmul.f32 1.442695, %v1586_v35 }
 0x450   : > { %v1754_v51 = vpop.permute.xlu0 %1753 }
 0x451   : > { %6479 = vpow2.f32 %v1589_v36 }
 0x452   : > { %6481 = vpow2.f32 %v1587_v40 }
 0x45b   : > { %v6480_v37 = vpop.eup %6479 }
 0x45c   : > { %v1594_v38 = vsel %vm1421_vm3, %v6480_v37, 0.0  ;;  %v6482_v41 = vpop.eup %6481 }
 0x45d   : > { %1595 = vadd.xlane.f32.xlu1 %v1594_v38  ;;  %v1591_v42 = vsel %vm1421_vm3, %v6482_v41, 0.0 }
 0x46e   : > { %1833 = vrot.lane.b32.xlu1 %v7660_v15, %s7015_s11 }
 0x492   : > { %1592 = vadd.xlane.f32.xlu1 %v1591_v42 }
 0x4a3   : > { %1755 = vrot.lane.b32.xlu1 %v7656_v14, %s7015_s11 }
 0x4a7   : > { %2249 = vrot.lane.b32.xlu1 %v7656_v14, %s7016_s7 }
 0x4ea   : > { %v1596_v43 = vpop.xlane.xlu1 %1595 }
 0x4eb   : > { %6483 = vrcp.f32 %v1596_v43 }
 0x4ee   : > { %v1834_v46 = vpop.permute.xlu1 %1833 }
 0x4f5   : > { %v6484_v44 = vpop.eup %6483 }
 0x4f6   : > { %v1600_v45 = vmul.f32 %v6484_v44, %v6480_v37 }
 0x4f8   : > { %6042 = vmatmul.mubr.msk.f32.vlgmr.msra.gmra.mrb[6].mxu1 %vm1421_vm3, %v1600_v45 }
 0x4f9   : > { %6050 = vmatpush3.xpose.msk.msra.mxu1 %vm1421_vm3, %v1834_v46  ;;  %6051 = vmatprep.mubr.msk.f32.mxu1 %vm7011_vm2, %v7010_v10 }
 0x4fa   : > { %6059 = vmatprep.subr.mxu1 %v7010_v10 }
 0x4fc   : > { %6052 = vmatmul.mubr.msk.f32.vlgmr.msra.gmra.mrb[8].mxu1 %vm1421_vm3, %v1832_v31 }
 0x4fd   : > { %6061 = vmatprep.mubr.msk.f32.mxu1 %vm7011_vm2, %v7010_v10 }
 0x51f   : > { %v1593_v47 = vpop.xlane.xlu1 %1592 }
 0x520   : > { %6485 = vrcp.f32 %v1593_v47 }
 0x523   : > { %v1756_v50 = vpop.permute.xlu1 %1755 }
 0x527   : > { %v2250_v20 = vpop.permute.xlu1 %2249 }
 0x52a   : > { %v6486_v48 = vpop.eup %6485 }
 0x52b   : > { %v1599_v49 = vmul.f32 %v6486_v48, %v6482_v41 }
 0x52d   : > { %6037 = vmatmul.mubr.msk.f32.vlgmr.msra.gmra.mrb[0].mxu0 %vm1421_vm3, %v1599_v49 }
 0x52e   : > { %6045 = vmatpush3.xpose.msk.msra.mxu0 %vm1421_vm3, %v1756_v50  ;;  %6046 = vmatprep.mubr.msk.f32.mxu0 %vm7011_vm2, %v7010_v10 }
 0x52f   : > { %6054 = vmatprep.subr.mxu0 %v7010_v10 }
 0x531   : > { %6047 = vmatmul.mubr.msk.f32.vlgmr.msra.gmra.mrb[2].mxu0 %vm1421_vm3, %v1754_v51 }
 0x532   : > { %6056 = vmatprep.mubr.msk.f32.mxu0 %vm7011_vm2, %v7010_v10 }
 0x5cb   : > { %v7734_v52 = vpop.f32.mrb[6].mxu1 }
 0x5cc   : > { %v6043_v53 = vpop.f32.mrb[7].mxu1 }
 0x5cf   : > { %v1905_v54 = vpop.f32.mrb[8].mxu1 }
 0x5d0   : > { %v1910_v55 = vsel %vm1576_vm5, %v1905_v54, -1e+09  ;;  %v6053_v56 = vpop.f32.mrb[9].mxu1  ;;  %v1414_v54 = vld [vmem:[%s7595_s28 + $0x10] sm:$0xff] }
 0x5d1   : > { %v1914_v57 = vsel %vm1421_vm3, %v1910_v55, -inf }
 0x5d2   : > { %1915 = vmax.xlane.f32.xlu0 %v1914_v57 }
 0x5e8   : > { %2009 = vrot.lane.b32.xlu0 %v7660_v15, %s7017_s16 }
 0x5ec   : > { %2247 = vrot.lane.b32.xlu0 %v7674_v18, %s7018_s17 }
 0x5f0   : > { %2327 = vrot.lane.b32.xlu0 %v7660_v15, %s7016_s7 }
 0x600   : > { %v7744_v58 = vpop.f32.mrb[0].mxu0 }
 0x601   : > { %v6038_v59 = vpop.f32.mrb[1].mxu0 }
 0x604   : > { %v1827_v60 = vpop.f32.mrb[2].mxu0 }
 0x605   : > { %v6048_v61 = vpop.f32.mrb[3].mxu0  ;;  %v1909_v62 = vsel %vm1575_vm4, %v1827_v60, -1e+09 }
 0x606   : > { %v1911_v63 = vsel %vm1421_vm3, %v1909_v62, -inf }
 0x60f   : > { %1912 = vmax.xlane.f32.xlu0 %v1911_v63 }
 0x625   : > { %1933 = vrot.lane.b32.xlu0 %v7656_v14, %s7017_s16  ;;  %s8332_s16 = scalar_lea.vmem [#allocation11], %s7549_s3 }
 0x629   : > { %2427 = vrot.lane.b32.xlu0 %v7656_v14, %s7019_s5 }
 0x62d   : > { %2664 = vrot.lane.b32.xlu0 %v7656_v14, %s7020_s12 }
 0x631   : > { %2742 = vrot.lane.b32.xlu0 %v7660_v15, %s7020_s12 }
 0x635   : > { %2662 = vrot.lane.b32.xlu0 %v7674_v18, %s7021_s21 }
 0x639   : > { %2740 = vrot.lane.b32.xlu0 %v7667_v16, %s7021_s21 }
 0x65f   : > { %v1916_v0 = vpop.xlane.xlu0 %1915 }
 0x660   : > { %v1918_v1 = vsub.f32 %v1910_v55, %v1916_v0 }
 0x662   : > { %v1921_v2 = vmul.f32 1.442695, %v1918_v1 }
 0x663   : > { %v2010_v3 = vpop.permute.xlu0 %2009 }
 0x664   : > { %6487 = vpow2.f32 %v1921_v2  ;;  %6060 = vmatpush3.msra.mxu1 %v2010_v3 }
 0x665   : > { %6074 = vmatprep.subr.mxu1 %v7010_v10 }
 0x667   : > { %v2248_v6 = vpop.permute.xlu0 %2247 }
 0x66b   : > { %v2328_v8 = vpop.permute.xlu0 %2327 }
 0x66e   : > { %v6488_v4 = vpop.eup %6487 }
 0x66f   : > { %v1926_v5 = vsel %vm1421_vm3, %v6488_v4, 0.0 }
 0x670   : > { %1927 = vadd.xlane.f32.xlu1 %v1926_v5 }
 0x681   : > { %2325 = vrot.lane.b32.xlu1 %v7667_v16, %s7018_s17 }
 0x69c   : > { %v1913_v11 = vpop.xlane.xlu0 %1912 }
 0x69d   : > { %v1917_v12 = vsub.f32 %v1909_v62, %v1913_v11 }
 0x69f   : > { %v1919_v13 = vmul.f32 1.442695, %v1917_v12 }
 0x6a0   : > { %v1934_v17 = vpop.permute.xlu0 %1933 }
 0x6a1   : > { %6489 = vpow2.f32 %v1919_v13  ;;  %6055 = vmatpush3.msra.mxu0 %v1934_v17 }
 0x6a2   : > { %6064 = vmatprep.subr.mxu0 %v1413_v29 }
 0x6a4   : > { %v2428_v43 = vpop.permute.xlu0 %2427 }
 0x6ab   : > { %v6490_v18 = vpop.eup %6489 }
 0x6ac   : > { %v1923_v19 = vsel %vm1421_vm3, %v6490_v18, 0.0 }
 0x6ad   : > { %1924 = vadd.xlane.f32.xlu1 %v1923_v19 }
 0x6fd   : > { %v1928_v23 = vpop.xlane.xlu1 %1927 }
 0x6fe   : > { %6491 = vrcp.f32 %v1928_v23 }
 0x701   : > { %v2326_v16 = vpop.permute.xlu1 %2325 }
 0x708   : > { %v6492_v24 = vpop.eup %6491 }
 0x709   : > { %v1932_v25 = vmul.f32 %v6492_v24, %v6488_v4 }
 0x70b   : > { %6062 = vmatmul.mubr.msk.f32.vlgmr.msra.gmra.mrb[10].mxu1 %vm1421_vm3, %v1932_v25 }
 0x70c   : > { %6075 = vmatpush3.xpose.msk.msra.mxu1 %vm1421_vm3, %v2250_v20  ;;  %6076 = vmatprep.mubr.msk.f32.mxu1 %vm7011_vm2, %v7010_v10 }
 0x70d   : > { %6079 = vmatprep.subr.mxu1 %v7010_v10 }
 0x70f   : > { %6077 = vmatmul.mubr.msk.f32.vlgmr.msra.gmra.mrb[12].mxu1 %vm1421_vm3, %v2248_v6 }
 0x710   : > { %6080 = vmatpush3.xpose.msk.msra.mxu1 %vm1421_vm3, %v2328_v8  ;;  %6081 = vmatprep.mubr.msk.f32.mxu1 %vm7011_vm2, %v7010_v10 }
 0x711   : > { %6089 = vmatprep.subr.mxu1 %v7010_v10 }
 0x713   : > { %6082 = vmatmul.mubr.msk.f32.vlgmr.msra.gmra.mrb[14].mxu1 %vm1421_vm3, %v2326_v16 }
 0x714   : > { %6091 = vmatprep.mubr.msk.f32.mxu1 %vm7011_vm2, %v7010_v10 }
 0x73a   : > { %v1925_v26 = vpop.xlane.xlu1 %1924 }
 0x73b   : > { %6493 = vrcp.f32 %v1925_v26 }
 0x745   : > { %v6494_v27 = vpop.eup %6493 }
 0x746   : > { %v1931_v28 = vmul.f32 %v6494_v27, %v6490_v18 }
 0x748   : > { %6057 = vmatmul.mubr.msk.f32.vlgmr.msra.gmra.mrb[4].mxu0 %vm1421_vm3, %v1931_v28 }
 0x749   : > { %6065 = vmatpush3.msra.mxu0 %v1413_v29 }
 0x74a   : > { %6069 = vmatprep.subr.mxu0 %v1412_v30 }
 0x7de   : > { %v2081_v31 = vpop.f32.mrb[10].mxu1 }
 0x7df   : > { %v6063_v32 = vpop.f32.mrb[11].mxu1 }
 0x7e2   : > { %v2321_v33 = vpop.f32.mrb[12].mxu1 }
 0x7e3   : > { %v2403_v34 = vsel %vm1575_vm4, %v2321_v33, -1e+09  ;;  %v6078_v35 = vpop.f32.mrb[13].mxu1  ;;  %v1415_v33 = vld [vmem:[%s7595_s28 + $0x18] sm:$0xff]  ;;  %s8330_s28 = scalar_lea.vmem [#allocation9], %s7549_s3 }
 0x7e4   : > { %v2405_v36 = vsel %vm1421_vm3, %v2403_v34, -inf }
 0x7e5   : > { %2406 = vmax.xlane.f32.xlu1 %v2405_v36 }
 0x7e6   : > { %v2399_v37 = vpop.f32.mrb[14].mxu1 }
 0x7e7   : > { %v2404_v38 = vsel %vm1576_vm5, %v2399_v37, -1e+09  ;;  %v6083_v39 = vpop.f32.mrb[15].mxu1 }
 0x7e8   : > { %v2408_v40 = vsel %vm1421_vm3, %v2404_v38, -inf }
 0x7e9   : > { %2409 = vmax.xlane.f32.xlu1 %v2408_v40 }
 0x81b   : > { %v2005_v41 = vpop.f32.mrb[4].mxu0 }
 0x81c   : > { %v6058_v42 = vpop.f32.mrb[5].mxu0  ;;  %6066 = vmatprep.mubr.msk.f32.mxu0 %vm1421_vm3, %v2005_v41 }
 0x81d   : > { %6067 = vmatmul.mubr.msk.f32.vlgmr.msra.gmra.mrb[6].mxu0 %vm1421_vm3, %v2081_v31 }
 0x81e   : > { %6071 = vmatprep.mubr.msk.f32.mxu0 %vm1421_vm3, %v7744_v58  ;;  %6070 = vmatpush3.msra.mxu0 %v1412_v30  ;;  %v2665_v58 = vpop.permute.xlu0 %2664 }
 0x81f   : > { %6084 = vmatprep.subr.mxu0 %v7010_v10 }
 0x822   : > { %v2743_v62 = vpop.permute.xlu0 %2742 }
 0x825   : > { %6072 = vmatmul.mubr.msk.f32.vlgmr.msra.gmra.mrb[6].mxu0 %vm1421_vm3, %v7734_v52 }
 0x826   : > { %6085 = vmatpush3.msra.mxu0 %v2428_v43  ;;  %6086 = vmatprep.mubr.msk.f32.mxu0 %vm7011_vm2, %v7010_v10  ;;  %v2663_v0 = vpop.permute.xlu0 %2662 }
 0x827   : > { %6094 = vmatprep.subr.mxu0 %v1414_v54 }
 0x82a   : > { %v2741_v5 = vpop.permute.xlu0 %2740 }
 0x872   : > { %v2407_v44 = vpop.xlane.xlu1 %2406 }
 0x873   : > { %v2411_v45 = vsub.f32 %v2403_v34, %v2407_v44 }
 0x875   : > { %v2413_v46 = vmul.f32 1.442695, %v2411_v45 }
 0x876   : > { %v2410_v47 = vpop.xlane.xlu1 %2409 }
 0x877   : > { %6495 = vpow2.f32 %v2413_v46  ;;  %v2412_v48 = vsub.f32 %v2404_v38, %v2410_v47 }
 0x879   : > { %v2415_v49 = vmul.f32 1.442695, %v2412_v48 }
 0x87b   : > { %6497 = vpow2.f32 %v2415_v49 }
 0x881   : > { %v6496_v50 = vpop.eup %6495 }
 0x882   : > { %v2417_v51 = vsel %vm1421_vm3, %v6496_v50, 0.0 }
 0x883   : > { %2418 = vadd.xlane.f32.xlu1 %v2417_v51 }
 0x885   : > { %v6498_v53 = vpop.eup %6497 }
 0x886   : > { %v2420_v52 = vsel %vm1421_vm3, %v6498_v53, 0.0 }
 0x887   : > { %2421 = vadd.xlane.f32.xlu1 %v2420_v52 }
 0x898   : > { %2503 = vrot.lane.b32.xlu1 %v7660_v15, %s7019_s5 }
 0x910   : > { %v2419_v55 = vpop.xlane.xlu1 %2418 }
 0x911   : > { %6499 = vrcp.f32 %v2419_v55 }
 0x914   : > { %v2422_v56 = vpop.xlane.xlu1 %2421 }
 0x915   : > { %6501 = vrcp.f32 %v2422_v56 }
 0x918   : > { %v2504_v57 = vpop.permute.xlu1 %2503 }
 0x919   : > { %6090 = vmatpush3.msra.mxu1 %v2504_v57  ;;  %v3225_v57 = vld [vmem:[%s7605_s13] sm:$0xff] }
 0x91a   : > { %6099 = vmatprep.subr.mxu1 %v7010_v10 }
 0x91b   : > { %v6500_v59 = vpop.eup %6499 }
 0x91c   : > { %v2425_v60 = vmul.f32 %v6500_v59, %v6496_v50 }
 0x91e   : > { %6087 = vmatmul.mubr.msk.f32.vlgmr.msra.gmra.mrb[8].mxu0 %vm1421_vm3, %v2425_v60  ;;  %v3133_v60 = vld [vmem:[%s7600_s2] sm:$0xff] }
 0x91f   : > { %v6502_v61 = vpop.eup %6501  ;;  %6095 = vmatpush3.msra.mxu0 %v1414_v54 }
 0x920   : > { %v2426_v63 = vmul.f32 %v6502_v61, %v6498_v53  ;;  %6104 = vmatprep.subr.mxu0 %v7010_v10  ;;  %v3134_v61 = vld [vmem:[%s7600_s2 + $0x8] sm:$0xff] }
 0x922   : > { %6092 = vmatmul.mubr.msk.f32.vlgmr.msra.gmra.mrb[16].mxu1 %vm1421_vm3, %v2426_v63  ;;  %v3227_v63 = vld [vmem:[%s7605_s13 + $0x10] sm:$0xff] }
 0x923   : > { %6100 = vmatpush3.xpose.msk.msra.mxu1 %vm1421_vm3, %v2665_v58  ;;  %6101 = vmatprep.mubr.msk.f32.mxu1 %vm7011_vm2, %v7010_v10  ;;  %v3226_v58 = vld [vmem:[%s7605_s13 + $0x8] sm:$0xff] }
 0x924   : > { %6109 = vmatprep.subr.mxu1 %v7010_v10  ;;  %v6303_v59 = vpack.c.bf16 %v3226_v58, %v3225_v57 }
 0x926   : > { %6102 = vmatmul.mubr.msk.f32.vlgmr.msra.gmra.mrb[18].mxu1 %vm1421_vm3, %v2663_v0  ;;  %v3228_v0 = vld [vmem:[%s7605_s13 + $0x18] sm:$0xff] }
 0x927   : > { %6111 = vmatprep.mubr.msk.f32.mxu1 %vm7011_vm2, %v7010_v10 }
 0x9f1   : > { %v2499_v1 = vpop.f32.mrb[8].mxu0 }
 0x9f2   : > { %v6088_v2 = vpop.f32.mrb[9].mxu0  ;;  %6096 = vmatprep.mubr.msk.f32.mxu0 %vm1421_vm3, %v2499_v1  ;;  %v3135_v1 = vld [vmem:[%s7600_s2 + $0x10] sm:$0xff] }
 0x9f3   : > { %v6307_v2 = vpack.c.bf16 %v3228_v0, %v3227_v63 }
 0x9f5   : > { %v2575_v3 = vpop.f32.mrb[16].mxu1 }
 0x9f6   : > { %v6093_v4 = vpop.f32.mrb[17].mxu1  ;;  %6097 = vmatmul.mubr.msk.f32.vlgmr.msra.gmra.mrb[6].mxu0 %vm1421_vm3, %v2575_v3  ;;  %v3136_v3 = vld [vmem:[%s7600_s2 + $0x18] sm:$0xff]  ;;  %s8333_s2 = sld [smem:[#allocation38_spill]] }
 0x9f7   : > { %6105 = vmatpush3.xpose.msk.msra.mxu0 %vm1421_vm3, %v2743_v62  ;;  %6106 = vmatprep.mubr.msk.f32.mxu0 %vm7011_vm2, %v7010_v10  ;;  %v6295_v62 = vpack.c.bf16 %v3134_v61, %v3133_v60  ;;  %v1315_v4 = vld [vmem:[%s8327_s10] sm:$0xff] }
 0x9f8   : > { %6114 = vmatprep.subr.mxu0 %v7010_v10 }
 0x9f9   : > { %v2736_v6 = vpop.f32.mrb[18].mxu1 }
 0x9fa   : > { %v2818_v8 = vsel %vm1575_vm4, %v2736_v6, -1e+09  ;;  %v6103_v11 = vpop.f32.mrb[19].mxu1  ;;  %6107 = vmatmul.mubr.msk.f32.vlgmr.msra.gmra.mrb[10].mxu0 %vm1421_vm3, %v2741_v5  ;;  %v6299_v5 = vpack.c.bf16 %v3136_v3, %v3135_v1  ;;  %v1316_v6 = vld [vmem:[%s8327_s10 + $0x8] sm:$0xff] }
 0x9fb   : > { %v2820_v12 = vsel %vm1421_vm3, %v2818_v8, -inf  ;;  %6116 = vmatprep.mubr.msk.f32.mxu0 %vm7011_vm2, %v7010_v10 }
 0x9fc   : > { %2821 = vmax.xlane.f32.xlu1 %v2820_v12 }
 0xa89   : > { %v2822_v13 = vpop.xlane.xlu1 %2821 }
 0xa8a   : > { %v2826_v17 = vsub.f32 %v2818_v8, %v2822_v13 }
 0xa8c   : > { %v2828_v18 = vmul.f32 1.442695, %v2826_v17 }
 0xa8e   : > { %6503 = vpow2.f32 %v2828_v18 }
 0xa98   : > { %v6504_v24 = vpop.eup %6503 }
 0xa99   : > { %v2832_v25 = vsel %vm1421_vm3, %v6504_v24, 0.0 }
 0xacd   : > { %v2814_v19 = vpop.f32.mrb[10].mxu0 }
 0xace   : > { %v2819_v20 = vsel %vm1576_vm5, %v2814_v19, -1e+09  ;;  %v6108_v23 = vpop.f32.mrb[11].mxu0 }
 0xacf   : > { %v2823_v21 = vsel %vm1421_vm3, %v2819_v20, -inf }
 0xad0   : > { %2824 = vmax.xlane.f32.xlu0 %v2823_v21 }
 0xad4   : > { %2833 = vadd.xlane.f32.xlu0 %v2832_v25 }
 0xaea   : > { %2842 = vrot.lane.b32.xlu0 %v7656_v14, %s7022_s30 }
 0xb5d   : > { %v2825_v16 = vpop.xlane.xlu0 %2824 }
 0xb5e   : > { %v2827_v26 = vsub.f32 %v2819_v20, %v2825_v16  ;;  %v5818_v16 = vld [vmem:[%s8330_s28] ss:$0 sm:$0xff] }
 0xb60   : > { %v2830_v27 = vmul.f32 1.442695, %v2827_v26 }
 0xb61   : > { %v2834_v28 = vpop.xlane.xlu0 %2833 }
 0xb62   : > { %6505 = vpow2.f32 %v2830_v27 }
 0xb63   : > { %6507 = vrcp.f32 %v2834_v28 }
 0xb65   : > { %v2843_v22 = vpop.permute.xlu0 %2842 }
 0xb66   : > { %6110 = vmatpush3.msra.mxu1 %v2843_v22  ;;  %v5822_v22 = vld [vmem:[%s8331_s19] ss:$0 sm:$0xff] }
 0xb67   : > { %6296 = vmatprep.subr.bf16.mxu1 %v6295_v62 }
 0xb6c   : > { %v6506_v29 = vpop.eup %6505 }
 0xb6d   : > { %v6508_v30 = vpop.eup %6507  ;;  %v2835_v31 = vsel %vm1421_vm3, %v6506_v29, 0.0 }
 0xb6e   : > { %v2840_v32 = vmul.f32 %v6508_v30, %v6504_v24  ;;  %2836 = vadd.xlane.f32.xlu1 %v2835_v31 }
 0xb70   : > { %6112 = vmatmul.mubr.msk.f32.vlgmr.msra.gmra.mrb[20].mxu1 %vm1421_vm3, %v2840_v32 }
 0xb71   : > { %6298 = vmatpush3.bf16.msra.mxu1 %v6295_v62 }
 0xb72   : > { %6300 = vmatprep.subr.bf16.mxu1 %v6299_v5 }
 0xb75   : > { %6302 = vmatpush3.bf16.msra.mxu1 %v6299_v5 }
 0xb76   : > { %6146 = vmatprep.subr.mxu1 %v7010_v10 }
 0xb7f   : > { %2918 = vrot.lane.b32.xlu1 %v7660_v15, %s7022_s30  ;;  %v5816_v15 = vld [vmem:[%s8326_s29] ss:$0 sm:$0xff]  ;;  %s8328_s30 = sld [smem:[#allocation45_spill]] }
 0xb85   : > { %s8329_s29 = scalar_lea.vmem %s8328_s30, %s7582_s8  ;;  %s8340_s8 = sld [smem:[#allocation39_spill]] (!%p5868_p2) }
 0xb86   : > { %v5817_v20 = vld [vmem:[%s8329_s29] ss:$0 sm:$0xff] }
 0xb8b   : > { %s8341_s19 = smov (!%p5868_p2), %s8340_s8 }
 0xbfb   : > { %v2837_v14 = vpop.xlane.xlu1 %2836 }
 0xbfc   : > { %6509 = vrcp.f32 %v2837_v14  ;;  %v5819_v14 = vld [vmem:[%s8332_s16] ss:$0 sm:$0xff] }
 0xbff   : > { %v2919_v34 = vpop.permute.xlu1 %2918 }
 0xc00   : > { %6115 = vmatpush3.msra.mxu0 %v2919_v34 }
 0xc01   : > { %6119 = vmatprep.subr.mxu0 %v1415_v33 }
 0xc06   : > { %v6510_v35 = vpop.eup %6509 }
 0xc07   : > { %v2841_v36 = vmul.f32 %v6510_v35, %v6506_v29 }
 0xc09   : > { %6117 = vmatmul.mubr.msk.f32.vlgmr.msra.gmra.mrb[12].mxu0 %vm1421_vm3, %v2841_v36 }
 0xc0a   : > { %6120 = vmatpush3.msra.mxu0 %v1415_v33 }
 0xc0b   : > { %6304 = vmatprep.subr.bf16.mxu0 %v6303_v59 }
 0xc43   : > { %v2914_v37 = vpop.f32.mrb[20].mxu1 }
 0xc44   : > { %v6113_v38 = vpop.f32.mrb[21].mxu1  ;;  %6121 = vmatprep.mubr.msk.f32.mxu0 %vm1421_vm3, %v2914_v37 }
 0xcdc   : > { %v2990_v39 = vpop.f32.mrb[12].mxu0 }
 0xcdd   : > { %v6118_v40 = vpop.f32.mrb[13].mxu0  ;;  %6122 = vmatmul.mubr.msk.f32.vlgmr.msra.gmra.mrb[6].mxu0 %vm1421_vm3, %v2990_v39  ;;  %v7912_v39 = vld [vmem:[%s8333_s2 + $0x8] sm:$0xff] }
 0xcde   : > { %6306 = vmatpush3.bf16.msra.mxu0 %v6303_v59  ;;  %6143 = vmatprep.mubr.msk.f32.mxu0 %vm1328_vm1, %v1315_v4  ;;  %vm3478_vm6 = vcmp.gt.s32.totalorder %v7912_v39, 0 }
 0xcdf   : > { %6308 = vmatprep.subr.bf16.mxu0 %v6307_v2 }
 0xce2   : > { %6310 = vmatpush3.bf16.msra.mxu0 %v6307_v2 }
 0xce3   : > { %6156 = vmatprep.subr.mxu0 %v7010_v10 }
 0xce5   : > { %6144 = vmatmul.mubr.msk.f32.vlgmr.msra.gmra.mrb[14].mxu0 %vm1328_vm1, %v1316_v6 }
 0xce6   : > { %6158 = vmatprep.mubr.msk.f32.mxu0 %vm7011_vm2, %v7010_v10 }
 0xdb0   : > { %v6123_v41 = vpop.f32.mrb[6].mxu0 }
 0xdb1   : > { %v3085_v42 = vadd.f32 %v6123_v41, %v5816_v15  ;;  %v3066_v43 = vpop.f32.mrb[7].mxu0 }
 0xdb2   : > { %v3084_v44 = vadd.f32 %v5816_v15, %v3066_v43 }
 0xdb3   : > { %v3087_v45 = vadd.f32 %v3085_v42, %v7644_v9 }
 0xdb4   : > { %v3086_v46 = vadd.f32 %v3084_v44, %v7640_v7 }
 0xdb5   : > { %v3091_v47 = vsel %vm1328_vm1, %v3087_v45, 0.0 }
 0xdb6   : > { %3092 = vadd.xlane.f32.xlu0 %v3091_v47  ;;  %v3088_v48 = vsel %vm1328_vm1, %v3086_v46, 0.0 }
 0xdb7   : > { %3089 = vadd.xlane.f32.xlu1 %v3088_v48 }
 0xdb8   : > { %v6145_v29 = vpop.f32.mrb[14].mxu0 }
 0xdb9   : > { %v7883_v30 = vadd.f32 %v6145_v29, %v5822_v22  ;;  %v3308_v31 = vpop.f32.mrb[15].mxu0 }
 0xdba   : > { %v7885_v32 = vadd.f32 %v5822_v22, %v3308_v31 }
 0xe43   : > { %v3093_v49 = vpop.xlane.xlu0 %3092 }
 0xe44   : > { %v3096_v50 = vmul.f32 0.03125, %v3093_v49  ;;  %v3090_v51 = vpop.xlane.xlu1 %3089 }
 0xe45   : > { %v3095_v53 = vmul.f32 0.03125, %v3090_v51 }
 0xe46   : > { %v3098_v52 = vsub.f32 %v3087_v45, %v3096_v50  ;;  %v7923_v45 = vld [vmem:[%s8333_s2] sm:$0xff] }
 0xe47   : > { %v3097_v54 = vsub.f32 %v3086_v46, %v3095_v53  ;;  %vm3477_vm7 = vcmp.gt.s32.totalorder %v7923_v45, 0 }
 0xe48   : > { %v3100_v9 = vmul.f32 %v3098_v52, %v3098_v52 }
 0xe49   : > { %v3099_v7 = vmul.f32 %v3097_v54, %v3097_v54 }
 0xe4a   : > { %v3104_v55 = vsel %vm1328_vm1, %v3100_v9, 0.0 }
 0xe4b   : > { %3105 = vadd.xlane.f32.xlu1 %v3104_v55  ;;  %v3101_v56 = vsel %vm1328_vm1, %v3099_v7, 0.0 }
 0xe4c   : > { %3102 = vadd.xlane.f32.xlu0 %v3101_v56 }
 0xe5c   : > { %3737 = vrot.lane.b32.xlu1 %v7883_v30, %s7014_s23 }
 0xed8   : > { %v3106_v8 = vpop.xlane.xlu1 %3105 }
 0xed9   : > { %v3108_v11 = vmul.f32 0.03125, %v3106_v8  ;;  %v3103_v12 = vpop.xlane.xlu0 %3102 }
 0xeda   : > { %v3107_v13 = vmul.f32 0.03125, %v3103_v12 }
 0xedb   : > { %v3110_v17 = vadd.f32 1e-05, %v3108_v11 }
 0xedc   : > { %v3109_v18 = vadd.f32 1e-05, %v3107_v13  ;;  %v3738_v58 = vpop.permute.xlu1 %3737 }
 0xedd   : > { %6511 = vrsqrt.f32 %v3110_v17 }
 0xede   : > { %6513 = vrsqrt.f32 %v3109_v18 }
 0xee7   : > { %v6512_v19 = vpop.eup %6511 }
 0xee8   : > { %v6514_v23 = vpop.eup %6513  ;;  %v3114_v21 = vmul.f32 %v6512_v19, %v3098_v52 }
 0xee9   : > { %v3113_v24 = vmul.f32 %v6514_v23, %v3097_v54 }
 0xeea   : > { %v3123_v25 = vmul.f32 %v5817_v20, %v3114_v21 }
 0xeeb   : > { %v3122_v26 = vmul.f32 %v5817_v20, %v3113_v24 }
 0xeec   : > { %v7873_v28 = vadd.f32 %v5818_v16, %v3123_v25 }
 0xeed   : > { %v7871_v27 = vadd.f32 %v5818_v16, %v3122_v26 }
 0xeef   : > { %6132 = vmatprep.mubr.msk.f32.mxu1 %vm1328_vm1, %v7871_v27 }
 0xef0   : > { %6133 = vmatmul.mubr.msk.f32.vlgmr.msra.gmra.mrb[22].mxu1 %vm1328_vm1, %v7873_v28 }
 0xef1   : > { %6148 = vmatprep.mubr.msk.f32.mxu1 %vm7011_vm2, %v7010_v10  ;;  %6147 = vmatpush3.xpose.msk.msra.mxu1 %vm1421_vm3, %v7885_v32 }
 0xef2   : > { %6151 = vmatprep.subr.mxu1 %v7010_v10 }
 0xfc3   : > { %v6134_v33 = vpop.f32.mrb[22].mxu1 }
 0xfc4   : > { %v3216_v34 = vpop.f32.mrb[23].mxu1  ;;  %v3222_v36 = vadd.f32 %v6134_v33, %v5819_v14 }
 0xfc5   : > { %v3217_v35 = vadd.f32 %v5819_v14, %v3216_v34 }
 0xfc6   : > { %v7902_v38 = vmul.f32 0.35355338, %v3222_v36 }
 0xfc7   : > { %v7894_v37 = vmul.f32 0.35355338, %v3217_v35 }
 0xfc9   : > { %6149 = vmatmul.mubr.msk.f32.vlgmr.msra.gmra.mrb[24].mxu1 %vm1421_vm3, %v7894_v37 }
 0xfca   : > { %6152 = vmatpush3.xpose.msk.msra.mxu1 %vm1421_vm3, %v7883_v30  ;;  %6153 = vmatprep.mubr.msk.f32.mxu1 %vm7011_vm2, %v7010_v10 }
 0xfcb   : > { %6161 = vmatprep.subr.mxu1 %v7010_v10 }
 0xfcd   : > { %6154 = vmatmul.mubr.msk.f32.vlgmr.msra.gmra.mrb[26].mxu1 %vm1421_vm3, %v7902_v38 }
 0xfce   : > { %6163 = vmatprep.mubr.msk.f32.mxu1 %vm7011_vm2, %v7010_v10 }
0x109c   : > { %v3397_v40 = vpop.f32.mrb[24].mxu1 }
0x109d   : > { %v6150_v15 = vpop.f32.mrb[25].mxu1  ;;  %v3479_v46 = vsel %vm3477_vm7, %v3397_v40, -1e+09 }
0x109e   : > { %v3481_v47 = vsel %vm1421_vm3, %v3479_v46, -inf }
0x10a0   : > { %v3473_v41 = vpop.f32.mrb[26].mxu1 }
0x10a1   : > { %v3480_v42 = vsel %vm3478_vm6, %v3473_v41, -1e+09  ;;  %v6155_v43 = vpop.f32.mrb[27].mxu1 }
0x10a2   : > { %v3484_v44 = vsel %vm1421_vm3, %v3480_v42, -inf }
0x10a3   : > { %3485 = vmax.xlane.f32.xlu0 %v3484_v44 }
0x10b9   : > { %3581 = vrot.lane.b32.xlu0 %v7883_v30, %s7012_s14 }
0x10d8   : > { %3482 = vmax.xlane.f32.xlu0 %v3481_v47 }
0x10ee   : > { %3505 = vrot.lane.b32.xlu0 %v7885_v32, %s7012_s14  ;;  %s8334_s14 = scalar_lea.vmem [#allocation14], %s7549_s3 }
0x10f2   : > { %3657 = vrot.lane.b32.xlu0 %v7894_v37, %s7014_s23 }
0x1130   : > { %v3486_v48 = vpop.xlane.xlu0 %3485 }
0x1131   : > { %v3488_v49 = vsub.f32 %v3480_v42, %v3486_v48 }
0x1133   : > { %v3491_v50 = vmul.f32 1.442695, %v3488_v49 }
0x1134   : > { %v3582_v51 = vpop.permute.xlu0 %3581 }
0x1135   : > { %6515 = vpow2.f32 %v3491_v50  ;;  %6162 = vmatpush3.msra.mxu1 %v3582_v51 }
0x1136   : > { %6171 = vmatprep.subr.mxu1 %v7010_v10 }
0x113f   : > { %v6516_v53 = vpop.eup %6515 }
0x1140   : > { %v3496_v52 = vsel %vm1421_vm3, %v6516_v53, 0.0 }
0x1141   : > { %3497 = vadd.xlane.f32.xlu1 %v3496_v52 }
0x1152   : > { %3735 = vrot.lane.b32.xlu1 %v7902_v38, %s7014_s23 }
0x1165   : > { %v3483_v54 = vpop.xlane.xlu0 %3482 }
0x1166   : > { %v3487_v9 = vsub.f32 %v3479_v46, %v3483_v54 }
0x1168   : > { %v3489_v7 = vmul.f32 1.442695, %v3487_v9 }
0x1169   : > { %v3506_v55 = vpop.permute.xlu0 %3505 }
0x116a   : > { %6517 = vpow2.f32 %v3489_v7  ;;  %6157 = vmatpush3.msra.mxu0 %v3506_v55  ;;  %v3320_v55 = vld [vmem:[%s7610_s20 + $0x8] sm:$0xff] }
0x116b   : > { %6166 = vmatprep.subr.mxu0 %v7010_v10 }
0x116d   : > { %v3658_v3 = vpop.permute.xlu0 %3657 }
0x1174   : > { %v6518_v56 = vpop.eup %6517 }
0x1175   : > { %v3493_v57 = vsel %vm1421_vm3, %v6518_v56, 0.0 }
0x1176   : > { %3494 = vadd.xlane.f32.xlu1 %v3493_v57 }
0x1187   : > { %3659 = vrot.lane.b32.xlu1 %v7885_v32, %s7014_s23 }
0x11ce   : > { %v3498_v59 = vpop.xlane.xlu1 %3497 }
0x11cf   : > { %6519 = vrcp.f32 %v3498_v59 }
0x11d2   : > { %v3736_v62 = vpop.permute.xlu1 %3735 }
0x11d9   : > { %v6520_v60 = vpop.eup %6519 }
0x11da   : > { %v3502_v61 = vmul.f32 %v6520_v60, %v6516_v53 }
0x11dc   : > { %3504 = vst.msk [vmem:[#allocation22 + $0x20] sm:$0xff] %vm1421_vm3, %v3502_v61  ;;  %6164 = vmatmul.mubr.msk.f32.vlgmr.msra.gmra.mrb[28].mxu1 %vm1421_vm3, %v3502_v61 }
0x11dd   : > { %6172 = vmatpush3.xpose.msk.msra.mxu1 %vm1421_vm3, %v3738_v58  ;;  %6173 = vmatprep.mubr.msk.f32.mxu1 %vm7011_vm2, %v7010_v10 }
0x11de   : > { %6181 = vmatprep.subr.mxu1 %v7010_v10 }
0x11e0   : > { %6174 = vmatmul.mubr.msk.f32.vlgmr.msra.gmra.mrb[30].mxu1 %vm1421_vm3, %v3736_v62 }
0x11e1   : > { %6183 = vmatprep.mubr.msk.f32.mxu1 %vm7011_vm2, %v7010_v10 }
0x1203   : > { %v3495_v63 = vpop.xlane.xlu1 %3494 }
0x1204   : > { %6521 = vrcp.f32 %v3495_v63 }
0x1207   : > { %v3660_v2 = vpop.permute.xlu1 %3659 }
0x120e   : > { %v6522_v0 = vpop.eup %6521 }
0x120f   : > { %v3501_v1 = vmul.f32 %v6522_v0, %v6518_v56  ;;  %v3319_v56 = vld [vmem:[%s7610_s20] sm:$0xff] }
0x1211   : > { %3503 = vst.msk [vmem:[#allocation22] sm:$0xff] %vm1421_vm3, %v3501_v1  ;;  %6159 = vmatmul.mubr.msk.f32.vlgmr.msra.gmra.mrb[16].mxu0 %vm1421_vm3, %v3501_v1 }
0x1212   : > { %6167 = vmatpush3.xpose.msk.msra.mxu0 %vm1421_vm3, %v3660_v2  ;;  %6168 = vmatprep.mubr.msk.f32.mxu0 %vm7011_vm2, %v7010_v10 }
0x1213   : > { %6176 = vmatprep.subr.mxu0 %v7010_v10 }
0x1215   : > { %6169 = vmatmul.mubr.msk.f32.vlgmr.msra.gmra.mrb[18].mxu0 %vm1421_vm3, %v3658_v3 }
0x1216   : > { %6178 = vmatprep.mubr.msk.f32.mxu0 %vm7011_vm2, %v7010_v10 }
0x12af   : > { %v7959_v4 = vpop.f32.mrb[28].mxu1 }
0x12b0   : > { %v6165_v5 = vpop.f32.mrb[29].mxu1 }
0x12b3   : > { %v3809_v6 = vpop.f32.mrb[30].mxu1 }
0x12b4   : > { %v3814_v8 = vsel %vm3478_vm6, %v3809_v6, -1e+09  ;;  %v6175_v11 = vpop.f32.mrb[31].mxu1  ;;  %v3321_v6 = vld [vmem:[%s7610_s20 + $0x10] sm:$0xff] }
0x12b5   : > { %v3818_v12 = vsel %vm1421_vm3, %v3814_v8, -inf }
0x12b6   : > { %3819 = vmax.xlane.f32.xlu1 %v3818_v12 }
0x12c7   : > { %4156 = vrot.lane.b32.xlu1 %v7885_v32, %s7018_s17 }
0x12cb   : > { %4154 = vrot.lane.b32.xlu1 %v7894_v37, %s7018_s17 }
0x12cf   : > { %4232 = vrot.lane.b32.xlu1 %v7902_v38, %s7018_s17 }
0x12e4   : > { %v7970_v13 = vpop.f32.mrb[16].mxu0 }
0x12e5   : > { %v6160_v17 = vpop.f32.mrb[17].mxu0 }
0x12e8   : > { %v3731_v18 = vpop.f32.mrb[18].mxu0 }
0x12e9   : > { %v6170_v19 = vpop.f32.mrb[19].mxu0  ;;  %v3813_v16 = vsel %vm3477_vm7, %v3731_v18, -1e+09 }
0x12ea   : > { %v3815_v26 = vsel %vm1421_vm3, %v3813_v16, -inf }
0x1343   : > { %v3820_v20 = vpop.xlane.xlu1 %3819 }
0x1344   : > { %v3822_v23 = vsub.f32 %v3814_v8, %v3820_v20 }
0x1346   : > { %v3825_v21 = vmul.f32 1.442695, %v3822_v23 }
0x1347   : > { %v4157_v31 = vpop.permute.xlu1 %4156 }
0x1348   : > { %6523 = vpow2.f32 %v3825_v21 }
0x134b   : > { %v4155_v34 = vpop.permute.xlu1 %4154 }
0x134f   : > { %v4233_v36 = vpop.permute.xlu1 %4232 }
0x1352   : > { %v6524_v24 = vpop.eup %6523 }
0x1353   : > { %v3830_v25 = vsel %vm1421_vm3, %v6524_v24, 0.0 }
0x1354   : > { %3831 = vadd.xlane.f32.xlu0 %v3830_v25 }
0x136a   : > { %3916 = vrot.lane.b32.xlu0 %v7883_v30, %s7015_s11 }
0x136e   : > { %4234 = vrot.lane.b32.xlu0 %v7883_v30, %s7018_s17 }
0x138d   : > { %3816 = vmax.xlane.f32.xlu0 %v3815_v26 }
0x13a3   : > { %3840 = vrot.lane.b32.xlu0 %v7885_v32, %s7015_s11  ;;  %s8336_s11 = scalar_lea.vmem [#allocation15], %s7549_s3 }
0x13a7   : > { %4337 = vrot.lane.b32.xlu0 %v7885_v32, %s7016_s7 }
0x13ab   : > { %4574 = vrot.lane.b32.xlu0 %v7885_v32, %s7021_s21 }
0x13af   : > { %4652 = vrot.lane.b32.xlu0 %v7883_v30, %s7021_s21 }
0x13b3   : > { %4572 = vrot.lane.b32.xlu0 %v7894_v37, %s7021_s21 }
0x13b7   : > { %4650 = vrot.lane.b32.xlu0 %v7902_v38, %s7021_s21 }
0x13e1   : > { %v3832_v22 = vpop.xlane.xlu0 %3831 }
0x13e2   : > { %6525 = vrcp.f32 %v3832_v22 }
0x13e5   : > { %v3917_v29 = vpop.permute.xlu0 %3916 }
0x13e6   : > { %6182 = vmatpush3.msra.mxu1 %v3917_v29 }
0x13e7   : > { %6196 = vmatprep.subr.mxu1 %v7010_v10 }
0x13e9   : > { %v4235_v35 = vpop.permute.xlu0 %4234 }
0x13ec   : > { %v6526_v14 = vpop.eup %6525 }
0x13ed   : > { %v3836_v33 = vmul.f32 %v6526_v14, %v6524_v24 }
0x13ef   : > { %3839 = vst.msk [vmem:[#allocation22 + $0x28] sm:$0xff] %vm1421_vm3, %v3836_v33  ;;  %6184 = vmatmul.mubr.msk.f32.vlgmr.msra.gmra.mrb[32].mxu1 %vm1421_vm3, %v3836_v33 }
0x13f0   : > { %6197 = vmatpush3.xpose.msk.msra.mxu1 %vm1421_vm3, %v4157_v31  ;;  %6198 = vmatprep.mubr.msk.f32.mxu1 %vm7011_vm2, %v7010_v10 }
0x13f1   : > { %6201 = vmatprep.subr.mxu1 %v7010_v10 }
0x13f3   : > { %6199 = vmatmul.mubr.msk.f32.vlgmr.msra.gmra.mrb[34].mxu1 %vm1421_vm3, %v4155_v34 }
0x13f4   : > { %6202 = vmatpush3.xpose.msk.msra.mxu1 %vm1421_vm3, %v4235_v35  ;;  %6203 = vmatprep.mubr.msk.f32.mxu1 %vm7011_vm2, %v7010_v10 }
0x13f5   : > { %6211 = vmatprep.subr.mxu1 %v7010_v10 }
0x13f7   : > { %6204 = vmatmul.mubr.msk.f32.vlgmr.msra.gmra.mrb[36].mxu1 %vm1421_vm3, %v4233_v36 }
0x13f8   : > { %6213 = vmatprep.mubr.msk.f32.mxu1 %vm7011_vm2, %v7010_v10 }
0x141a   : > { %v3817_v37 = vpop.xlane.xlu0 %3816 }
0x141b   : > { %v3821_v38 = vsub.f32 %v3813_v16, %v3817_v37 }
0x141d   : > { %v3823_v40 = vmul.f32 1.442695, %v3821_v38 }
0x141e   : > { %v3841_v15 = vpop.permute.xlu0 %3840 }
0x141f   : > { %6527 = vpow2.f32 %v3823_v40  ;;  %6177 = vmatpush3.msra.mxu0 %v3841_v15 }
0x1420   : > { %6186 = vmatprep.subr.mxu0 %v3320_v55 }
0x1422   : > { %v4338_v8 = vpop.permute.xlu0 %4337 }
0x1426   : > { %v4575_v18 = vpop.permute.xlu0 %4574 }
0x1429   : > { %v6528_v41 = vpop.eup %6527 }
0x142a   : > { %v3827_v42 = vsel %vm1421_vm3, %v6528_v41, 0.0  ;;  %v4653_v20 = vpop.permute.xlu0 %4652 }
0x142b   : > { %3828 = vadd.xlane.f32.xlu1 %v3827_v42 }
0x142e   : > { %v4573_v21 = vpop.permute.xlu0 %4572 }
0x1432   : > { %v4651_v22 = vpop.permute.xlu0 %4650 }
0x14b8   : > { %v3829_v43 = vpop.xlane.xlu1 %3828 }
0x14b9   : > { %6529 = vrcp.f32 %v3829_v43 }
0x14c2   : > { %v3988_v44 = vpop.f32.mrb[32].mxu1 }
0x14c3   : > { %v6530_v46 = vpop.eup %6529  ;;  %v6185_v47 = vpop.f32.mrb[33].mxu1 }
0x14c4   : > { %v3835_v48 = vmul.f32 %v6530_v46, %v6528_v41 }
0x14c6   : > { %3838 = vst.msk [vmem:[#allocation22 + $0x8] sm:$0xff] %vm1421_vm3, %v3835_v48  ;;  %6179 = vmatmul.mubr.msk.f32.vlgmr.msra.gmra.mrb[20].mxu0 %vm1421_vm3, %v3835_v48  ;;  %v4228_v49 = vpop.f32.mrb[34].mxu1 }
0x14c7   : > { %v4310_v50 = vsel %vm3477_vm7, %v4228_v49, -1e+09  ;;  %v6200_v51 = vpop.f32.mrb[35].mxu1  ;;  %6187 = vmatpush3.msra.mxu0 %v3320_v55  ;;  %v5857_v55 = vld [vmem:[%s8334_s14] ss:$0 sm:$0xff] }
0x14c8   : > { %v4312_v53 = vsel %vm1421_vm3, %v4310_v50, -inf  ;;  %6191 = vmatprep.subr.mxu0 %v3319_v56 }
0x14c9   : > { %4313 = vmax.xlane.f32.xlu1 %v4312_v53 }
0x14ca   : > { %v4306_v52 = vpop.f32.mrb[36].mxu1 }
0x14cb   : > { %v4311_v54 = vsel %vm3478_vm6, %v4306_v52, -1e+09  ;;  %v6205_v9 = vpop.f32.mrb[37].mxu1 }
0x14cc   : > { %v4315_v7 = vsel %vm1421_vm3, %v4311_v54, -inf }
0x14cd   : > { %4316 = vmax.xlane.f32.xlu1 %v4315_v7 }
0x1556   : > { %v4314_v57 = vpop.xlane.xlu1 %4313 }
0x1557   : > { %v4318_v58 = vsub.f32 %v4310_v50, %v4314_v57  ;;  %v3322_v50 = vld [vmem:[%s7610_s20 + $0x18] sm:$0xff] }
0x1559   : > { %v4320_v59 = vmul.f32 1.442695, %v4318_v58 }
0x155a   : > { %v4317_v60 = vpop.xlane.xlu1 %4316 }
0x155b   : > { %6531 = vpow2.f32 %v4320_v59  ;;  %v4319_v61 = vsub.f32 %v4311_v54, %v4317_v60 }
0x155d   : > { %v4322_v62 = vmul.f32 1.442695, %v4319_v61 }
0x155f   : > { %6533 = vpow2.f32 %v4322_v62 }
0x1565   : > { %v6532_v63 = vpop.eup %6531 }
0x1566   : > { %v4324_v0 = vsel %vm1421_vm3, %v6532_v63, 0.0 }
0x1567   : > { %4325 = vadd.xlane.f32.xlu1 %v4324_v0 }
0x1569   : > { %v6534_v1 = vpop.eup %6533 }
0x156a   : > { %v4327_v2 = vsel %vm1421_vm3, %v6534_v1, 0.0 }
0x156b   : > { %4328 = vadd.xlane.f32.xlu1 %v4327_v2 }
0x157c   : > { %4413 = vrot.lane.b32.xlu1 %v7883_v30, %s7016_s7  ;;  %s8338_s7 = scalar_lea.vmem [#allocation18], %s7549_s3 }
0x1599   : > { %v3912_v3 = vpop.f32.mrb[20].mxu0 }
0x159a   : > { %v6180_v5 = vpop.f32.mrb[21].mxu0  ;;  %6188 = vmatprep.mubr.msk.f32.mxu0 %vm1421_vm3, %v3912_v3 }
0x159b   : > { %6189 = vmatmul.mubr.msk.f32.vlgmr.msra.gmra.mrb[22].mxu0 %vm1421_vm3, %v3988_v44 }
0x159c   : > { %6193 = vmatprep.mubr.msk.f32.mxu0 %vm1421_vm3, %v7970_v13  ;;  %6192 = vmatpush3.msra.mxu0 %v3319_v56 }
0x159d   : > { %6206 = vmatprep.subr.mxu0 %v7010_v10 }
0x15a3   : > { %6194 = vmatmul.mubr.msk.f32.vlgmr.msra.gmra.mrb[22].mxu0 %vm1421_vm3, %v7959_v4 }
0x15a4   : > { %6207 = vmatpush3.msra.mxu0 %v4338_v8  ;;  %6208 = vmatprep.mubr.msk.f32.mxu0 %vm7011_vm2, %v7010_v10 }
0x15a5   : > { %6216 = vmatprep.subr.mxu0 %v3321_v6 }
0x15f4   : > { %v4326_v11 = vpop.xlane.xlu1 %4325 }
0x15f5   : > { %6535 = vrcp.f32 %v4326_v11 }
0x15f8   : > { %v4329_v12 = vpop.xlane.xlu1 %4328 }
0x15f9   : > { %6537 = vrcp.f32 %v4329_v12  ;;  %v5045_v12 = vld [vmem:[%s7619_s18] sm:$0xff] }
0x15fc   : > { %v4414_v17 = vpop.permute.xlu1 %4413 }
0x15fd   : > { %6212 = vmatpush3.msra.mxu1 %v4414_v17  ;;  %v5046_v17 = vld [vmem:[%s7619_s18 + $0x8] sm:$0xff] }
0x15fe   : > { %6221 = vmatprep.subr.mxu1 %v7010_v10 }
0x15ff   : > { %v6536_v13 = vpop.eup %6535 }
0x1600   : > { %v4332_v19 = vmul.f32 %v6536_v13, %v6532_v63  ;;  %v5047_v13 = vld [vmem:[%s7619_s18 + $0x10] sm:$0xff] }
0x1602   : > { %4335 = vst.msk [vmem:[#allocation22 + $0x10] sm:$0xff] %vm1421_vm3, %v4332_v19  ;;  %6209 = vmatmul.mubr.msk.f32.vlgmr.msra.gmra.mrb[24].mxu0 %vm1421_vm3, %v4332_v19  ;;  %v5048_v19 = vld [vmem:[%s7619_s18 + $0x18] sm:$0xff] }
0x1603   : > { %v6538_v4 = vpop.eup %6537  ;;  %6217 = vmatpush3.msra.mxu0 %v3321_v6 }
0x1604   : > { %v4333_v23 = vmul.f32 %v6538_v4, %v6534_v1  ;;  %6226 = vmatprep.subr.mxu0 %v7010_v10  ;;  %v6315_v4 = vpack.c.bf16 %v5048_v19, %v5047_v13  ;;  %v5866_v13 = vld [vmem:[%s1303_s24] ss:$0 sm:$0xff] }
0x1606   : > { %4336 = vst.msk [vmem:[#allocation22 + $0x30] sm:$0xff] %vm1421_vm3, %v4333_v23  ;;  %6214 = vmatmul.mubr.msk.f32.vlgmr.msra.gmra.mrb[38].mxu1 %vm1421_vm3, %v4333_v23  ;;  %v5140_v23 = vld [vmem:[%s7625_s9 + $0x8] sm:$0xff] }
0x1607   : > { %6222 = vmatpush3.xpose.msk.msra.mxu1 %vm1421_vm3, %v4575_v18  ;;  %6223 = vmatprep.mubr.msk.f32.mxu1 %vm7011_vm2, %v7010_v10  ;;  %v6311_v18 = vpack.c.bf16 %v5046_v17, %v5045_v12 }
0x1608   : > { %6231 = vmatprep.subr.mxu1 %v7010_v10 }
0x160a   : > { %6224 = vmatmul.mubr.msk.f32.vlgmr.msra.gmra.mrb[40].mxu1 %vm1421_vm3, %v4573_v21  ;;  %v5141_v21 = vld [vmem:[%s7625_s9 + $0x10] sm:$0xff] }
0x160b   : > { %6233 = vmatprep.mubr.msk.f32.mxu1 %vm7011_vm2, %v7010_v10 }
0x16d5   : > { %v4409_v24 = vpop.f32.mrb[24].mxu0 }
0x16d6   : > { %v6210_v25 = vpop.f32.mrb[25].mxu0  ;;  %6218 = vmatprep.mubr.msk.f32.mxu0 %vm1421_vm3, %v4409_v24 }
0x16d7   : > { %v5142_v25 = vld [vmem:[%s7625_s9 + $0x18] sm:$0xff] }
0x16d9   : > { %v4485_v16 = vpop.f32.mrb[38].mxu1 }
0x16da   : > { %v6215_v26 = vpop.f32.mrb[39].mxu1  ;;  %6219 = vmatmul.mubr.msk.f32.vlgmr.msra.gmra.mrb[22].mxu0 %vm1421_vm3, %v4485_v16  ;;  %v6323_v16 = vpack.c.bf16 %v5142_v25, %v5141_v21 }
0x16db   : > { %6227 = vmatpush3.xpose.msk.msra.mxu0 %vm1421_vm3, %v4653_v20  ;;  %6228 = vmatprep.mubr.msk.f32.mxu0 %vm7011_vm2, %v7010_v10  ;;  %v5139_v20 = vld [vmem:[%s7625_s9] sm:$0xff] }
0x16dc   : > { %6236 = vmatprep.subr.mxu0 %v7010_v10  ;;  %v6319_v24 = vpack.c.bf16 %v5140_v23, %v5139_v20  ;;  %v5143_v26 = vld [vmem:[%s7625_s9 + $0x20] sm:$0xff] }
0x16dd   : > { %v4646_v29 = vpop.f32.mrb[40].mxu1  ;;  %v5867_v20 = vld [vmem:[%s1115_s0] ss:$0 sm:$0xff] }
0x16de   : > { %v4728_v31 = vsel %vm3477_vm7, %v4646_v29, -1e+09  ;;  %v6225_v14 = vpop.f32.mrb[41].mxu1  ;;  %6229 = vmatmul.mubr.msk.f32.vlgmr.msra.gmra.mrb[26].mxu0 %vm1421_vm3, %v4651_v22  ;;  %v5144_v22 = vld [vmem:[%s7625_s9 + $0x28] sm:$0xff] }
0x16df   : > { %v4730_v33 = vsel %vm1421_vm3, %v4728_v31, -inf  ;;  %6238 = vmatprep.mubr.msk.f32.mxu0 %vm7011_vm2, %v7010_v10  ;;  %v6327_v29 = vpack.c.bf16 %v5144_v22, %v5143_v26  ;;  %v5288_v26 = vld [vmem:[%s8340_s8] sm:$0xff] (!%p5868_p2)  ;;  %v5289_v22 = vld [vmem:[%s8341_s19 + $0x8] sm:$0xff] (!%p5868_p2) }
0x16e0   : > { %4731 = vmax.xlane.f32.xlu1 %v4730_v33 }
0x176d   : > { %v4732_v34 = vpop.xlane.xlu1 %4731 }
0x176e   : > { %v4736_v35 = vsub.f32 %v4728_v31, %v4732_v34 }
0x1770   : > { %v4738_v36 = vmul.f32 1.442695, %v4736_v35 }
0x1772   : > { %6539 = vpow2.f32 %v4738_v36 }
0x177c   : > { %v6540_v15 = vpop.eup %6539 }
0x177d   : > { %v4742_v41 = vsel %vm1421_vm3, %v6540_v15, 0.0 }
0x17b1   : > { %v4724_v37 = vpop.f32.mrb[26].mxu0 }
0x17b2   : > { %v4729_v38 = vsel %vm3478_vm6, %v4724_v37, -1e+09  ;;  %v6230_v40 = vpop.f32.mrb[27].mxu0 }
0x17b3   : > { %v4733_v45 = vsel %vm1421_vm3, %v4729_v38, -inf }
0x17b4   : > { %4734 = vmax.xlane.f32.xlu0 %v4733_v45 }
0x17b8   : > { %4743 = vadd.xlane.f32.xlu0 %v4742_v41 }
0x17ce   : > { %4755 = vrot.lane.b32.xlu0 %v7885_v32, %s7020_s12 }
0x1841   : > { %v4735_v10 = vpop.xlane.xlu0 %4734 }
0x1842   : > { %v4737_v42 = vsub.f32 %v4729_v38, %v4735_v10  ;;  %v5858_v38 = vld [vmem:[%s1290_s15] ss:$0 sm:$0xff]  ;;  %s8337_s15 = scalar_lea.vmem [#allocation17], %s7549_s3 }
0x1843   : > { %v5859_v10 = vld [vmem:[%s8336_s11] ss:$0 sm:$0xff] }
0x1844   : > { %v4740_v43 = vmul.f32 1.442695, %v4737_v42 }
0x1845   : > { %v4744_v44 = vpop.xlane.xlu0 %4743 }
0x1846   : > { %6541 = vpow2.f32 %v4740_v43 }
0x1847   : > { %6543 = vrcp.f32 %v4744_v44 }
0x1849   : > { %v4756_v39 = vpop.permute.xlu0 %4755 }
0x184a   : > { %6232 = vmatpush3.msra.mxu1 %v4756_v39  ;;  %v5145_v39 = vld [vmem:[%s7625_s9 + $0x30] sm:$0xff] }
0x184b   : > { %6312 = vmatprep.subr.bf16.mxu1 %v6311_v18 }
0x1850   : > { %v6542_v46 = vpop.eup %6541 }
0x1851   : > { %v6544_v47 = vpop.eup %6543  ;;  %v4745_v48 = vsel %vm1421_vm3, %v6542_v46, 0.0 }
0x1852   : > { %v4750_v49 = vmul.f32 %v6544_v47, %v6540_v15  ;;  %4746 = vadd.xlane.f32.xlu1 %v4745_v48  ;;  %v5860_v48 = vld [vmem:[%s8337_s15] ss:$0 sm:$0xff] }
0x1854   : > { %4753 = vst.msk [vmem:[#allocation22 + $0x18] sm:$0xff] %vm1421_vm3, %v4750_v49  ;;  %6234 = vmatmul.mubr.msk.f32.vlgmr.msra.gmra.mrb[42].mxu1 %vm1421_vm3, %v4750_v49 }
0x1855   : > { %6314 = vmatpush3.bf16.msra.mxu1 %v6311_v18 }
0x1856   : > { %6316 = vmatprep.subr.bf16.mxu1 %v6315_v4 }
0x1859   : > { %6318 = vmatpush3.bf16.msra.mxu1 %v6315_v4 }
0x1863   : > { %4831 = vrot.lane.b32.xlu1 %v7883_v30, %s7020_s12 }
0x18df   : > { %v4747_v32 = vpop.xlane.xlu1 %4746 }
0x18e0   : > { %6545 = vrcp.f32 %v4747_v32 }
0x18e3   : > { %v4832_v51 = vpop.permute.xlu1 %4831 }
0x18e4   : > { %6237 = vmatpush3.msra.mxu0 %v4832_v51 }
0x18e5   : > { %6241 = vmatprep.subr.mxu0 %v3322_v50 }
0x18ea   : > { %v6546_v53 = vpop.eup %6545 }
0x18eb   : > { %v4751_v52 = vmul.f32 %v6546_v53, %v6542_v46  ;;  %v5146_v46 = vld [vmem:[%s7625_s9 + $0x38] sm:$0xff] }
0x18ec   : > { %v6331_v47 = vpack.c.bf16 %v5146_v46, %v5145_v39 }
0x18ed   : > { %4754 = vst.msk [vmem:[#allocation22 + $0x38] sm:$0xff] %vm1421_vm3, %v4751_v52  ;;  %6239 = vmatmul.mubr.msk.f32.vlgmr.msra.gmra.mrb[28].mxu0 %vm1421_vm3, %v4751_v52 }
0x18ee   : > { %6242 = vmatpush3.msra.mxu0 %v3322_v50 }
0x18ef   : > { %6320 = vmatprep.subr.bf16.mxu0 %v6319_v24 }
0x1927   : > { %v4827_v54 = vpop.f32.mrb[42].mxu1 }
0x1928   : > { %v6235_v9 = vpop.f32.mrb[43].mxu1  ;;  %6243 = vmatprep.mubr.msk.f32.mxu0 %vm1421_vm3, %v4827_v54  ;;  %v5863_v54 = vld [vmem:[%s8338_s7] ss:$0 sm:$0xff] }
0x19c0   : > { %v4903_v7 = vpop.f32.mrb[28].mxu0 }
0x19c1   : > { %v6240_v30 = vpop.f32.mrb[29].mxu0  ;;  %6244 = vmatmul.mubr.msk.f32.vlgmr.msra.gmra.mrb[22].mxu0 %vm1421_vm3, %v4903_v7 }
0x19c2   : > { %6322 = vmatpush3.bf16.msra.mxu0 %v6319_v24 }
0x19c3   : > { %6324 = vmatprep.subr.bf16.mxu0 %v6323_v16 }
0x19c6   : > { %6326 = vmatpush3.bf16.msra.mxu0 %v6323_v16 }
0x19c7   : > { %6328 = vmatprep.subr.bf16.mxu0 %v6327_v29 }
0x19ca   : > { %6330 = vmatpush3.bf16.msra.mxu0 %v6327_v29  ;;  %v5290_v29 = vld [vmem:[%s8341_s19 + $0x10] sm:$0xff] (!%p5868_p2) }
0x19cb   : > { %6332 = vmatprep.subr.bf16.mxu0 %v6331_v47 }
0x19ce   : > { %6334 = vmatpush3.bf16.msra.mxu0 %v6331_v47 }
0x1a94   : > { %v6245_v56 = vpop.f32.mrb[22].mxu0 }
0x1a95   : > { %v4998_v57 = vadd.f32 %v6245_v56, %v5857_v55  ;;  %v4979_v58 = vpop.f32.mrb[23].mxu0 }
0x1a96   : > { %v4997_v59 = vadd.f32 %v5857_v55, %v4979_v58 }
0x1a97   : > { %v5000_v60 = vadd.f32 %v4998_v57, %v7873_v28 }
0x1a98   : > { %v4999_v61 = vadd.f32 %v4997_v59, %v7871_v27 }
0x1a99   : > { %v5004_v62 = vsel %vm1328_vm1, %v5000_v60, 0.0 }
0x1a9a   : > { %5005 = vadd.xlane.f32.xlu0 %v5004_v62  ;;  %v5001_v63 = vsel %vm1328_vm1, %v4999_v61, 0.0 }
0x1a9b   : > { %5002 = vadd.xlane.f32.xlu1 %v5001_v63 }
0x1b27   : > { %v5006_v0 = vpop.xlane.xlu0 %5005 }
0x1b28   : > { %v5008_v1 = vmul.f32 0.03125, %v5006_v0  ;;  %v5003_v2 = vpop.xlane.xlu1 %5002 }
0x1b29   : > { %v5007_v3 = vmul.f32 0.03125, %v5003_v2 }
0x1b2a   : > { %v5010_v5 = vsub.f32 %v5000_v60, %v5008_v1 }
0x1b2b   : > { %v5009_v6 = vsub.f32 %v4999_v61, %v5007_v3 }
0x1b2c   : > { %v5012_v8 = vmul.f32 %v5010_v5, %v5010_v5 }
0x1b2d   : > { %v5011_v28 = vmul.f32 %v5009_v6, %v5009_v6 }
0x1b2e   : > { %v5016_v27 = vsel %vm1328_vm1, %v5012_v8, 0.0 }
0x1b2f   : > { %5017 = vadd.xlane.f32.xlu1 %v5016_v27  ;;  %v5013_v11 = vsel %vm1328_vm1, %v5011_v28, 0.0 }
0x1b30   : > { %5014 = vadd.xlane.f32.xlu0 %v5013_v11 }
0x1bbc   : > { %v5018_v31 = vpop.xlane.xlu1 %5017 }
0x1bbd   : > { %v5020_v14 = vmul.f32 0.03125, %v5018_v31  ;;  %v5015_v33 = vpop.xlane.xlu0 %5014  ;;  %v6335_v31 = vpack.c.bf16 (!%p5868_p2), %v5289_v22, %v5288_v26 }
0x1bbe   : > { %v5019_v34 = vmul.f32 0.03125, %v5015_v33 }
0x1bbf   : > { %v5022_v35 = vadd.f32 1e-05, %v5020_v14  ;;  %v5291_v14 = vld [vmem:[%s8341_s19 + $0x18] sm:$0xff] (!%p5868_p2)  ;;  %6336 = vmatprep.subr.bf16.mxu0 (!%p5868_p2), %v6335_v31 }
0x1bc0   : > { %v5021_v36 = vadd.f32 1e-05, %v5019_v34  ;;  %v6339_v33 = vpack.c.bf16 (!%p5868_p2), %v5291_v14, %v5290_v29  ;;  %v5869_v34 = vld [vmem:[#allocation3] ss:$0 sm:$0xff] (!%p5868_p2) }
0x1bc1   : > { %6547 = vrsqrt.f32 %v5022_v35 }
0x1bc2   : > { %6549 = vrsqrt.f32 %v5021_v36 }
0x1bcb   : > { %v6548_v37 = vpop.eup %6547 }
0x1bcc   : > { %v6550_v40 = vpop.eup %6549  ;;  %v5026_v45 = vmul.f32 %v6548_v37, %v5010_v5 }
0x1bcd   : > { %v5025_v15 = vmul.f32 %v6550_v40, %v5009_v6 }
0x1bce   : > { %v5035_v41 = vmul.f32 %v5858_v38, %v5026_v45 }
0x1bcf   : > { %v5034_v42 = vmul.f32 %v5858_v38, %v5025_v15 }
0x1bd0   : > { %v5044_v44 = vadd.f32 %v5859_v10, %v5035_v41 }
0x1bd1   : > { %v5043_v43 = vadd.f32 %v5859_v10, %v5034_v42 }
0x1bd3   : > { %6254 = vmatprep.mubr.msk.f32.mxu1 %vm1328_vm1, %v5043_v43 }
0x1bd4   : > { %6255 = vmatmul.mubr.msk.f32.vlgmr.msra.gmra.mrb[44].mxu1 %vm1328_vm1, %v5044_v44 }
0x1ca7   : > { %v6256_v49 = vpop.f32.mrb[44].mxu1 }
0x1ca8   : > { %v5134_v32 = vadd.f32 %v6256_v49, %v5860_v48  ;;  %v5128_v50 = vpop.f32.mrb[45].mxu1 }
0x1ca9   : > { %v5129_v51 = vadd.f32 %v5860_v48, %v5128_v50 }
0x1caa   : > { %v5138_v52 = vmax.f32 %v5134_v32, 0.0 }
0x1cab   : > { %v5137_v53 = vmax.f32 %v5129_v51, 0.0 }
0x1cad   : > { %6273 = vmatprep.mubr.msk.f32.mxu0 %vm5154_vm8, %v5137_v53 }
0x1cae   : > { %6274 = vmatmul.mubr.msk.f32.vlgmr.msra.gmra.mrb[30].mxu0 %vm5154_vm8, %v5138_v52 }
0x1caf   : > { %6338 = vmatpush3.bf16.msra.mxu0 (!%p5868_p2), %v6335_v31 }
0x1cb0   : > { %6340 = vmatprep.subr.bf16.mxu0 (!%p5868_p2), %v6339_v33 }
0x1cb3   : > { %6342 = vmatpush3.bf16.msra.mxu0 (!%p5868_p2), %v6339_v33 }
0x1d81   : > { %v6275_v9 = vpop.f32.mrb[30].mxu0 }
0x1d82   : > { %v5233_v7 = vadd.f32 %v6275_v9, %v5863_v54  ;;  %v5227_v30 = vpop.f32.mrb[31].mxu0 }
0x1d83   : > { %v5228_v55 = vadd.f32 %v5863_v54, %v5227_v30 }
0x1d84   : > { %v5237_v56 = vadd.f32 %v5233_v7, %v5044_v44 }
0x1d85   : > { %v5236_v57 = vadd.f32 %v5228_v55, %v5043_v43 }
0x1d86   : > { %v5241_v58 = vsel %vm1328_vm1, %v5237_v56, 0.0 }
0x1d87   : > { %5242 = vadd.xlane.f32.xlu1 %v5241_v58  ;;  %v5238_v59 = vsel %vm1328_vm1, %v5236_v57, 0.0 }
0x1d88   : > { %5239 = vadd.xlane.f32.xlu0 %v5238_v59 }
0x1e14   : > { %v5243_v60 = vpop.xlane.xlu1 %5242 }
0x1e15   : > { %v5245_v61 = vmul.f32 0.03125, %v5243_v60  ;;  %v5240_v62 = vpop.xlane.xlu0 %5239 }
0x1e16   : > { %v5244_v63 = vmul.f32 0.03125, %v5240_v62 }
0x1e17   : > { %v5247_v0 = vsub.f32 %v5237_v56, %v5245_v61 }
0x1e18   : > { %v5246_v1 = vsub.f32 %v5236_v57, %v5244_v63 }
0x1e19   : > { %v5249_v2 = vmul.f32 %v5247_v0, %v5247_v0 }
0x1e1a   : > { %v5248_v3 = vmul.f32 %v5246_v1, %v5246_v1 }
0x1e1b   : > { %v5253_v5 = vsel %vm1328_vm1, %v5249_v2, 0.0 }
0x1e1c   : > { %5254 = vadd.xlane.f32.xlu1 %v5253_v5  ;;  %v5250_v6 = vsel %vm1328_vm1, %v5248_v3, 0.0 }
0x1e1d   : > { %5251 = vadd.xlane.f32.xlu0 %v5250_v6 }
0x1ea9   : > { %v5255_v8 = vpop.xlane.xlu1 %5254 }
0x1eaa   : > { %v5257_v28 = vmul.f32 0.03125, %v5255_v8  ;;  %v5252_v27 = vpop.xlane.xlu0 %5251 }
0x1eab   : > { %v5256_v11 = vmul.f32 0.03125, %v5252_v27 }
0x1eac   : > { %v5259_v12 = vadd.f32 1e-05, %v5257_v28 }
0x1ead   : > { %v5258_v17 = vadd.f32 1e-05, %v5256_v11 }
0x1eae   : > { %6551 = vrsqrt.f32 %v5259_v12 }
0x1eaf   : > { %6553 = vrsqrt.f32 %v5258_v17 }
0x1eb8   : > { %v6552_v18 = vpop.eup %6551 }
0x1eb9   : > { %v6554_v19 = vpop.eup %6553  ;;  %v5263_v4 = vmul.f32 %v6552_v18, %v5247_v0 }
0x1eba   : > { %v5262_v23 = vmul.f32 %v6554_v19, %v5246_v1  ;;  %5287 = sbr.rel (%p5868_p2) target bundleno = 8089 (0x1f99), region = 176 }
0x1ebb   : > { %v5272_v21 = vmul.f32 %v5866_v13, %v5263_v4 }
0x1ebc   : > { %v5271_v24 = vmul.f32 %v5866_v13, %v5262_v23 }
0x1ebd   : > { %v5281_v25 = vadd.f32 %v5867_v20, %v5272_v21 }
0x1ebe   : > { %v5280_v16 = vadd.f32 %v5867_v20, %v5271_v24 }
0x1ebf   : > { %5283 = vst.msk [vmem:[#allocation2 + $0x8] sm:$0xff] %vm1328_vm1, %v5281_v25 }
0x1ec0   : > { %5282 = vst.msk [vmem:[#allocation2] sm:$0xff] %vm1328_vm1, %v5280_v16  ;;  %6284 = vmatprep.mubr.msk.f32.mxu0 (!%p5868_p2), %vm1328_vm1, %v5280_v16 }
0x1ec1   : > { %6285 = vmatmul.mubr.msk.f32.vlgmr.msra.gmra.mrb[0].mxu0 %vm1328_vm1, %v5281_v25 }
0x1f94   : > { %v6286_v35 = vpop.f32.mrb[0].mxu0 }
0x1f95   : > { %v5377_v36 = vadd.f32 %v6286_v35, %v5869_v34  ;;  %v5371_v37 = vpop.f32.mrb[1].mxu0 }
0x1f96   : > { %v5372_v38 = vadd.f32 %v5869_v34, %v5371_v37 }
0x1f97   : > { %5381 = vst [vmem:[#allocation21 + $0x8] sm:$0xff] %v5377_v36 }
0x1f98   : > { %5380 = vst [vmem:[#allocation21] sm:$0xff] %v5372_v38 }
0x1f99 PF: > { %p6425_p13 = scmp.eq.s32.totalorder %s7361_s6, 1  ;;  %s7023_s30 = smov [#allocation21]  }
0x1f9a   : > { %s5388_s29 = sshll.u32 %s7023_s30, 4  ;;  %s5389_s29 = int_to_ptr.vmem [resolvable:$true] %s5388_s29 }
0x1f9b   : > { %s6883_s14 = scalar_lea.vmem %s5389_s29, 256  ;;  %p6890_p6 = scmp.lt.s32.totalorder %s5389_s29, %s5389_s29 }
0x1f9c   : > { %p6884_p5 = scmp.ne.s32.totalorder %s5389_s29, %s6883_s14  ;;  %p6891_p3 = scmp.lt.s32.totalorder %s6883_s14, %s6883_s14 }
0x1f9e   : > { %p6885_p0 = pnand %p6884_p5, %p6425_p13  ;;  %p6892_p12 = por %p6891_p3, %p6890_p6 }
0x1fa0   : > { %p6886_p4 = pneg %p6885_p0 }
0x1fa2   : > { %p6893_p1 = pnand %p6892_p12, %p6886_p4 }
0x1fa4   : > { %6896 = shalt.err (!%p6893_p1)
}
0x1fa5   : > { %s8342_s23 = sld [smem:[#allocation60_spill]] }
0x1fab   : > { %s6897_s11 = scalar_lea.hbm %s8342_s23, 256 }
0x1fac   : > { %p6898_p7 = scmp.ne.s32.totalorder %s8342_s23, %s6897_s11  ;;  %p6903_p10 = scmp.lt.u32.totalorder %s6897_s11, %s8342_s23 }
0x1fae   : > { %p6899_p9 = pnand %p6898_p7, %p6425_p13 }
0x1fb0   : > { %p6900_p11 = pneg %p6899_p9 }
0x1fb2   : > { %p6905_p8 = pnand %p6903_p10, %p6900_p11 }
0x1fb4   : > { %6908 = shalt.err (!%p6905_p8)
}
0x1fb5   : > { %s7024_s12 = smov 128   ;;  %s7025_s21 = smov 8  }
0x1fb6   : > { %6380 = dma.vmem_to_hbm [thread:$0]  (%p6425_p13), %s5389_s29, 256, %s8342_s23, [#allocation5], %s7024_s12, %s7024_s12, %s7025_s21  }
0x1fb7   : > { %s7026_s24 = smov [#allocation22]  }
0x1fb8   : > { %s5401_s16 = sshll.u32 %s7026_s24, 4  ;;  %s5402_s16 = int_to_ptr.vmem [resolvable:$true] %s5401_s16 }
0x1fb9   : > { %s6909_s3 = scalar_lea.vmem %s5402_s16, 1024  ;;  %p6916_p4 = scmp.lt.s32.totalorder %s5402_s16, %s5402_s16 }
0x1fba   : > { %p6910_p2 = scmp.ne.s32.totalorder %s5402_s16, %s6909_s3  ;;  %p6917_p6 = scmp.lt.s32.totalorder %s6909_s3, %s6909_s3 }
0x1fbc   : > { %p6911_p5 = pnand %p6910_p2, %p6425_p13  ;;  %p6918_p3 = por %p6917_p6, %p6916_p4 }
0x1fbe   : > { %p6912_p0 = pneg %p6911_p5 }
0x1fc0   : > { %p6919_p12 = pnand %p6918_p3, %p6912_p0 }
0x1fc2   : > { %6922 = shalt.err (!%p6919_p12)
}
0x1fc3   : > { %s8343_s13 = sld [smem:[#allocation61_spill]] }
0x1fc9   : > { %s6923_s30 = scalar_lea.hbm %s8343_s13, 1024 }
0x1fca   : > { %p6924_p1 = scmp.ne.s32.totalorder %s8343_s13, %s6923_s30  ;;  %p6929_p11 = scmp.lt.u32.totalorder %s6923_s30, %s8343_s13 }
0x1fcc   : > { %p6925_p7 = pnand %p6924_p1, %p6425_p13 }
0x1fce   : > { %p6926_p9 = pneg %p6925_p7 }
0x1fd0   : > { %p6931_p10 = pnand %p6929_p11, %p6926_p9 }
0x1fd2   : > { %6934 = shalt.err (!%p6931_p10)
}
0x1fd3   : > { %6382 = dma.vmem_to_hbm [thread:$0]  (%p6425_p13), %s5402_s16, 1024, %s8343_s13, [#allocation23], %s7024_s12, %s7024_s12, %s7025_s21  }
0x1fd4   : > { %6976 = dma.done.wait (%p6425_p13), [#allocation5], 256  }
0x1fd5   : > { %6978 = vsyncadd (%p6425_p13), [#allocation5], 4294967040 }
0x1fd6   : > { %6980 = dma.done.wait (%p6425_p13), [#allocation23], 1024  }
0x1fd7   : > { %6982 = vsyncadd (%p6425_p13), [#allocation23], 4294966272 }
0x1fd8 PF: > { %s8344_s30 = sld [smem:[#allocation33_spill]]  ;;  %s8345_s9 = sld [smem:[#allocation32_spill]] }
0x1fd9   : > { %s8346_s8 = sld [smem:[#allocation34_spill]]  ;;  %s8347_s7 = smov %s6989_s4 }
0x1fde   : > { %p53_p8 = scmp.ge.s32.totalorder %s8344_s30, 4   ;;  %s8348_s4 = smov %s8345_s9 }
0x1fe0   :  { %55 = sbr.rel (!%p53_p8) target bundleno = 42 (0x2a), region = 322 }
0x1fe7   :  { %5421 = vsyncpa [#allocation4], 1 }
0x1fe8   :  { %5423 = vsyncpa [#allocation4 + $0x1], 1 }
0x1fe9   :  { %5424 = vsyncpa [#allocation7], 1 }
0x1fea   :  { %5426 = vsyncpa [#allocation7 + $0x1], 1 }
0x1feb   :  { %5427 = vsyncpa [#allocation10], 1 }
0x1fec   :  { %5429 = vsyncpa [#allocation10 + $0x1], 1 }
0x1fed   :  { %5430 = vsyncpa [#allocation13], 1 }
0x1fee   :  { %5432 = vsyncpa [#allocation13 + $0x1], 1 }
0x1fef   :  { %5433 = vsyncpa [#allocation16], 1 }
0x1ff0   :  { %5435 = vsyncpa [#allocation16 + $0x1], 1 }
0x1ff1   :  { %5436 = vsyncpa [#allocation19], 1 }
0x1ff2   :  { %5438 = vsyncpa [#allocation19 + $0x1], 1 }
0x1ff3   :  { %5439 = vsyncpa [#allocation5], 1 }
0x1ff4   :  { %5441 = vsyncpa [#allocation5 + $0x1], 1 }
0x1ff5   :  { %5442 = vsyncpa [#allocation23], 1 }

</bundles_post_ra>
